<compile_context>
chip_gen: v7x
topology: tpu7x:2x2x1
jax: 0.10.0
libtpu: 0.0.40
codegen_flags: <defaults>
</compile_context>

<pallas_src>
import functools

import jax
import jax.numpy as jnp
from jax.experimental import pallas as pl
from jax.experimental.pallas import tpu as pltpu

BN_EPS = 1e-5
LANE = 128


def _round_up(x, m):
    return (x + m - 1) // m * m


def _const_spec(shape, single_buffer):
    """Constant-index block: stays VMEM-resident across row tiles.

    With single_buffer=True we request ONE VMEM buffer instead of the default double
    buffer -- these blocks never change between grid steps, so the second buffer is
    pure VMEM waste (matters on v7x's 64 MiB VMEM at real GIN widths).  Falls back
    silently if this JAX build does not accept pipeline_mode on BlockSpec.
    """
    if single_buffer and hasattr(pl, "Buffered"):
        try:
            return pl.BlockSpec(shape, lambda i: (0, 0), pipeline_mode=pl.Buffered(1))
        except TypeError:
            pass
    return pl.BlockSpec(shape, lambda i: (0, 0))


# ---------------- Pass 1: BN1 moments of z1 = h @ w1 (z1 itself never hits HBM) ----------------
def _stats1_kernel(h_ref, w1_ref, st_ref):
    z1 = jnp.dot(h_ref[...], w1_ref[...], preferred_element_type=jnp.float32)
    ssum = jnp.sum(z1, axis=0, keepdims=True)
    ssq = jnp.sum(z1 * z1, axis=0, keepdims=True)
    st_ref[...] = jnp.concatenate(
        [ssum, ssq, jnp.zeros((6, z1.shape[1]), jnp.float32)], axis=0)


# ---- Pass 2: recompute z1; a1 = relu(z1*scale1+shift1); z2 = a1 @ w2 (bf16); BN2 moments ----
def _pass2_kernel(h_ref, w1_ref, sc1_ref, sh1_ref, w2_ref, z2_ref, st_ref, *, tm, n_true):
    i = pl.program_id(0)
    # Recompute z1 -- the MXU is idle in this memory-bound kernel, so this is free and
    # saves the z1 HBM round-trip entirely.
    z1 = jnp.dot(h_ref[...], w1_ref[...], preferred_element_type=jnp.float32)
    a1 = jnp.maximum(z1 * sc1_ref[...] + sh1_ref[...], 0.0)
    # Rows >= n_true are zero padding; BN1's shift makes them non-zero, so mask them
    # back to zero so z2 and the outer-BN statistics see the true batch only.
    row = jax.lax.broadcasted_iota(jnp.int32, a1.shape, 0) + i * tm
    a1 = jnp.where(row < n_true, a1, 0.0)
    z2 = jnp.dot(a1.astype(jnp.bfloat16), w2_ref[...],
                 preferred_element_type=jnp.float32)
    z2_b = z2.astype(jnp.bfloat16)           # bf16 HBM intermediate: half the traffic
    z2_ref[...] = z2_b
    z2_r = z2_b.astype(jnp.float32)          # moments on exactly what pass 3 will read
    ssum = jnp.sum(z2_r, axis=0, keepdims=True)
    ssq = jnp.sum(z2_r * z2_r, axis=0, keepdims=True)
    st_ref[...] = jnp.concatenate(
        [ssum, ssq, jnp.zeros((6, z2_r.shape[1]), jnp.float32)], axis=0)


# ---------------- Pass 3: out = relu(z2*scale2 + shift2) ----------------
def _pass3_kernel(z2_ref, sc2_ref, sh2_ref, o_ref):
    z2 = z2_ref[...].astype(jnp.float32)
    o_ref[...] = jnp.maximum(z2 * sc2_ref[...] + sh2_ref[...], 0.0)


def _fold_bn(partial_stats, n_true, gamma_p, beta_p):
    """Tiny [1, D] math (fused into the surrounding jit): fold training-mode BN into scale/shift."""
    width = partial_stats.shape[-1]
    st = partial_stats.reshape(-1, 8, width)
    s = jnp.sum(st[:, 0, :], axis=0, keepdims=True)
    sq = jnp.sum(st[:, 1, :], axis=0, keepdims=True)
    mu = s / n_true
    # NOTE: E[x^2]-E[x]^2 in f32 can cancel for very large N or large-mean features;
    # switch to a per-tile mean-shifted (Chan) merge if that regime matters.
    var = jnp.maximum(sq / n_true - mu * mu, 0.0)  # biased variance (PyTorch BN, training)
    scale = gamma_p * jax.lax.rsqrt(var + BN_EPS)
    shift = beta_p - mu * scale
    return scale, shift


def prepare_params(params):
    """Pad / bf16-cast the static parameters ONCE (hoisted out of the per-call path).

    Linear weights are stored [in, out] (transpose of PyTorch).  Linear biases are dropped:
    a per-feature constant added right before a training-mode BatchNorm cancels exactly when
    the batch mean is subtracted (not valid for eval-mode BN with running statistics).
    """
    in_dim, hid = params["w1"].shape
    out_dim = params["w2"].shape[1]
    hid_pad = _round_up(hid, LANE)
    out_pad = _round_up(out_dim, LANE)
    # The contraction dim (in_dim) is NOT padded: a (tm, in_dim) block is legal because it
    # spans the full array dim, and padding 32->128 would inflate h reads 4x for nothing.
    w1_p = jnp.zeros((in_dim, hid_pad), jnp.float32).at[:, :hid].set(
        params["w1"]).astype(jnp.bfloat16)
    w2_p = jnp.zeros((hid_pad, out_pad), jnp.float32).at[:hid, :out_dim].set(
        params["w2"]).astype(jnp.bfloat16)
    g1_p = jnp.zeros((1, hid_pad), jnp.float32).at[:, :hid].set(params["g1"].reshape(1, -1))
    be1_p = jnp.zeros((1, hid_pad), jnp.float32).at[:, :hid].set(params["be1"].reshape(1, -1))
    g2_p = jnp.zeros((1, out_pad), jnp.float32).at[:, :out_dim].set(params["g2"].reshape(1, -1))
    be2_p = jnp.zeros((1, out_pad), jnp.float32).at[:, :out_dim].set(params["be2"].reshape(1, -1))
    return {"w1": w1_p, "w2": w2_p, "g1": g1_p, "be1": be1_p, "g2": g2_p, "be2": be2_p}


@functools.partial(jax.jit, static_argnames=("out_dim", "tm", "single_buffer_consts"))
def apply_node_func(h, prepared, *, out_dim, tm=512, single_buffer_consts=True):
    """h: [N, input_dim] float32. prepared: output of prepare_params()."""
    n, in_dim = h.shape
    hid_pad = prepared["w1"].shape[1]
    out_pad = prepared["w2"].shape[1]

    # Big row tiles amortize the ~0.35us per-grid-step overhead and hit the HBM roofline,
    # but clamp so nt >= 2: the "parallel" axis then shards across both v7x TensorCores.
    tm = max(8, min(tm, _round_up(-(-n // 2), 8)))
    n_pad = _round_up(n, tm)
    nt = n_pad // tm

    h_b = h.astype(jnp.bfloat16)
    if n_pad != n:
        h_b = jnp.zeros((n_pad, in_dim), jnp.bfloat16).at[:n, :].set(h_b)

    parallel = pltpu.CompilerParams(dimension_semantics=("parallel",))
    h_spec = pl.BlockSpec((tm, in_dim), lambda i: (i, 0))
    stat_spec = lambda w: pl.BlockSpec((8, w), lambda i: (i, 0))
    w1_spec = _const_spec((in_dim, hid_pad), single_buffer_consts)
    w2_spec = _const_spec((hid_pad, out_pad), single_buffer_consts)

    # ---- Pass 1: BN1 moments of z1 = h @ w1 (z1 never written to HBM).
    st1 = pl.pallas_call(
        _stats1_kernel,
        grid=(nt,),
        in_specs=[h_spec, w1_spec],
        out_specs=stat_spec(hid_pad),
        out_shape=jax.ShapeDtypeStruct((nt * 8, hid_pad), jnp.float32),
        compiler_params=parallel,
    )(h_b, prepared["w1"])

    scale1, shift1 = _fold_bn(st1, n, prepared["g1"], prepared["be1"])

    # ---- Pass 2: recompute z1, fold BN1+ReLU, z2 = a1 @ w2 stored bf16, plus BN2 moments.
    z2, st2 = pl.pallas_call(
        functools.partial(_pass2_kernel, tm=tm, n_true=n),
        grid=(nt,),
        in_specs=[h_spec, w1_spec,
                  _const_spec((1, hid_pad), single_buffer_consts),
                  _const_spec((1, hid_pad), single_buffer_consts),
                  w2_spec],
        out_specs=[pl.BlockSpec((tm, out_pad), lambda i: (i, 0)),
                   stat_spec(out_pad)],
        out_shape=(jax.ShapeDtypeStruct((n_pad, out_pad), jnp.bfloat16),
                   jax.ShapeDtypeStruct((nt * 8, out_pad), jnp.float32)),
        compiler_params=parallel,
    )(h_b, prepared["w1"], scale1, shift1, prepared["w2"])

    scale2, shift2 = _fold_bn(st2, n, prepared["g2"], prepared["be2"])

    # ---- Pass 3: out = relu(BN2(z2)), lane-dense f32 store.
    y = pl.pallas_call(
        _pass3_kernel,
        grid=(nt,),
        in_specs=[pl.BlockSpec((tm, out_pad), lambda i: (i, 0)),
                  _const_spec((1, out_pad), single_buffer_consts),
                  _const_spec((1, out_pad), single_buffer_consts)],
        out_specs=pl.BlockSpec((tm, out_pad), lambda i: (i, 0)),
        out_shape=jax.ShapeDtypeStruct((n_pad, out_pad), jnp.float32),
        compiler_params=parallel,
    )(z2, scale2, shift2)

    # TODO(synk): if the downstream GINConv aggregation can consume bf16 / the padded width,
    # store pass-3 output in bf16 and return the padded slab to skip this slice-copy.
    return y[:n, :out_dim]


# ---------------- Pure-JAX f32 reference (faithful to the PyTorch forward) ----------------
def _batchnorm_train_ref(x, gamma, beta):
    mu = jnp.mean(x, axis=0, keepdims=True)
    var = jnp.mean((x - mu) * (x - mu), axis=0, keepdims=True)
    return gamma * (x - mu) * jax.lax.rsqrt(var + BN_EPS) + beta


def reference(h, p):
    z1 = h @ p["w1"] + p["b1"]
    z1 = jnp.maximum(_batchnorm_train_ref(z1, p["g1"], p["be1"]), 0.0)
    z2 = z1 @ p["w2"] + p["b2"]
    return jnp.maximum(_batchnorm_train_ref(z2, p["g2"], p["be2"]), 0.0)


if __name__ == "__main__":
    # Small ApplyNodeFunc shapes: 1000 graph nodes, 32 -> 64 -> 64 features
    # (GIN builds MLP(input_dim, hidden_dim, hidden_dim)).  N is deliberately not a
    # multiple of the row tile to exercise the padding/masking path.
    N, IN_DIM, HID_DIM, OUT_DIM = 1000, 32, 64, 64

    key = jax.random.PRNGKey(0)
    k_h, k_w1, k_b1, k_w2, k_b2 = jax.random.split(key, 5)

    h = jax.random.normal(k_h, (N, IN_DIM), dtype=jnp.float32)

    params = {
        # Linear weights stored as [in, out] (transpose of PyTorch's [out, in]).
        "w1": jax.random.normal(k_w1, (IN_DIM, HID_DIM), dtype=jnp.float32) * 0.1,
        "b1": jax.random.normal(k_b1, (1, HID_DIM), dtype=jnp.float32) * 0.1,
        # MLP-internal BatchNorm1d(hidden_dim): default affine init gamma=1, beta=0.
        "g1": jnp.ones((1, HID_DIM), dtype=jnp.float32),
        "be1": jnp.zeros((1, HID_DIM), dtype=jnp.float32),
        "w2": jax.random.normal(k_w2, (HID_DIM, OUT_DIM), dtype=jnp.float32) * 0.1,
        "b2": jax.random.normal(k_b2, (1, OUT_DIM), dtype=jnp.float32) * 0.1,
        # ApplyNodeFunc.bn = BatchNorm1d(mlp.output_dim): gamma=1, beta=0.
        "g2": jnp.ones((1, OUT_DIM), dtype=jnp.float32),
        "be2": jnp.zeros((1, OUT_DIM), dtype=jnp.float32),
    }

    prep = prepare_params(params)   # one-time padding + bf16 casts (hoisted out of the call)

    try:
        out = apply_node_func(h, prep, out_dim=OUT_DIM, tm=512)
    except Exception:
        # Capability fallback: this JAX build rejects single-buffered constant blocks
        # (pipeline_mode); rerun with default double buffering.
        out = apply_node_func(h, prep, out_dim=OUT_DIM, tm=512, single_buffer_consts=False)
    out = jax.block_until_ready(out)

    ref = reference(h, params)
    assert out.shape == (N, OUT_DIM)
    # Kernel uses bf16 MXU operands + a bf16 HBM intermediate with f32 accumulation, so
    # compare against the f32 reference with a correspondingly loosened tolerance.
    assert jnp.allclose(out, ref, atol=5e-2, rtol=5e-2), "mismatch vs JAX reference"

    print("KERNEL_OK")
</pallas_src>

<mosaic_0001>
module attributes {stable_mosaic.version = 11 : i64} {
  func.func @_stats1_kernel(%arg0: i32, %arg1: memref<504x32xbf16, #tpu.memory_space<vmem>>, %arg2: memref<32x128xbf16, #tpu.memory_space<vmem>>, %arg3: memref<8x128xf32, #tpu.memory_space<vmem>>) attributes {dimension_semantics = [#tpu.dimension_semantics<parallel>], iteration_bounds = array<i64: 2>, scalar_prefetch = 0 : i64, scratch_operands = 0 : i64, tpu.core_type = #tpu.core_type<tc>, window_params = [{transform_indices = @transform_0, window_bounds = array<i64: 504, 32>}, {pipeline_mode = #tpu.pipeline_mode<synchronous>, transform_indices = @transform_1, window_bounds = array<i64: 32, 128>}, {transform_indices = @transform_2, window_bounds = array<i64: 8, 128>}]} {
    %c0 = arith.constant 0 : index
    %c0_0 = arith.constant 0 : index
    %0 = vector.load %arg1[%c0, %c0_0] : memref<504x32xbf16, #tpu.memory_space<vmem>>, vector<504x32xbf16>
    %c0_1 = arith.constant 0 : index
    %c0_2 = arith.constant 0 : index
    %1 = vector.load %arg2[%c0_1, %c0_2] : memref<32x128xbf16, #tpu.memory_space<vmem>>, vector<32x128xbf16>
    %cst = arith.constant dense<0.000000e+00> : vector<504x128xf32>
    %2 = tpu.matmul %0, %1, %cst {dimension_numbers = #tpu.dot_dimension_numbers<[1], [0], [0], [1], [0, 0, 1, 1], [], []>} : vector<504x32xbf16>, vector<32x128xbf16>, vector<504x128xf32> -> vector<504x128xf32>
    %cst_3 = arith.constant dense<0.000000e+00> : vector<128xf32>
    %3 = vector.multi_reduction <add>, %2, %cst_3 [0] : vector<504x128xf32> to vector<128xf32>
    %4 = vector.shape_cast %3 : vector<128xf32> to vector<1x128xf32>
    %5 = arith.mulf %2, %2 : vector<504x128xf32>
    %cst_4 = arith.constant dense<0.000000e+00> : vector<128xf32>
    %6 = vector.multi_reduction <add>, %5, %cst_4 [0] : vector<504x128xf32> to vector<128xf32>
    %7 = vector.shape_cast %6 : vector<128xf32> to vector<1x128xf32>
    %cst_5 = arith.constant 0.000000e+00 : f32
    %8 = vector.broadcast %cst_5 : f32 to vector<6x128xf32>
    %9 = tpu.concatenate %4, %7, %8 in 0 : vector<1x128xf32>, vector<1x128xf32>, vector<6x128xf32> -> vector<8x128xf32>
    %c0_6 = arith.constant 0 : index
    %c0_7 = arith.constant 0 : index
    %10 = vector.load %arg3[%c0_6, %c0_7] : memref<8x128xf32, #tpu.memory_space<vmem>>, vector<8x128xf32>
    tpu.vector_store %arg3[%c0_6, %c0_7], %9 {strides = array<i32>} : memref<8x128xf32, #tpu.memory_space<vmem>>, vector<8x128xf32>,
    return
  }
  func.func @transform_0(%arg0: i32) -> (i32, i32) {
    %c0_i32 = arith.constant 0 : i32
    %c0_i32_0 = arith.constant 0 : i32
    return %arg0, %c0_i32 : i32, i32
  }
  func.func @transform_1(%arg0: i32) -> (i32, i32) {
    %c0_i32 = arith.constant 0 : i32
    %c0_i32_0 = arith.constant 0 : i32
    %c0_i32_1 = arith.constant 0 : i32
    return %c0_i32, %c0_i32_0 : i32, i32
  }
  func.func @transform_2(%arg0: i32) -> (i32, i32) {
    %c0_i32 = arith.constant 0 : i32
    %c0_i32_0 = arith.constant 0 : i32
    return %arg0, %c0_i32 : i32, i32
  }
}

module attributes {stable_mosaic.version = 11 : i64} {
  func.func @_pass3_kernel(%arg0: i32, %arg1: memref<504x128xbf16, #tpu.memory_space<vmem>>, %arg2: memref<1x128xf32, #tpu.memory_space<vmem>>, %arg3: memref<1x128xf32, #tpu.memory_space<vmem>>, %arg4: memref<504x128xf32, #tpu.memory_space<vmem>>) attributes {dimension_semantics = [#tpu.dimension_semantics<parallel>], iteration_bounds = array<i64: 2>, scalar_prefetch = 0 : i64, scratch_operands = 0 : i64, tpu.core_type = #tpu.core_type<tc>, window_params = [{transform_indices = @transform_0, window_bounds = array<i64: 504, 128>}, {pipeline_mode = #tpu.pipeline_mode<synchronous>, transform_indices = @transform_1, window_bounds = array<i64: 1, 128>}, {pipeline_mode = #tpu.pipeline_mode<synchronous>, transform_indices = @transform_2, window_bounds = array<i64: 1, 128>}, {transform_indices = @transform_3, window_bounds = array<i64: 504, 128>}]} {
    %c0 = arith.constant 0 : index
    %c0_0 = arith.constant 0 : index
    %0 = vector.load %arg1[%c0, %c0_0] : memref<504x128xbf16, #tpu.memory_space<vmem>>, vector<504x128xbf16>
    %1 = arith.extf %0 : vector<504x128xbf16> to vector<504x128xf32>
    %c0_1 = arith.constant 0 : index
    %c0_2 = arith.constant 0 : index
    %2 = vector.load %arg2[%c0_1, %c0_2] : memref<1x128xf32, #tpu.memory_space<vmem>>, vector<1x128xf32>
    %3 = vector.broadcast %2 : vector<1x128xf32> to vector<504x128xf32>
    %4 = arith.mulf %1, %3 : vector<504x128xf32>
    %c0_3 = arith.constant 0 : index
    %c0_4 = arith.constant 0 : index
    %5 = vector.load %arg3[%c0_3, %c0_4] : memref<1x128xf32, #tpu.memory_space<vmem>>, vector<1x128xf32>
    %6 = vector.broadcast %5 : vector<1x128xf32> to vector<504x128xf32>
    %7 = arith.addf %4, %6 : vector<504x128xf32>
    %cst = arith.constant 0.000000e+00 : f32
    %8 = vector.broadcast %cst : f32 to vector<504x128xf32>
    %9 = arith.maximumf %7, %8 : vector<504x128xf32>
    %c0_5 = arith.constant 0 : index
    %c0_6 = arith.constant 0 : index
    %10 = vector.load %arg4[%c0_5, %c0_6] : memref<504x128xf32, #tpu.memory_space<vmem>>, vector<504x128xf32>
    tpu.vector_store %arg4[%c0_5, %c0_6], %9 {strides = array<i32>} : memref<504x128xf32, #tpu.memory_space<vmem>>, vector<504x128xf32>,
    return
  }
  func.func @transform_0(%arg0: i32) -> (i32, i32) {
    %c0_i32 = arith.constant 0 : i32
    %c0_i32_0 = arith.constant 0 : i32
    return %arg0, %c0_i32 : i32, i32
  }
  func.func @transform_1(%arg0: i32) -> (i32, i32) {
    %c0_i32 = arith.constant 0 : i32
    %c0_i32_0 = arith.constant 0 : i32
    %c0_i32_1 = arith.constant 0 : i32
    return %c0_i32, %c0_i32_0 : i32, i32
  }
  func.func @transform_2(%arg0: i32) -> (i32, i32) {
    %c0_i32 = arith.constant 0 : i32
    %c0_i32_0 = arith.constant 0 : i32
    %c0_i32_1 = arith.constant 0 : i32
    return %c0_i32, %c0_i32_0 : i32, i32
  }
  func.func @transform_3(%arg0: i32) -> (i32, i32) {
    %c0_i32 = arith.constant 0 : i32
    %c0_i32_0 = arith.constant 0 : i32
    return %arg0, %c0_i32 : i32, i32
  }
}

module attributes {stable_mosaic.version = 11 : i64} {
  func.func @_pass2_kernel(%arg0: i32, %arg1: memref<504x32xbf16, #tpu.memory_space<vmem>>, %arg2: memref<32x128xbf16, #tpu.memory_space<vmem>>, %arg3: memref<1x128xf32, #tpu.memory_space<vmem>>, %arg4: memref<1x128xf32, #tpu.memory_space<vmem>>, %arg5: memref<128x128xbf16, #tpu.memory_space<vmem>>, %arg6: memref<504x128xbf16, #tpu.memory_space<vmem>>, %arg7: memref<8x128xf32, #tpu.memory_space<vmem>>) attributes {dimension_semantics = [#tpu.dimension_semantics<parallel>], iteration_bounds = array<i64: 2>, scalar_prefetch = 0 : i64, scratch_operands = 0 : i64, tpu.core_type = #tpu.core_type<tc>, window_params = [{transform_indices = @transform_0, window_bounds = array<i64: 504, 32>}, {pipeline_mode = #tpu.pipeline_mode<synchronous>, transform_indices = @transform_1, window_bounds = array<i64: 32, 128>}, {pipeline_mode = #tpu.pipeline_mode<synchronous>, transform_indices = @transform_2, window_bounds = array<i64: 1, 128>}, {pipeline_mode = #tpu.pipeline_mode<synchronous>, transform_indices = @transform_3, window_bounds = array<i64: 1, 128>}, {pipeline_mode = #tpu.pipeline_mode<synchronous>, transform_indices = @transform_4, window_bounds = array<i64: 128, 128>}, {transform_indices = @transform_5, window_bounds = array<i64: 504, 128>}, {transform_indices = @transform_6, window_bounds = array<i64: 8, 128>}]} {
    %c0 = arith.constant 0 : index
    %c0_0 = arith.constant 0 : index
    %0 = vector.load %arg1[%c0, %c0_0] : memref<504x32xbf16, #tpu.memory_space<vmem>>, vector<504x32xbf16>
    %c0_1 = arith.constant 0 : index
    %c0_2 = arith.constant 0 : index
    %1 = vector.load %arg2[%c0_1, %c0_2] : memref<32x128xbf16, #tpu.memory_space<vmem>>, vector<32x128xbf16>
    %cst = arith.constant dense<0.000000e+00> : vector<504x128xf32>
    %2 = tpu.matmul %0, %1, %cst {dimension_numbers = #tpu.dot_dimension_numbers<[1], [0], [0], [1], [0, 0, 1, 1], [], []>} : vector<504x32xbf16>, vector<32x128xbf16>, vector<504x128xf32> -> vector<504x128xf32>
    %c0_3 = arith.constant 0 : index
    %c0_4 = arith.constant 0 : index
    %3 = vector.load %arg3[%c0_3, %c0_4] : memref<1x128xf32, #tpu.memory_space<vmem>>, vector<1x128xf32>
    %4 = vector.broadcast %3 : vector<1x128xf32> to vector<504x128xf32>
    %5 = arith.mulf %2, %4 : vector<504x128xf32>
    %c0_5 = arith.constant 0 : index
    %c0_6 = arith.constant 0 : index
    %6 = vector.load %arg4[%c0_5, %c0_6] : memref<1x128xf32, #tpu.memory_space<vmem>>, vector<1x128xf32>
    %7 = vector.broadcast %6 : vector<1x128xf32> to vector<504x128xf32>
    %8 = arith.addf %5, %7 : vector<504x128xf32>
    %cst_7 = arith.constant 0.000000e+00 : f32
    %9 = vector.broadcast %cst_7 : f32 to vector<504x128xf32>
    %10 = arith.maximumf %8, %9 : vector<504x128xf32>
    %11 = tpu.iota {dimensions = array<i32: 0>} : vector<504x128xi32>
    %c504_i32 = arith.constant 504 : i32
    %12 = arith.muli %arg0, %c504_i32 : i32
    %13 = vector.broadcast %12 : i32 to vector<504x128xi32>
    %14 = arith.addi %11, %13 : vector<504x128xi32>
    %c1000_i32 = arith.constant 1000 : i32
    %15 = vector.broadcast %c1000_i32 : i32 to vector<504x128xi32>
    %16 = arith.cmpi slt, %14, %15 : vector<504x128xi32>
    %cst_8 = arith.constant 0.000000e+00 : f32
    %17 = vector.broadcast %cst_8 : f32 to vector<504x128xf32>
    %18 = arith.select %16, %10, %17 : vector<504x128xi1>, vector<504x128xf32>
    %19 = arith.truncf %18 : vector<504x128xf32> to vector<504x128xbf16>
    %c0_9 = arith.constant 0 : index
    %c0_10 = arith.constant 0 : index
    %20 = vector.load %arg5[%c0_9, %c0_10] : memref<128x128xbf16, #tpu.memory_space<vmem>>, vector<128x128xbf16>
    %cst_11 = arith.constant dense<0.000000e+00> : vector<504x128xf32>
    %21 = tpu.matmul %19, %20, %cst_11 {dimension_numbers = #tpu.dot_dimension_numbers<[1], [0], [0], [1], [0, 0, 1, 1], [], []>} : vector<504x128xbf16>, vector<128x128xbf16>, vector<504x128xf32> -> vector<504x128xf32>
    %22 = arith.truncf %21 : vector<504x128xf32> to vector<504x128xbf16>
    %c0_12 = arith.constant 0 : index
    %c0_13 = arith.constant 0 : index
    %23 = vector.load %arg6[%c0_12, %c0_13] : memref<504x128xbf16, #tpu.memory_space<vmem>>, vector<504x128xbf16>
    tpu.vector_store %arg6[%c0_12, %c0_13], %22 {strides = array<i32>} : memref<504x128xbf16, #tpu.memory_space<vmem>>, vector<504x128xbf16>,
    %24 = arith.extf %22 : vector<504x128xbf16> to vector<504x128xf32>
    %cst_14 = arith.constant dense<0.000000e+00> : vector<128xf32>
    %25 = vector.multi_reduction <add>, %24, %cst_14 [0] : vector<504x128xf32> to vector<128xf32>
    %26 = vector.shape_cast %25 : vector<128xf32> to vector<1x128xf32>
    %27 = arith.mulf %24, %24 : vector<504x128xf32>
    %cst_15 = arith.constant dense<0.000000e+00> : vector<128xf32>
    %28 = vector.multi_reduction <add>, %27, %cst_15 [0] : vector<504x128xf32> to vector<128xf32>
    %29 = vector.shape_cast %28 : vector<128xf32> to vector<1x128xf32>
    %cst_16 = arith.constant 0.000000e+00 : f32
    %30 = vector.broadcast %cst_16 : f32 to vector<6x128xf32>
    %31 = tpu.concatenate %26, %29, %30 in 0 : vector<1x128xf32>, vector<1x128xf32>, vector<6x128xf32> -> vector<8x128xf32>
    %c0_17 = arith.constant 0 : index
    %c0_18 = arith.constant 0 : index
    %32 = vector.load %arg7[%c0_17, %c0_18] : memref<8x128xf32, #tpu.memory_space<vmem>>, vector<8x128xf32>
    tpu.vector_store %arg7[%c0_17, %c0_18], %31 {strides = array<i32>} : memref<8x128xf32, #tpu.memory_space<vmem>>, vector<8x128xf32>,
    return
  }
  func.func @transform_0(%arg0: i32) -> (i32, i32) {
    %c0_i32 = arith.constant 0 : i32
    %c0_i32_0 = arith.constant 0 : i32
    return %arg0, %c0_i32 : i32, i32
  }
  func.func @transform_1(%arg0: i32) -> (i32, i32) {
    %c0_i32 = arith.constant 0 : i32
    %c0_i32_0 = arith.constant 0 : i32
    %c0_i32_1 = arith.constant 0 : i32
    return %c0_i32, %c0_i32_0 : i32, i32
  }
  func.func @transform_2(%arg0: i32) -> (i32, i32) {
    %c0_i32 = arith.constant 0 : i32
    %c0_i32_0 = arith.constant 0 : i32
    %c0_i32_1 = arith.constant 0 : i32
    return %c0_i32, %c0_i32_0 : i32, i32
  }
  func.func @transform_3(%arg0: i32) -> (i32, i32) {
    %c0_i32 = arith.constant 0 : i32
    %c0_i32_0 = arith.constant 0 : i32
    %c0_i32_1 = arith.constant 0 : i32
    return %c0_i32, %c0_i32_0 : i32, i32
  }
  func.func @transform_4(%arg0: i32) -> (i32, i32) {
    %c0_i32 = arith.constant 0 : i32
    %c0_i32_0 = arith.constant 0 : i32
    %c0_i32_1 = arith.constant 0 : i32
    return %c0_i32, %c0_i32_0 : i32, i32
  }
  func.func @transform_5(%arg0: i32) -> (i32, i32) {
    %c0_i32 = arith.constant 0 : i32
    %c0_i32_0 = arith.constant 0 : i32
    return %arg0, %c0_i32 : i32, i32
  }
  func.func @transform_6(%arg0: i32) -> (i32, i32) {
    %c0_i32 = arith.constant 0 : i32
    %c0_i32_0 = arith.constant 0 : i32
    return %arg0, %c0_i32 : i32, i32
  }
}

module attributes {stable_mosaic.version = 11 : i64} {
  func.func @_stats1_kernel(%arg0: i32, %arg1: memref<504x32xbf16, #tpu.memory_space<vmem>>, %arg2: memref<32x128xbf16, #tpu.memory_space<vmem>>, %arg3: memref<8x128xf32, #tpu.memory_space<vmem>>) attributes {dimension_semantics = [#tpu.dimension_semantics<parallel>], iteration_bounds = array<i64: 2>, scalar_prefetch = 0 : i64, scratch_operands = 0 : i64, tpu.core_type = #tpu.core_type<tc>, window_params = [{transform_indices = @transform_0, window_bounds = array<i64: 504, 32>}, {pipeline_mode = #tpu.pipeline_mode<synchronous>, transform_indices = @transform_1, window_bounds = array<i64: 32, 128>}, {transform_indices = @transform_2, window_bounds = array<i64: 8, 128>}]} {
    %c0 = arith.constant 0 : index
    %c0_0 = arith.constant 0 : index
    %0 = vector.load %arg1[%c0, %c0_0] : memref<504x32xbf16, #tpu.memory_space<vmem>>, vector<504x32xbf16>
    %c0_1 = arith.constant 0 : index
    %c0_2 = arith.constant 0 : index
    %1 = vector.load %arg2[%c0_1, %c0_2] : memref<32x128xbf16, #tpu.memory_space<vmem>>, vector<32x128xbf16>
    %cst = arith.constant dense<0.000000e+00> : vector<504x128xf32>
    %2 = tpu.matmul %0, %1, %cst {dimension_numbers = #tpu.dot_dimension_numbers<[1], [0], [0], [1], [0, 0, 1, 1], [], []>} : vector<504x32xbf16>, vector<32x128xbf16>, vector<504x128xf32> -> vector<504x128xf32>
    %cst_3 = arith.constant dense<0.000000e+00> : vector<128xf32>
    %3 = vector.multi_reduction <add>, %2, %cst_3 [0] : vector<504x128xf32> to vector<128xf32>
    %4 = vector.shape_cast %3 : vector<128xf32> to vector<1x128xf32>
    %5 = arith.mulf %2, %2 : vector<504x128xf32>
    %cst_4 = arith.constant dense<0.000000e+00> : vector<128xf32>
    %6 = vector.multi_reduction <add>, %5, %cst_4 [0] : vector<504x128xf32> to vector<128xf32>
    %7 = vector.shape_cast %6 : vector<128xf32> to vector<1x128xf32>
    %cst_5 = arith.constant 0.000000e+00 : f32
    %8 = vector.broadcast %cst_5 : f32 to vector<6x128xf32>
    %9 = tpu.concatenate %4, %7, %8 in 0 : vector<1x128xf32>, vector<1x128xf32>, vector<6x128xf32> -> vector<8x128xf32>
    %c0_6 = arith.constant 0 : index
    %c0_7 = arith.constant 0 : index
    %10 = vector.load %arg3[%c0_6, %c0_7] : memref<8x128xf32, #tpu.memory_space<vmem>>, vector<8x128xf32>
    tpu.vector_store %arg3[%c0_6, %c0_7], %9 {strides = array<i32>} : memref<8x128xf32, #tpu.memory_space<vmem>>, vector<8x128xf32>,
    return
  }
  func.func @transform_0(%arg0: i32) -> (i32, i32) {
    %c0_i32 = arith.constant 0 : i32
    %c0_i32_0 = arith.constant 0 : i32
    return %arg0, %c0_i32 : i32, i32
  }
  func.func @transform_1(%arg0: i32) -> (i32, i32) {
    %c0_i32 = arith.constant 0 : i32
    %c0_i32_0 = arith.constant 0 : i32
    %c0_i32_1 = arith.constant 0 : i32
    return %c0_i32, %c0_i32_0 : i32, i32
  }
  func.func @transform_2(%arg0: i32) -> (i32, i32) {
    %c0_i32 = arith.constant 0 : i32
    %c0_i32_0 = arith.constant 0 : i32
    return %arg0, %c0_i32 : i32, i32
  }
}

module attributes {stable_mosaic.version = 11 : i64} {
  func.func @_pass2_kernel(%arg0: i32, %arg1: memref<504x32xbf16, #tpu.memory_space<vmem>>, %arg2: memref<32x128xbf16, #tpu.memory_space<vmem>>, %arg3: memref<1x128xf32, #tpu.memory_space<vmem>>, %arg4: memref<1x128xf32, #tpu.memory_space<vmem>>, %arg5: memref<128x128xbf16, #tpu.memory_space<vmem>>, %arg6: memref<504x128xbf16, #tpu.memory_space<vmem>>, %arg7: memref<8x128xf32, #tpu.memory_space<vmem>>) attributes {dimension_semantics = [#tpu.dimension_semantics<parallel>], iteration_bounds = array<i64: 2>, scalar_prefetch = 0 : i64, scratch_operands = 0 : i64, tpu.core_type = #tpu.core_type<tc>, window_params = [{transform_indices = @transform_0, window_bounds = array<i64: 504, 32>}, {pipeline_mode = #tpu.pipeline_mode<synchronous>, transform_indices = @transform_1, window_bounds = array<i64: 32, 128>}, {pipeline_mode = #tpu.pipeline_mode<synchronous>, transform_indices = @transform_2, window_bounds = array<i64: 1, 128>}, {pipeline_mode = #tpu.pipeline_mode<synchronous>, transform_indices = @transform_3, window_bounds = array<i64: 1, 128>}, {pipeline_mode = #tpu.pipeline_mode<synchronous>, transform_indices = @transform_4, window_bounds = array<i64: 128, 128>}, {transform_indices = @transform_5, window_bounds = array<i64: 504, 128>}, {transform_indices = @transform_6, window_bounds = array<i64: 8, 128>}]} {
    %c0 = arith.constant 0 : index
    %c0_0 = arith.constant 0 : index
    %0 = vector.load %arg1[%c0, %c0_0] : memref<504x32xbf16, #tpu.memory_space<vmem>>, vector<504x32xbf16>
    %c0_1 = arith.constant 0 : index
    %c0_2 = arith.constant 0 : index
    %1 = vector.load %arg2[%c0_1, %c0_2] : memref<32x128xbf16, #tpu.memory_space<vmem>>, vector<32x128xbf16>
    %cst = arith.constant dense<0.000000e+00> : vector<504x128xf32>
    %2 = tpu.matmul %0, %1, %cst {dimension_numbers = #tpu.dot_dimension_numbers<[1], [0], [0], [1], [0, 0, 1, 1], [], []>} : vector<504x32xbf16>, vector<32x128xbf16>, vector<504x128xf32> -> vector<504x128xf32>
    %c0_3 = arith.constant 0 : index
    %c0_4 = arith.constant 0 : index
    %3 = vector.load %arg3[%c0_3, %c0_4] : memref<1x128xf32, #tpu.memory_space<vmem>>, vector<1x128xf32>
    %4 = vector.broadcast %3 : vector<1x128xf32> to vector<504x128xf32>
    %5 = arith.mulf %2, %4 : vector<504x128xf32>
    %c0_5 = arith.constant 0 : index
    %c0_6 = arith.constant 0 : index
    %6 = vector.load %arg4[%c0_5, %c0_6] : memref<1x128xf32, #tpu.memory_space<vmem>>, vector<1x128xf32>
    %7 = vector.broadcast %6 : vector<1x128xf32> to vector<504x128xf32>
    %8 = arith.addf %5, %7 : vector<504x128xf32>
    %cst_7 = arith.constant 0.000000e+00 : f32
    %9 = vector.broadcast %cst_7 : f32 to vector<504x128xf32>
    %10 = arith.maximumf %8, %9 : vector<504x128xf32>
    %11 = tpu.iota {dimensions = array<i32: 0>} : vector<504x128xi32>
    %c504_i32 = arith.constant 504 : i32
    %12 = arith.muli %arg0, %c504_i32 : i32
    %13 = vector.broadcast %12 : i32 to vector<504x128xi32>
    %14 = arith.addi %11, %13 : vector<504x128xi32>
    %c1000_i32 = arith.constant 1000 : i32
    %15 = vector.broadcast %c1000_i32 : i32 to vector<504x128xi32>
    %16 = arith.cmpi slt, %14, %15 : vector<504x128xi32>
    %cst_8 = arith.constant 0.000000e+00 : f32
    %17 = vector.broadcast %cst_8 : f32 to vector<504x128xf32>
    %18 = arith.select %16, %10, %17 : vector<504x128xi1>, vector<504x128xf32>
    %19 = arith.truncf %18 : vector<504x128xf32> to vector<504x128xbf16>
    %c0_9 = arith.constant 0 : index
    %c0_10 = arith.constant 0 : index
    %20 = vector.load %arg5[%c0_9, %c0_10] : memref<128x128xbf16, #tpu.memory_space<vmem>>, vector<128x128xbf16>
    %cst_11 = arith.constant dense<0.000000e+00> : vector<504x128xf32>
    %21 = tpu.matmul %19, %20, %cst_11 {dimension_numbers = #tpu.dot_dimension_numbers<[1], [0], [0], [1], [0, 0, 1, 1], [], []>} : vector<504x128xbf16>, vector<128x128xbf16>, vector<504x128xf32> -> vector<504x128xf32>
    %22 = arith.truncf %21 : vector<504x128xf32> to vector<504x128xbf16>
    %c0_12 = arith.constant 0 : index
    %c0_13 = arith.constant 0 : index
    %23 = vector.load %arg6[%c0_12, %c0_13] : memref<504x128xbf16, #tpu.memory_space<vmem>>, vector<504x128xbf16>
    tpu.vector_store %arg6[%c0_12, %c0_13], %22 {strides = array<i32>} : memref<504x128xbf16, #tpu.memory_space<vmem>>, vector<504x128xbf16>,
    %24 = arith.extf %22 : vector<504x128xbf16> to vector<504x128xf32>
    %cst_14 = arith.constant dense<0.000000e+00> : vector<128xf32>
    %25 = vector.multi_reduction <add>, %24, %cst_14 [0] : vector<504x128xf32> to vector<128xf32>
    %26 = vector.shape_cast %25 : vector<128xf32> to vector<1x128xf32>
    %27 = arith.mulf %24, %24 : vector<504x128xf32>
    %cst_15 = arith.constant dense<0.000000e+00> : vector<128xf32>
    %28 = vector.multi_reduction <add>, %27, %cst_15 [0] : vector<504x128xf32> to vector<128xf32>
    %29 = vector.shape_cast %28 : vector<128xf32> to vector<1x128xf32>
    %cst_16 = arith.constant 0.000000e+00 : f32
    %30 = vector.broadcast %cst_16 : f32 to vector<6x128xf32>
    %31 = tpu.concatenate %26, %29, %30 in 0 : vector<1x128xf32>, vector<1x128xf32>, vector<6x128xf32> -> vector<8x128xf32>
    %c0_17 = arith.constant 0 : index
    %c0_18 = arith.constant 0 : index
    %32 = vector.load %arg7[%c0_17, %c0_18] : memref<8x128xf32, #tpu.memory_space<vmem>>, vector<8x128xf32>
    tpu.vector_store %arg7[%c0_17, %c0_18], %31 {strides = array<i32>} : memref<8x128xf32, #tpu.memory_space<vmem>>, vector<8x128xf32>,
    return
  }
  func.func @transform_0(%arg0: i32) -> (i32, i32) {
    %c0_i32 = arith.constant 0 : i32
    %c0_i32_0 = arith.constant 0 : i32
    return %arg0, %c0_i32 : i32, i32
  }
  func.func @transform_1(%arg0: i32) -> (i32, i32) {
    %c0_i32 = arith.constant 0 : i32
    %c0_i32_0 = arith.constant 0 : i32
    %c0_i32_1 = arith.constant 0 : i32
    return %c0_i32, %c0_i32_0 : i32, i32
  }
  func.func @transform_2(%arg0: i32) -> (i32, i32) {
    %c0_i32 = arith.constant 0 : i32
    %c0_i32_0 = arith.constant 0 : i32
    %c0_i32_1 = arith.constant 0 : i32
    return %c0_i32, %c0_i32_0 : i32, i32
  }
  func.func @transform_3(%arg0: i32) -> (i32, i32) {
    %c0_i32 = arith.constant 0 : i32
    %c0_i32_0 = arith.constant 0 : i32
    %c0_i32_1 = arith.constant 0 : i32
    return %c0_i32, %c0_i32_0 : i32, i32
  }
  func.func @transform_4(%arg0: i32) -> (i32, i32) {
    %c0_i32 = arith.constant 0 : i32
    %c0_i32_0 = arith.constant 0 : i32
    %c0_i32_1 = arith.constant 0 : i32
    return %c0_i32, %c0_i32_0 : i32, i32
  }
  func.func @transform_5(%arg0: i32) -> (i32, i32) {
    %c0_i32 = arith.constant 0 : i32
    %c0_i32_0 = arith.constant 0 : i32
    return %arg0, %c0_i32 : i32, i32
  }
  func.func @transform_6(%arg0: i32) -> (i32, i32) {
    %c0_i32 = arith.constant 0 : i32
    %c0_i32_0 = arith.constant 0 : i32
    return %arg0, %c0_i32 : i32, i32
  }
}

module attributes {stable_mosaic.version = 11 : i64} {
  func.func @_pass3_kernel(%arg0: i32, %arg1: memref<504x128xbf16, #tpu.memory_space<vmem>>, %arg2: memref<1x128xf32, #tpu.memory_space<vmem>>, %arg3: memref<1x128xf32, #tpu.memory_space<vmem>>, %arg4: memref<504x128xf32, #tpu.memory_space<vmem>>) attributes {dimension_semantics = [#tpu.dimension_semantics<parallel>], iteration_bounds = array<i64: 2>, scalar_prefetch = 0 : i64, scratch_operands = 0 : i64, tpu.core_type = #tpu.core_type<tc>, window_params = [{transform_indices = @transform_0, window_bounds = array<i64: 504, 128>}, {pipeline_mode = #tpu.pipeline_mode<synchronous>, transform_indices = @transform_1, window_bounds = array<i64: 1, 128>}, {pipeline_mode = #tpu.pipeline_mode<synchronous>, transform_indices = @transform_2, window_bounds = array<i64: 1, 128>}, {transform_indices = @transform_3, window_bounds = array<i64: 504, 128>}]} {
    %c0 = arith.constant 0 : index
    %c0_0 = arith.constant 0 : index
    %0 = vector.load %arg1[%c0, %c0_0] : memref<504x128xbf16, #tpu.memory_space<vmem>>, vector<504x128xbf16>
    %1 = arith.extf %0 : vector<504x128xbf16> to vector<504x128xf32>
    %c0_1 = arith.constant 0 : index
    %c0_2 = arith.constant 0 : index
    %2 = vector.load %arg2[%c0_1, %c0_2] : memref<1x128xf32, #tpu.memory_space<vmem>>, vector<1x128xf32>
    %3 = vector.broadcast %2 : vector<1x128xf32> to vector<504x128xf32>
    %4 = arith.mulf %1, %3 : vector<504x128xf32>
    %c0_3 = arith.constant 0 : index
    %c0_4 = arith.constant 0 : index
    %5 = vector.load %arg3[%c0_3, %c0_4] : memref<1x128xf32, #tpu.memory_space<vmem>>, vector<1x128xf32>
    %6 = vector.broadcast %5 : vector<1x128xf32> to vector<504x128xf32>
    %7 = arith.addf %4, %6 : vector<504x128xf32>
    %cst = arith.constant 0.000000e+00 : f32
    %8 = vector.broadcast %cst : f32 to vector<504x128xf32>
    %9 = arith.maximumf %7, %8 : vector<504x128xf32>
    %c0_5 = arith.constant 0 : index
    %c0_6 = arith.constant 0 : index
    %10 = vector.load %arg4[%c0_5, %c0_6] : memref<504x128xf32, #tpu.memory_space<vmem>>, vector<504x128xf32>
    tpu.vector_store %arg4[%c0_5, %c0_6], %9 {strides = array<i32>} : memref<504x128xf32, #tpu.memory_space<vmem>>, vector<504x128xf32>,
    return
  }
  func.func @transform_0(%arg0: i32) -> (i32, i32) {
    %c0_i32 = arith.constant 0 : i32
    %c0_i32_0 = arith.constant 0 : i32
    return %arg0, %c0_i32 : i32, i32
  }
  func.func @transform_1(%arg0: i32) -> (i32, i32) {
    %c0_i32 = arith.constant 0 : i32
    %c0_i32_0 = arith.constant 0 : i32
    %c0_i32_1 = arith.constant 0 : i32
    return %c0_i32, %c0_i32_0 : i32, i32
  }
  func.func @transform_2(%arg0: i32) -> (i32, i32) {
    %c0_i32 = arith.constant 0 : i32
    %c0_i32_0 = arith.constant 0 : i32
    %c0_i32_1 = arith.constant 0 : i32
    return %c0_i32, %c0_i32_0 : i32, i32
  }
  func.func @transform_3(%arg0: i32) -> (i32, i32) {
    %c0_i32 = arith.constant 0 : i32
    %c0_i32_0 = arith.constant 0 : i32
    return %arg0, %c0_i32 : i32, i32
  }
}

</mosaic_0001>

<bundles_post_ra>
// kernel: apply_node_func.3
= control target key start
LH: loop header
LB: loop body
LE: loop exit
PB: predicated region body
PF: predicated region fallthrough
CT: control target
= control target key end

     0   :  { %s1270_s9 = smov 0   ;;  %s1519_s0 = inlined_call_operand.vmem [shape: bf16[1008,32], index: 0, kind: input, shape index: {}]   ;;  %s1520_s1 = inlined_call_operand.vmem [shape: bf16[32,128], index: 1, kind: input, shape index: {}]   ;;  %s1521_s2 = inlined_call_operand.vmem [shape: f32[16,128], index: 2, kind: output, shape index: {}]  }
   0x1 LB: > { %s1276_s10 = sadd.s32 4294967295, %s1253_s9   ;;  %p1028_p0 = scmp.ge.s32.totalorder %s1253_s9, 1  ;;  %s1253_s9 = sphi %s1270_s9, %s12_s9  }
   0x2   : > { %p113_p1 = scmp.lt.s32.totalorder %s1253_s9, 3 }
   0x4   : > { %p114_p2 = pnand %p1028_p0, %p113_p1 }
   0x5   : > { %v1213_v0 = vld [vmem:[%s1520_s1] sm:$0xff] (!%p114_p2)   ;;  %s134_s13 = smul.u32 (!%p114_p2), 63, %s1276_s10  ;;  %v1214_v1 = vld [vmem:[%s1520_s1 + $0x8] sm:$0xff] (!%p114_p2)   ;;  %vm382_vm0 = vcmask (!%p114_p2), 261120   ;;  %p140_p4 = scmp.lt.s32.totalorder (!%p114_p2), %s1276_s10, 1  ;;  %vm966_vm1 = vcmask (!%p114_p2), 1040384  }
   0x6   : > { %117 = sbr.rel (%p114_p2) target bundleno = 374 (0x176), region = 28  ;;  %1133 = vmatprep.subr.bf16.mxu0 (!%p114_p2), %v1213_v0  ;;  %1201 = vmatprep.subr.bf16.mxu1 (!%p114_p2), %v1213_v0  ;;  %vm968_vm2 = vcmask (!%p114_p2), 1041408  }
   0x7   : > { %p135_p3 = scmp.lt.s32.totalorder (!%p114_p2), %s134_s13, 125  ;;  %1134 = vmatpush3.bf16.msra.mxu0 (!%p114_p2), %v1213_v0  ;;  %1203 = vmatpush3.bf16.msra.mxu1 (!%p114_p2), %v1213_v0 }
   0x8   : > { %1135 = vmatprep.subr.bf16.mxu0 (!%p114_p2), %v1214_v1  ;;  %1202 = vmatprep.subr.bf16.mxu1 (!%p114_p2), %v1214_v1 }
   0xb   : > { %1136 = vmatpush3.bf16.msra.mxu0 (!%p114_p2), %v1214_v1  ;;  %1204 = vmatpush3.bf16.msra.mxu1 (!%p114_p2), %v1214_v1 }
   0xd   : > { %s1523_s13 = smov (!%p135_p3, %s134_s13), 125  ;;  %s1525_s10 = smov (!%p140_p4, %s1276_s10), 1 }
   0xe   : > { %s1029_s16 = sshll.u32 %s1523_s13, 2  ;;  %s1030_s20 = sshll.u32 %s1525_s10, 3 }
   0xf   : > { %s1290_s19 = scalar_lea.vmem %s1519_s0, %s1029_s16  ;;  %s143_s23 = scalar_lea.vmem %s1521_s2, %s1030_s20 }
  0x10   : > { %v1215_v2 = vld [vmem:[%s1290_s19] sm:$0xff]   ;;  %v1216_v3 = vld [vmem:[%s1290_s19 + $0x8] sm:$0xff]   ;;  %v1217_v4 = vld [vmem:[%s1290_s19 + $0x10] sm:$0xff]  }
  0x11   : > { %1137 = vmatprep.mubr.msk.bf16.mxu0 %vm382_vm0, %v1215_v2  ;;  %v1218_v5 = vld [vmem:[%s1290_s19 + $0x18] sm:$0xff]   ;;  %v1219_v6 = vld [vmem:[%s1290_s19 + $0x20] sm:$0xff]   ;;  %v1220_v7 = vld [vmem:[%s1290_s19 + $0x28] sm:$0xff]  }
  0x12   : > { %1138 = vmatmul.mubr.msk.bf16.vlgmr.msra.gmra.mrb[0].mxu0 %vm382_vm0, %v1216_v3  ;;  %v1221_v8 = vld [vmem:[%s1290_s19 + $0x30] sm:$0xff]   ;;  %v1231_v9 = vld [vmem:[%s1290_s19 + $0x80] sm:$0xff]   ;;  %v1232_v10 = vld [vmem:[%s1290_s19 + $0x88] sm:$0xff]  }
  0x13   : > { %1141 = vmatprep.mubr.msk.bf16.mxu0 %vm382_vm0, %v1217_v4  ;;  %1169 = vmatprep.mubr.msk.bf16.mxu1 %vm382_vm0, %v1231_v9  ;;  %v1233_v11 = vld [vmem:[%s1290_s19 + $0x90] sm:$0xff]   ;;  %v1222_v12 = vld [vmem:[%s1290_s19 + $0x38] sm:$0xff]   ;;  %v1223_v13 = vld [vmem:[%s1290_s19 + $0x40] sm:$0xff]  }
  0x14   : > { %1170 = vmatmul.mubr.msk.bf16.vlgmr.msra.gmra.mrb[0].mxu1 %vm382_vm0, %v1232_v10  ;;  %v1234_v14 = vld [vmem:[%s1290_s19 + $0x98] sm:$0xff]   ;;  %v1235_v15 = vld [vmem:[%s1290_s19 + $0xa0] sm:$0xff]   ;;  %v1224_v16 = vld [vmem:[%s1290_s19 + $0x48] sm:$0xff]  }
  0x15   : > { %1173 = vmatprep.mubr.msk.bf16.mxu1 %vm382_vm0, %v1233_v11  ;;  %v1236_v17 = vld [vmem:[%s1290_s19 + $0xa8] sm:$0xff]   ;;  %v1225_v18 = vld [vmem:[%s1290_s19 + $0x50] sm:$0xff]   ;;  %v1226_v20 = vld [vmem:[%s1290_s19 + $0x58] sm:$0xff]  }
  0x16   : > { %v1237_v19 = vld [vmem:[%s1290_s19 + $0xb0] sm:$0xff]   ;;  %v1238_v21 = vld [vmem:[%s1290_s19 + $0xb8] sm:$0xff]   ;;  %v1227_v22 = vld [vmem:[%s1290_s19 + $0x60] sm:$0xff]  }
  0x17   : > { %v1239_v23 = vld [vmem:[%s1290_s19 + $0xc0] sm:$0xff]   ;;  %v1228_v24 = vld [vmem:[%s1290_s19 + $0x68] sm:$0xff]   ;;  %v1229_v26 = vld [vmem:[%s1290_s19 + $0x70] sm:$0xff]  }
  0x18   : > { %v1240_v25 = vld [vmem:[%s1290_s19 + $0xc8] sm:$0xff]   ;;  %v1241_v27 = vld [vmem:[%s1290_s19 + $0xd0] sm:$0xff]   ;;  %v1230_v28 = vld [vmem:[%s1290_s19 + $0x78] sm:$0xff]  }
  0x19   : > { %v1242_v29 = vld [vmem:[%s1290_s19 + $0xd8] sm:$0xff]   ;;  %v1243_v30 = vld [vmem:[%s1290_s19 + $0xe0] sm:$0xff]   ;;  %v1244_v31 = vld [vmem:[%s1290_s19 + $0xe8] sm:$0xff]  }
  0x1a   : > { %1142 = vmatmul.mubr.msk.bf16.gmra.mrb[4].mxu0 %vm382_vm0, %v1218_v5  ;;  %v1245_v32 = vld [vmem:[%s1290_s19 + $0xf0] sm:$0xff]   ;;  %v1246_v33 = vld [vmem:[%s1290_s19 + $0xf8] ss:$0 sps:$4 sm:$0xff]  }
  0x1b   : > { %1145 = vmatprep.mubr.msk.bf16.mxu0 %vm382_vm0, %v1219_v6 }
  0x1c   : > { %1174 = vmatmul.mubr.msk.bf16.gmra.mrb[4].mxu1 %vm382_vm0, %v1234_v14 }
  0x1d   : > { %1177 = vmatprep.mubr.msk.bf16.mxu1 %vm382_vm0, %v1235_v15 }
  0x22   : > { %1146 = vmatmul.mubr.msk.bf16.gmra.mrb[8].mxu0 %vm382_vm0, %v1220_v7 }
  0x23   : > { %1149 = vmatprep.mubr.msk.bf16.mxu0 %vm382_vm0, %v1221_v8 }
  0x24   : > { %1178 = vmatmul.mubr.msk.bf16.gmra.mrb[8].mxu1 %vm382_vm0, %v1236_v17 }
  0x25   : > { %1181 = vmatprep.mubr.msk.bf16.mxu1 %vm382_vm0, %v1237_v19 }
  0x2a   : > { %1150 = vmatmul.mubr.msk.bf16.gmra.mrb[12].mxu0 %vm382_vm0, %v1222_v12 }
  0x2b   : > { %1153 = vmatprep.mubr.msk.bf16.mxu0 %vm382_vm0, %v1223_v13 }
  0x2c   : > { %1182 = vmatmul.mubr.msk.bf16.gmra.mrb[12].mxu1 %vm382_vm0, %v1238_v21 }
  0x2d   : > { %1185 = vmatprep.mubr.msk.bf16.mxu1 %vm382_vm0, %v1239_v23 }
  0x32   : > { %1154 = vmatmul.mubr.msk.bf16.gmra.mrb[16].mxu0 %vm382_vm0, %v1224_v16 }
  0x33   : > { %1157 = vmatprep.mubr.msk.bf16.mxu0 %vm382_vm0, %v1225_v18 }
  0x34   : > { %1186 = vmatmul.mubr.msk.bf16.gmra.mrb[16].mxu1 %vm382_vm0, %v1240_v25 }
  0x35   : > { %1189 = vmatprep.mubr.msk.bf16.mxu1 %vm382_vm0, %v1241_v27 }
  0x3a   : > { %1158 = vmatmul.mubr.msk.bf16.gmra.mrb[20].mxu0 %vm382_vm0, %v1226_v20 }
  0x3b   : > { %1161 = vmatprep.mubr.msk.bf16.mxu0 %vm382_vm0, %v1227_v22 }
  0x3c   : > { %1190 = vmatmul.mubr.msk.bf16.gmra.mrb[20].mxu1 %vm382_vm0, %v1242_v29 }
  0x3d   : > { %1193 = vmatprep.mubr.msk.bf16.mxu1 %vm382_vm0, %v1243_v30 }
  0x42   : > { %1162 = vmatmul.mubr.msk.bf16.gmra.mrb[24].mxu0 %vm382_vm0, %v1228_v24 }
  0x43   : > { %1165 = vmatprep.mubr.msk.bf16.mxu0 %vm382_vm0, %v1229_v26 }
  0x44   : > { %1194 = vmatmul.mubr.msk.bf16.gmra.mrb[24].mxu1 %vm382_vm0, %v1244_v31 }
  0x45   : > { %1197 = vmatprep.mubr.msk.bf16.mxu1 %vm382_vm0, %v1245_v32 }
  0x4a   : > { %1166 = vmatmul.mubr.msk.bf16.gmra.mrb[28].mxu0 %vm382_vm0, %v1230_v28 }
  0x4c   : > { %1198 = vmatmul.mubr.msk.bf16.gmra.mrb[28].mxu1 %vm382_vm0, %v1246_v33 }
  0xe5   : > { %v1139_v34 = vpop.f32.mrb[0].mxu0 }
  0xe6   : > { %v513_v35 = vpop.f32.mrb[1].mxu0  ;;  %v837_v41 = vmul.f32 %v1139_v34, %v1139_v34 }
  0xe7   : > { %v1140_v36 = vpop.f32.mrb[2].mxu0  ;;  %v835_v38 = vmul.f32 %v513_v35, %v513_v35  ;;  %v1356_v0 = vpop.f32.mrb[0].mxu1 }
  0xe8   : > { %v516_v37 = vpop.f32.mrb[3].mxu0  ;;  %v838_v44 = vmul.f32 %v1140_v36, %v1140_v36  ;;  %v1358_v2 = vpop.f32.mrb[1].mxu1 }
  0xe9   : > { %v767_v39 = vadd.f32 %v516_v37, %v513_v35  ;;  %v836_v40 = vmul.f32 %v516_v37, %v516_v37  ;;  %v1360_v7 = vpop.f32.mrb[2].mxu1 }
  0xea   : > { %v1362_v9 = vpop.f32.mrb[3].mxu1 }
  0xeb   : > { %v768_v42 = vadd.f32 %v1139_v34, %v767_v39  ;;  %v898_v43 = vadd.f32 %v836_v40, %v835_v38 }
  0xed   : > { %v899_v45 = vadd.f32 %v898_v43, %v837_v41  ;;  %v1143_v46 = vpop.f32.mrb[4].mxu0  ;;  %v769_v47 = vadd.f32 %v1140_v36, %v768_v42 }
  0xee   : > { %v529_v48 = vpop.f32.mrb[5].mxu0  ;;  %v841_v57 = vmul.f32 %v1143_v46, %v1143_v46 }
  0xef   : > { %v770_v49 = vadd.f32 %v769_v47, %v529_v48  ;;  %v839_v50 = vmul.f32 %v529_v48, %v529_v48  ;;  %v900_v51 = vadd.f32 %v899_v45, %v838_v44  ;;  %v1144_v52 = vpop.f32.mrb[6].mxu0  ;;  %v1364_v20 = vpop.f32.mrb[4].mxu1 }
  0xf0   : > { %v532_v53 = vpop.f32.mrb[7].mxu0  ;;  %v842_v60 = vmul.f32 %v1144_v52, %v1144_v52  ;;  %v1366_v22 = vpop.f32.mrb[5].mxu1 }
  0xf1   : > { %v901_v54 = vadd.f32 %v900_v51, %v839_v50  ;;  %v771_v55 = vadd.f32 %v770_v49, %v532_v53  ;;  %v840_v56 = vmul.f32 %v532_v53, %v532_v53  ;;  %v1368_v27 = vpop.f32.mrb[6].mxu1 }
  0xf2   : > { %v1370_v29 = vpop.f32.mrb[7].mxu1 }
  0xf3   : > { %v772_v58 = vadd.f32 %v1143_v46, %v771_v55  ;;  %v902_v59 = vadd.f32 %v901_v54, %v840_v56 }
  0xf5   : > { %v903_v61 = vadd.f32 %v902_v59, %v841_v57  ;;  %v1147_v62 = vpop.f32.mrb[8].mxu0  ;;  %v773_v63 = vadd.f32 %v1144_v52, %v772_v58 }
  0xf6   : > { %v545_v1 = vpop.f32.mrb[9].mxu0  ;;  %v845_v13 = vmul.f32 %v1147_v62, %v1147_v62 }
  0xf7   : > { %v774_v3 = vadd.f32 %v773_v63, %v545_v1  ;;  %v843_v4 = vmul.f32 %v545_v1, %v545_v1  ;;  %v904_v5 = vadd.f32 %v903_v61, %v842_v60  ;;  %v1148_v6 = vpop.f32.mrb[10].mxu0  ;;  %v1372_v40 = vpop.f32.mrb[8].mxu1 }
  0xf8   : > { %v548_v8 = vpop.f32.mrb[11].mxu0  ;;  %v846_v16 = vmul.f32 %v1148_v6, %v1148_v6  ;;  %v1374_v42 = vpop.f32.mrb[9].mxu1 }
  0xf9   : > { %v905_v10 = vadd.f32 %v904_v5, %v843_v4  ;;  %v775_v11 = vadd.f32 %v774_v3, %v548_v8  ;;  %v844_v12 = vmul.f32 %v548_v8, %v548_v8  ;;  %v1376_v47 = vpop.f32.mrb[10].mxu1 }
  0xfa   : > { %v1378_v49 = vpop.f32.mrb[11].mxu1 }
  0xfb   : > { %v776_v14 = vadd.f32 %v1147_v62, %v775_v11  ;;  %v906_v15 = vadd.f32 %v905_v10, %v844_v12 }
  0xfd   : > { %v907_v17 = vadd.f32 %v906_v15, %v845_v13  ;;  %v1151_v18 = vpop.f32.mrb[12].mxu0  ;;  %v777_v19 = vadd.f32 %v1148_v6, %v776_v14 }
  0xfe   : > { %v561_v21 = vpop.f32.mrb[13].mxu0  ;;  %v849_v33 = vmul.f32 %v1151_v18, %v1151_v18 }
  0xff   : > { %v778_v23 = vadd.f32 %v777_v19, %v561_v21  ;;  %v847_v24 = vmul.f32 %v561_v21, %v561_v21  ;;  %v908_v25 = vadd.f32 %v907_v17, %v846_v16  ;;  %v1152_v26 = vpop.f32.mrb[14].mxu0  ;;  %v1380_v60 = vpop.f32.mrb[12].mxu1 }
 0x100   : > { %v564_v28 = vpop.f32.mrb[15].mxu0  ;;  %v850_v36 = vmul.f32 %v1152_v26, %v1152_v26  ;;  %v1382_v62 = vpop.f32.mrb[13].mxu1 }
 0x101   : > { %v909_v30 = vadd.f32 %v908_v25, %v847_v24  ;;  %v779_v31 = vadd.f32 %v778_v23, %v564_v28  ;;  %v848_v32 = vmul.f32 %v564_v28, %v564_v28  ;;  %v1384_v5 = vpop.f32.mrb[14].mxu1 }
 0x102   : > { %v1386_v8 = vpop.f32.mrb[15].mxu1 }
 0x103   : > { %v780_v34 = vadd.f32 %v1151_v18, %v779_v31  ;;  %v910_v35 = vadd.f32 %v909_v30, %v848_v32 }
 0x105   : > { %v911_v37 = vadd.f32 %v910_v35, %v849_v33  ;;  %v1155_v38 = vpop.f32.mrb[16].mxu0  ;;  %v781_v39 = vadd.f32 %v1152_v26, %v780_v34 }
 0x106   : > { %v577_v41 = vpop.f32.mrb[17].mxu0  ;;  %v853_v53 = vmul.f32 %v1155_v38, %v1155_v38 }
 0x107   : > { %v782_v43 = vadd.f32 %v781_v39, %v577_v41  ;;  %v851_v44 = vmul.f32 %v577_v41, %v577_v41  ;;  %v912_v45 = vadd.f32 %v911_v37, %v850_v36  ;;  %v1156_v46 = vpop.f32.mrb[18].mxu0  ;;  %v1388_v21 = vpop.f32.mrb[16].mxu1 }
 0x108   : > { %v580_v48 = vpop.f32.mrb[19].mxu0  ;;  %v854_v56 = vmul.f32 %v1156_v46, %v1156_v46  ;;  %v1390_v24 = vpop.f32.mrb[17].mxu1 }
 0x109   : > { %v913_v50 = vadd.f32 %v912_v45, %v851_v44  ;;  %v783_v51 = vadd.f32 %v782_v43, %v580_v48  ;;  %v852_v52 = vmul.f32 %v580_v48, %v580_v48  ;;  %v1392_v31 = vpop.f32.mrb[18].mxu1 }
 0x10a   : > { %v1394_v33 = vpop.f32.mrb[19].mxu1 }
 0x10b   : > { %v784_v54 = vadd.f32 %v1155_v38, %v783_v51  ;;  %v914_v55 = vadd.f32 %v913_v50, %v852_v52 }
 0x10d   : > { %v915_v57 = vadd.f32 %v914_v55, %v853_v53  ;;  %v1159_v58 = vpop.f32.mrb[20].mxu0  ;;  %v785_v59 = vadd.f32 %v1156_v46, %v784_v54 }
 0x10e   : > { %v593_v61 = vpop.f32.mrb[21].mxu0  ;;  %v857_v13 = vmul.f32 %v1159_v58, %v1159_v58 }
 0x10f   : > { %v786_v63 = vadd.f32 %v785_v59, %v593_v61  ;;  %v855_v1 = vmul.f32 %v593_v61, %v593_v61  ;;  %v916_v3 = vadd.f32 %v915_v57, %v854_v56  ;;  %v1160_v4 = vpop.f32.mrb[22].mxu0  ;;  %v1396_v46 = vpop.f32.mrb[20].mxu1 }
 0x110   : > { %v596_v6 = vpop.f32.mrb[23].mxu0  ;;  %v858_v16 = vmul.f32 %v1160_v4, %v1160_v4  ;;  %v1398_v50 = vpop.f32.mrb[21].mxu1 }
 0x111   : > { %v917_v10 = vadd.f32 %v916_v3, %v855_v1  ;;  %v787_v11 = vadd.f32 %v786_v63, %v596_v6  ;;  %v856_v12 = vmul.f32 %v596_v6, %v596_v6  ;;  %v1400_v55 = vpop.f32.mrb[22].mxu1 }
 0x112   : > { %v1402_v57 = vpop.f32.mrb[23].mxu1 }
 0x113   : > { %v788_v14 = vadd.f32 %v1159_v58, %v787_v11  ;;  %v918_v15 = vadd.f32 %v917_v10, %v856_v12  ;;  %v867_v11 = vmul.f32 %v1358_v2, %v1358_v2 }
 0x115   : > { %v919_v17 = vadd.f32 %v918_v15, %v857_v13  ;;  %v1163_v18 = vpop.f32.mrb[24].mxu0  ;;  %v789_v19 = vadd.f32 %v1160_v4, %v788_v14 }
 0x116   : > { %v609_v23 = vpop.f32.mrb[25].mxu0  ;;  %v861_v37 = vmul.f32 %v1163_v18, %v1163_v18 }
 0x117   : > { %v790_v25 = vadd.f32 %v789_v19, %v609_v23  ;;  %v859_v26 = vmul.f32 %v609_v23, %v609_v23  ;;  %v920_v28 = vadd.f32 %v919_v17, %v858_v16  ;;  %v1164_v30 = vpop.f32.mrb[26].mxu0  ;;  %v1406_v12 = vpop.f32.mrb[24].mxu1  ;;  %v868_v23 = vmul.f32 %v1362_v9, %v1362_v9 }
 0x118   : > { %v612_v32 = vpop.f32.mrb[27].mxu0  ;;  %v862_v41 = vmul.f32 %v1164_v30, %v1164_v30  ;;  %v1408_v13 = vpop.f32.mrb[25].mxu1 }
 0x119   : > { %v921_v34 = vadd.f32 %v920_v28, %v859_v26  ;;  %v791_v35 = vadd.f32 %v790_v25, %v612_v32  ;;  %v860_v36 = vmul.f32 %v612_v32, %v612_v32  ;;  %v1411_v16 = vpop.f32.mrb[26].mxu1  ;;  %v869_v25 = vmul.f32 %v1356_v0, %v1356_v0 }
 0x11a   : > { %v1413_v17 = vpop.f32.mrb[27].mxu1 }
 0x11b   : > { %v792_v38 = vadd.f32 %v1163_v18, %v791_v35  ;;  %v922_v39 = vadd.f32 %v921_v34, %v860_v36  ;;  %v871_v34 = vmul.f32 %v1366_v22, %v1366_v22 }
 0x11d   : > { %v923_v43 = vadd.f32 %v922_v39, %v861_v37  ;;  %v1167_v44 = vpop.f32.mrb[28].mxu0  ;;  %v793_v45 = vadd.f32 %v1164_v30, %v792_v38 }
 0x11e   : > { %v625_v48 = vpop.f32.mrb[29].mxu0  ;;  %v865_v63 = vmul.f32 %v1167_v44, %v1167_v44 }
 0x11f   : > { %v794_v51 = vadd.f32 %v793_v45, %v625_v48  ;;  %v863_v52 = vmul.f32 %v625_v48, %v625_v48  ;;  %v924_v53 = vadd.f32 %v923_v43, %v862_v41  ;;  %v1168_v54 = vpop.f32.mrb[30].mxu0  ;;  %v1426_v35 = vpop.f32.mrb[28].mxu1  ;;  %v872_v43 = vmul.f32 %v1370_v29, %v1370_v29 }
 0x120   : > { %v628_v56 = vpop.f32.mrb[31].mxu0  ;;  %v866_v4 = vmul.f32 %v1168_v54, %v1168_v54  ;;  %v1428_v36 = vpop.f32.mrb[29].mxu1  ;;  %v874_v48 = vmul.f32 %v1368_v27, %v1368_v27 }
 0x121   : > { %v925_v58 = vadd.f32 %v924_v53, %v863_v52  ;;  %v795_v59 = vadd.f32 %v794_v51, %v628_v56  ;;  %v864_v61 = vmul.f32 %v628_v56, %v628_v56  ;;  %v1200_v38 = vpop.f32.mrb[30].mxu1  ;;  %v875_v52 = vmul.f32 %v1374_v42, %v1374_v42 }
 0x122   : > { %v1431_v39 = vpop.f32.mrb[31].mxu1  ;;  %v888_v38 = vmul.f32 %v1402_v57, %v1402_v57 }
 0x123   : > { %v796_v1 = vadd.f32 %v1167_v44, %v795_v59  ;;  %v926_v3 = vadd.f32 %v925_v58, %v864_v61  ;;  %v876_v58 = vmul.f32 %v1378_v49, %v1378_v49 }
 0x125   : > { %v927_v6 = vadd.f32 %v926_v3, %v865_v63  ;;  %v797_v10 = vadd.f32 %v1168_v54, %v796_v1 }
 0x127   : > { %v798_v14 = vadd.f32 %v797_v10, %v1358_v2  ;;  %v928_v15 = vadd.f32 %v927_v6, %v866_v4  ;;  %v870_v2 = vmul.f32 %v1360_v7, %v1360_v7  ;;  %v880_v10 = vmul.f32 %v1386_v8, %v1386_v8 }
 0x129   : > { %v929_v18 = vadd.f32 %v928_v15, %v867_v11  ;;  %v799_v19 = vadd.f32 %v798_v14, %v1362_v9 }
 0x12b   : > { %v800_v26 = vadd.f32 %v1356_v0, %v799_v19  ;;  %v930_v28 = vadd.f32 %v929_v18, %v868_v23 }
 0x12d   : > { %v931_v30 = vadd.f32 %v930_v28, %v869_v25  ;;  %v801_v32 = vadd.f32 %v1360_v7, %v800_v26  ;;  %v873_v7 = vmul.f32 %v1364_v20, %v1364_v20  ;;  %v884_v26 = vmul.f32 %v1394_v33, %v1394_v33 }
 0x12f   : > { %v802_v9 = vadd.f32 %v801_v32, %v1366_v22  ;;  %v932_v37 = vadd.f32 %v931_v30, %v870_v2 }
 0x131   : > { %v933_v0 = vadd.f32 %v932_v37, %v871_v34  ;;  %v803_v41 = vadd.f32 %v802_v9, %v1370_v29 }
 0x133   : > { %v804_v44 = vadd.f32 %v1364_v20, %v803_v41  ;;  %v934_v45 = vadd.f32 %v933_v0, %v872_v43  ;;  %v877_v20 = vmul.f32 %v1372_v40, %v1372_v40 }
 0x135   : > { %v935_v22 = vadd.f32 %v934_v45, %v873_v7  ;;  %v805_v51 = vadd.f32 %v1368_v27, %v804_v44  ;;  %v878_v27 = vmul.f32 %v1376_v47, %v1376_v47 }
 0x137   : > { %v806_v53 = vadd.f32 %v805_v51, %v1374_v42  ;;  %v936_v54 = vadd.f32 %v935_v22, %v874_v48  ;;  %v879_v42 = vmul.f32 %v1382_v62, %v1382_v62  ;;  %v892_v22 = vmul.f32 %v1413_v17, %v1413_v17 }
 0x139   : > { %v937_v56 = vadd.f32 %v936_v54, %v875_v52  ;;  %v807_v29 = vadd.f32 %v806_v53, %v1378_v49  ;;  %v895_v54 = vmul.f32 %v1428_v36, %v1428_v36 }
 0x13b   : > { %v808_v59 = vadd.f32 %v1372_v40, %v807_v29  ;;  %v938_v61 = vadd.f32 %v937_v56, %v876_v58  ;;  %v881_v40 = vmul.f32 %v1380_v60, %v1380_v60 }
 0x13d   : > { %v939_v63 = vadd.f32 %v938_v61, %v877_v20  ;;  %v809_v1 = vadd.f32 %v1376_v47, %v808_v59  ;;  %v882_v47 = vmul.f32 %v1384_v5, %v1384_v5  ;;  %v897_v20 = vmul.f32 %v1426_v35, %v1426_v35 }
 0x13f   : > { %v810_v3 = vadd.f32 %v809_v1, %v1382_v62  ;;  %v940_v4 = vadd.f32 %v939_v63, %v878_v27  ;;  %v883_v62 = vmul.f32 %v1390_v24, %v1390_v24 }
 0x141   : > { %v941_v6 = vadd.f32 %v940_v4, %v879_v42  ;;  %v811_v49 = vadd.f32 %v810_v3, %v1386_v8 }
 0x143   : > { %v812_v11 = vadd.f32 %v1380_v60, %v811_v49  ;;  %v942_v14 = vadd.f32 %v941_v6, %v880_v10  ;;  %v885_v60 = vmul.f32 %v1388_v21, %v1388_v21 }
 0x145   : > { %v943_v15 = vadd.f32 %v942_v14, %v881_v40  ;;  %v813_v18 = vadd.f32 %v1384_v5, %v812_v11  ;;  %v886_v5 = vmul.f32 %v1392_v31, %v1392_v31 }
 0x147   : > { %v814_v19 = vadd.f32 %v813_v18, %v1390_v24  ;;  %v944_v23 = vadd.f32 %v943_v15, %v882_v47  ;;  %v887_v24 = vmul.f32 %v1398_v50, %v1398_v50 }
 0x149   : > { %v945_v25 = vadd.f32 %v944_v23, %v883_v62  ;;  %v815_v8 = vadd.f32 %v814_v19, %v1394_v33 }
 0x14b   : > { %v816_v28 = vadd.f32 %v1388_v21, %v815_v8  ;;  %v946_v2 = vadd.f32 %v945_v25, %v884_v26  ;;  %v889_v21 = vmul.f32 %v1396_v46, %v1396_v46 }
 0x14d   : > { %v947_v30 = vadd.f32 %v946_v2, %v885_v60  ;;  %v817_v32 = vadd.f32 %v1392_v31, %v816_v28  ;;  %v890_v31 = vmul.f32 %v1400_v55, %v1400_v55 }
 0x14f   : > { %v818_v34 = vadd.f32 %v817_v32, %v1398_v50  ;;  %v948_v9 = vadd.f32 %v947_v30, %v886_v5  ;;  %v891_v50 = vmul.f32 %v1408_v13, %v1408_v13 }
 0x151   : > { %v949_v37 = vadd.f32 %v948_v9, %v887_v24  ;;  %v819_v33 = vadd.f32 %v818_v34, %v1402_v57 }
 0x153   : > { %v820_v0 = vadd.f32 %v1396_v46, %v819_v33  ;;  %v950_v41 = vadd.f32 %v949_v37, %v888_v38  ;;  %v893_v46 = vmul.f32 %v1406_v12, %v1406_v12 }
 0x155   : > { %v951_v43 = vadd.f32 %v950_v41, %v889_v21  ;;  %v821_v7 = vadd.f32 %v1400_v55, %v820_v0  ;;  %v894_v55 = vmul.f32 %v1411_v16, %v1411_v16 }
 0x157   : > { %v822_v44 = vadd.f32 %v821_v7, %v1408_v13  ;;  %v952_v45 = vadd.f32 %v951_v43, %v890_v31 }
 0x159   : > { %v953_v48 = vadd.f32 %v952_v45, %v891_v50  ;;  %v823_v57 = vadd.f32 %v822_v44, %v1413_v17 }
 0x15b   : > { %v824_v51 = vadd.f32 %v1406_v12, %v823_v57  ;;  %v954_v52 = vadd.f32 %v953_v48, %v892_v22  ;;  %v896_v12 = vmul.f32 %v1431_v39, %v1431_v39 }
 0x15d   : > { %v955_v53 = vadd.f32 %v954_v52, %v893_v46  ;;  %v825_v13 = vadd.f32 %v1411_v16, %v824_v51 }
 0x15f   : > { %v826_v56 = vadd.f32 %v825_v13, %v1428_v36  ;;  %v956_v17 = vadd.f32 %v955_v53, %v894_v55 }
 0x161   : > { %v957_v29 = vadd.f32 %v956_v17, %v895_v54  ;;  %v827_v58 = vadd.f32 %v826_v56, %v1431_v39 }
 0x163   : > { %v828_v59 = vadd.f32 %v1426_v35, %v827_v58  ;;  %v958_v61 = vadd.f32 %v957_v29, %v896_v12 }
 0x165   : > { %v829_v16 = vrot.slane %v828_v59, 4  ;;  %v959_v27 = vadd.f32 %v958_v61, %v897_v20 }
 0x167   : > { %v830_v63 = vadd.f32 %v829_v16, %v828_v59  ;;  %v960_v1 = vrot.slane %v959_v27, 4 }
 0x169   : > { %v831_v42 = vrot.slane %v830_v63, 2  ;;  %v961_v36 = vadd.f32 %v960_v1, %v959_v27 }
 0x16b   : > { %v832_v3 = vadd.f32 %v831_v42, %v830_v63  ;;  %v962_v4 = vrot.slane %v961_v36, 2 }
 0x16d   : > { %v833_v6 = vrot.slane %v832_v3, 1  ;;  %v963_v49 = vadd.f32 %v962_v4, %v961_v36 }
 0x16f   : > { %v964_v39 = vrot.slane %v963_v49, 1  ;;  %v834_v10 = vadd.f32 %v833_v6, %v832_v3 }
 0x171   : > { %v965_v40 = vadd.f32 %v964_v39, %v963_v49 }
 0x173   : > { %v967_v35 = vsel %vm966_vm1, %v834_v10, %v965_v40 }
 0x174   : > { %v969_v11 = vsel %vm968_vm2, %v967_v35, 0.0 }
 0x175   : > { %970 = vst [vmem:[%s143_s23] sm:$0xff] %v969_v11 }
 0x176 PF: > { %s12_s9 = sadd.s32 1, %s1253_s9  }
 0x177   : > { %p9_p5 = scmp.ge.s32.totalorder %s12_s9, 4  }
 0x179   :  { %11 = sbr.rel (!%p9_p5) target bundleno = 1 (0x1), region = 58 }

// kernel: apply_node_func.5
= control target key start
LH: loop header
LB: loop body
LE: loop exit
PB: predicated region body
PF: predicated region fallthrough
CT: control target
= control target key end

     0   :  { %s823_s12 = smov 0   ;;  %s1079_s0 = inlined_call_operand.vmem [shape: bf16[1008,128], index: 0, kind: input, shape index: {}]   ;;  %s1080_s1 = inlined_call_operand.vmem [shape: f32[1,128], index: 1, kind: input, shape index: {}]   ;;  %s1081_s2 = inlined_call_operand.vmem [shape: f32[1,128], index: 2, kind: input, shape index: {}]   ;;  %s1082_s3 = inlined_call_operand.vmem [shape: f32[1008,128], index: 3, kind: output, shape index: {}]  }
   0x1 LB: > { %s622_s13 = sadd.s32 4294967295, %s801_s12   ;;  %p626_p0 = scmp.ge.s32.totalorder %s801_s12, 1  ;;  %s801_s12 = sphi %s823_s12, %s13_s12  }
   0x2   : > { %p138_p1 = scmp.lt.s32.totalorder %s801_s12, 3 }
   0x4   : > { %p139_p2 = pnand %p626_p0, %p138_p1 }
   0x5   : > { %s162_s14 = smul.u32 (!%p139_p2), 63, %s622_s13  ;;  %v842_v0 = vld [vmem:[%s1080_s1] ss:$0 sm:$0xff] (!%p139_p2) }
   0x6   : > { %142 = sbr.rel (%p139_p2) target bundleno = 85 (0x55), region = 32  ;;  %v851_v9 = vld [vmem:[%s1081_s2] ss:$0 sm:$0xff] (!%p139_p2) }
   0x7   : > { %p163_p3 = scmp.lt.s32.totalorder (!%p139_p2), %s162_s14, 125 }
   0xd   : > { %s1084_s14 = smov (!%p163_p3, %s162_s14), 125 }
   0xe   : > { %s627_s15 = sshll.u32 %s1084_s14, 2  ;;  %s628_s23 = sshll.u32 %s1084_s14, 3 }
   0xf   : > { %s837_s18 = scalar_lea.vmem %s1079_s0, %s627_s15  ;;  %s869_s26 = scalar_lea.vmem %s1082_s3, %s628_s23 }
  0x10   : > { %v634_v1 = vld [vmem:[%s837_s18] sm:$0xff]   ;;  %v757_v2 = vld [vmem:[%s837_s18 + $0x8] sm:$0xff]   ;;  %v758_v3 = vld [vmem:[%s837_s18 + $0x10] sm:$0xff]  }
  0x11   : > { %v635_v4 = vunpack.c.l.bf16 %v634_v1  ;;  %v636_v5 = vunpack.c.h.bf16 %v634_v1  ;;  %v639_v6 = vunpack.c.l.bf16 %v757_v2  ;;  %v640_v7 = vunpack.c.h.bf16 %v757_v2  ;;  %v759_v8 = vld [vmem:[%s837_s18 + $0x18] sm:$0xff]   ;;  %v760_v30 = vld [vmem:[%s837_s18 + $0x20] sm:$0xff]   ;;  %v761_v31 = vld [vmem:[%s837_s18 + $0x28] sm:$0xff]  }
  0x12   : > { %v643_v10 = vunpack.c.l.bf16 %v758_v3  ;;  %v644_v11 = vunpack.c.h.bf16 %v758_v3  ;;  %v647_v12 = vunpack.c.l.bf16 %v759_v8  ;;  %v648_v13 = vunpack.c.h.bf16 %v759_v8  ;;  %v762_v36 = vld [vmem:[%s837_s18 + $0x30] sm:$0xff]   ;;  %v763_v37 = vld [vmem:[%s837_s18 + $0x38] sm:$0xff]   ;;  %v764_v3 = vld [vmem:[%s837_s18 + $0x40] sm:$0xff]  }
  0x13   : > { %v307_v14 = vmul.f32 %v635_v4, %v842_v0  ;;  %v308_v15 = vmul.f32 %v636_v5, %v842_v0  ;;  %v309_v16 = vmul.f32 %v639_v6, %v842_v0  ;;  %v310_v17 = vmul.f32 %v640_v7, %v842_v0  ;;  %v765_v4 = vld [vmem:[%s837_s18 + $0x48] sm:$0xff]  }
  0x14   : > { %v311_v18 = vmul.f32 %v643_v10, %v842_v0  ;;  %v312_v19 = vmul.f32 %v644_v11, %v842_v0  ;;  %v313_v20 = vmul.f32 %v647_v12, %v842_v0  ;;  %v314_v21 = vmul.f32 %v648_v13, %v842_v0  ;;  %v766_v10 = vld [vmem:[%s837_s18 + $0x50] sm:$0xff]   ;;  %v767_v11 = vld [vmem:[%s837_s18 + $0x58] sm:$0xff]  }
  0x15   : > { %v377_v22 = vadd.f32 %v851_v9, %v307_v14  ;;  %v378_v23 = vadd.f32 %v851_v9, %v308_v15  ;;  %v379_v24 = vadd.f32 %v851_v9, %v309_v16  ;;  %v380_v25 = vadd.f32 %v851_v9, %v310_v17 }
  0x16   : > { %v381_v26 = vadd.f32 %v851_v9, %v311_v18  ;;  %v382_v27 = vadd.f32 %v851_v9, %v312_v19  ;;  %v383_v28 = vadd.f32 %v851_v9, %v313_v20  ;;  %v384_v29 = vadd.f32 %v851_v9, %v314_v21 }
  0x17   : > { %v440_v32 = vmax.f32 %v377_v22, 0.0  ;;  %v441_v33 = vmax.f32 %v378_v23, 0.0  ;;  %v442_v34 = vmax.f32 %v379_v24, 0.0  ;;  %v443_v35 = vmax.f32 %v380_v25, 0.0 }
  0x18   : > { %v444_v38 = vmax.f32 %v381_v26, 0.0  ;;  %v445_v39 = vmax.f32 %v382_v27, 0.0  ;;  %v446_v40 = vmax.f32 %v383_v28, 0.0  ;;  %v447_v41 = vmax.f32 %v384_v29, 0.0 }
  0x19   : > { %503 = vst [vmem:[%s869_s26] sm:$0xff] %v440_v32  ;;  %504 = vst [vmem:[%s869_s26 + $0x8] sm:$0xff] %v441_v33  ;;  %v651_v42 = vunpack.c.l.bf16 %v760_v30  ;;  %v652_v43 = vunpack.c.h.bf16 %v760_v30  ;;  %v655_v44 = vunpack.c.l.bf16 %v761_v31  ;;  %v656_v45 = vunpack.c.h.bf16 %v761_v31 }
  0x1a   : > { %505 = vst [vmem:[%s869_s26 + $0x10] sm:$0xff] %v442_v34  ;;  %506 = vst [vmem:[%s869_s26 + $0x18] sm:$0xff] %v443_v35  ;;  %v659_v46 = vunpack.c.l.bf16 %v762_v36  ;;  %v660_v47 = vunpack.c.h.bf16 %v762_v36  ;;  %v663_v48 = vunpack.c.l.bf16 %v763_v37  ;;  %v664_v49 = vunpack.c.h.bf16 %v763_v37 }
  0x1b   : > { %507 = vst [vmem:[%s869_s26 + $0x20] sm:$0xff] %v444_v38  ;;  %508 = vst [vmem:[%s869_s26 + $0x28] sm:$0xff] %v445_v39  ;;  %v315_v50 = vmul.f32 %v651_v42, %v842_v0  ;;  %v316_v51 = vmul.f32 %v652_v43, %v842_v0  ;;  %v317_v52 = vmul.f32 %v655_v44, %v842_v0  ;;  %v667_v16 = vunpack.c.l.bf16 %v764_v3 }
  0x1c   : > { %509 = vst [vmem:[%s869_s26 + $0x30] sm:$0xff] %v446_v40  ;;  %510 = vst [vmem:[%s869_s26 + $0x38] sm:$0xff] %v447_v41  ;;  %v318_v53 = vmul.f32 %v656_v45, %v842_v0  ;;  %v319_v54 = vmul.f32 %v659_v46, %v842_v0  ;;  %v320_v55 = vmul.f32 %v660_v47, %v842_v0  ;;  %v668_v17 = vunpack.c.h.bf16 %v764_v3  ;;  %v768_v40 = vld [vmem:[%s837_s18 + $0x60] sm:$0xff]   ;;  %v769_v41 = vld [vmem:[%s837_s18 + $0x68] sm:$0xff]  }
  0x1d   : > { %v321_v56 = vmul.f32 %v663_v48, %v842_v0  ;;  %v322_v57 = vmul.f32 %v664_v49, %v842_v0  ;;  %v385_v58 = vadd.f32 %v851_v9, %v315_v50  ;;  %v386_v59 = vadd.f32 %v851_v9, %v316_v51  ;;  %v770_v46 = vld [vmem:[%s837_s18 + $0x70] sm:$0xff]   ;;  %v771_v47 = vld [vmem:[%s837_s18 + $0x78] sm:$0xff]  }
  0x1e   : > { %v387_v60 = vadd.f32 %v851_v9, %v317_v52  ;;  %v388_v61 = vadd.f32 %v851_v9, %v318_v53  ;;  %v389_v62 = vadd.f32 %v851_v9, %v319_v54  ;;  %v390_v63 = vadd.f32 %v851_v9, %v320_v55 }
  0x1f   : > { %v391_v1 = vadd.f32 %v851_v9, %v321_v56  ;;  %v392_v2 = vadd.f32 %v851_v9, %v322_v57  ;;  %v448_v5 = vmax.f32 %v385_v58, 0.0  ;;  %v449_v6 = vmax.f32 %v386_v59, 0.0 }
  0x20   : > { %v450_v7 = vmax.f32 %v387_v60, 0.0  ;;  %v451_v8 = vmax.f32 %v388_v61, 0.0  ;;  %v452_v12 = vmax.f32 %v389_v62, 0.0  ;;  %v453_v13 = vmax.f32 %v390_v63, 0.0 }
  0x21   : > { %v454_v14 = vmax.f32 %v391_v1, 0.0  ;;  %v455_v15 = vmax.f32 %v392_v2, 0.0  ;;  %511 = vst [vmem:[%s869_s26 + $0x40] sm:$0xff] %v448_v5  ;;  %512 = vst [vmem:[%s869_s26 + $0x48] sm:$0xff] %v449_v6  ;;  %v671_v18 = vunpack.c.l.bf16 %v765_v4  ;;  %v672_v19 = vunpack.c.h.bf16 %v765_v4 }
  0x22   : > { %513 = vst [vmem:[%s869_s26 + $0x50] sm:$0xff] %v450_v7  ;;  %514 = vst [vmem:[%s869_s26 + $0x58] sm:$0xff] %v451_v8  ;;  %v675_v20 = vunpack.c.l.bf16 %v766_v10  ;;  %v676_v21 = vunpack.c.h.bf16 %v766_v10  ;;  %v679_v22 = vunpack.c.l.bf16 %v767_v11  ;;  %v680_v23 = vunpack.c.h.bf16 %v767_v11 }
  0x23   : > { %515 = vst [vmem:[%s869_s26 + $0x60] sm:$0xff] %v452_v12  ;;  %516 = vst [vmem:[%s869_s26 + $0x68] sm:$0xff] %v453_v13  ;;  %v323_v24 = vmul.f32 %v667_v16, %v842_v0  ;;  %v324_v25 = vmul.f32 %v668_v17, %v842_v0  ;;  %v325_v26 = vmul.f32 %v671_v18, %v842_v0  ;;  %v683_v52 = vunpack.c.l.bf16 %v768_v40 }
  0x24   : > { %517 = vst [vmem:[%s869_s26 + $0x70] sm:$0xff] %v454_v14  ;;  %518 = vst [vmem:[%s869_s26 + $0x78] sm:$0xff] %v455_v15  ;;  %v326_v27 = vmul.f32 %v672_v19, %v842_v0  ;;  %v327_v28 = vmul.f32 %v675_v20, %v842_v0  ;;  %v328_v29 = vmul.f32 %v676_v21, %v842_v0  ;;  %v684_v53 = vunpack.c.h.bf16 %v768_v40  ;;  %v772_v14 = vld [vmem:[%s837_s18 + $0x80] sm:$0xff]   ;;  %v773_v15 = vld [vmem:[%s837_s18 + $0x88] sm:$0xff]  }
  0x25   : > { %v329_v30 = vmul.f32 %v679_v22, %v842_v0  ;;  %v330_v31 = vmul.f32 %v680_v23, %v842_v0  ;;  %v393_v32 = vadd.f32 %v851_v9, %v323_v24  ;;  %v394_v33 = vadd.f32 %v851_v9, %v324_v25  ;;  %v774_v20 = vld [vmem:[%s837_s18 + $0x90] sm:$0xff]   ;;  %v775_v21 = vld [vmem:[%s837_s18 + $0x98] sm:$0xff]  }
  0x26   : > { %v395_v34 = vadd.f32 %v851_v9, %v325_v26  ;;  %v396_v35 = vadd.f32 %v851_v9, %v326_v27  ;;  %v397_v36 = vadd.f32 %v851_v9, %v327_v28  ;;  %v398_v37 = vadd.f32 %v851_v9, %v328_v29 }
  0x27   : > { %v399_v38 = vadd.f32 %v851_v9, %v329_v30  ;;  %v400_v39 = vadd.f32 %v851_v9, %v330_v31  ;;  %v456_v42 = vmax.f32 %v393_v32, 0.0  ;;  %v457_v43 = vmax.f32 %v394_v33, 0.0 }
  0x28   : > { %v458_v44 = vmax.f32 %v395_v34, 0.0  ;;  %v459_v45 = vmax.f32 %v396_v35, 0.0  ;;  %v460_v48 = vmax.f32 %v397_v36, 0.0  ;;  %v461_v49 = vmax.f32 %v398_v37, 0.0 }
  0x29   : > { %v462_v50 = vmax.f32 %v399_v38, 0.0  ;;  %v463_v51 = vmax.f32 %v400_v39, 0.0  ;;  %519 = vst [vmem:[%s869_s26 + $0x80] sm:$0xff] %v456_v42  ;;  %520 = vst [vmem:[%s869_s26 + $0x88] sm:$0xff] %v457_v43  ;;  %v687_v54 = vunpack.c.l.bf16 %v769_v41  ;;  %v688_v55 = vunpack.c.h.bf16 %v769_v41 }
  0x2a   : > { %521 = vst [vmem:[%s869_s26 + $0x90] sm:$0xff] %v458_v44  ;;  %522 = vst [vmem:[%s869_s26 + $0x98] sm:$0xff] %v459_v45  ;;  %v691_v56 = vunpack.c.l.bf16 %v770_v46  ;;  %v692_v57 = vunpack.c.h.bf16 %v770_v46  ;;  %v695_v58 = vunpack.c.l.bf16 %v771_v47  ;;  %v696_v59 = vunpack.c.h.bf16 %v771_v47 }
  0x2b   : > { %523 = vst [vmem:[%s869_s26 + $0xa0] sm:$0xff] %v460_v48  ;;  %524 = vst [vmem:[%s869_s26 + $0xa8] sm:$0xff] %v461_v49  ;;  %v331_v60 = vmul.f32 %v683_v52, %v842_v0  ;;  %v332_v61 = vmul.f32 %v684_v53, %v842_v0  ;;  %v333_v62 = vmul.f32 %v687_v54, %v842_v0  ;;  %v699_v26 = vunpack.c.l.bf16 %v772_v14 }
  0x2c   : > { %525 = vst [vmem:[%s869_s26 + $0xb0] sm:$0xff] %v462_v50  ;;  %526 = vst [vmem:[%s869_s26 + $0xb8] sm:$0xff] %v463_v51  ;;  %v334_v63 = vmul.f32 %v688_v55, %v842_v0  ;;  %v335_v1 = vmul.f32 %v691_v56, %v842_v0  ;;  %v336_v2 = vmul.f32 %v692_v57, %v842_v0  ;;  %v700_v27 = vunpack.c.h.bf16 %v772_v14  ;;  %v776_v50 = vld [vmem:[%s837_s18 + $0xa0] sm:$0xff]   ;;  %v777_v51 = vld [vmem:[%s837_s18 + $0xa8] sm:$0xff]  }
  0x2d   : > { %v337_v3 = vmul.f32 %v695_v58, %v842_v0  ;;  %v338_v4 = vmul.f32 %v696_v59, %v842_v0  ;;  %v401_v5 = vadd.f32 %v851_v9, %v331_v60  ;;  %v402_v6 = vadd.f32 %v851_v9, %v332_v61  ;;  %v778_v56 = vld [vmem:[%s837_s18 + $0xb0] sm:$0xff]   ;;  %v779_v57 = vld [vmem:[%s837_s18 + $0xb8] sm:$0xff]  }
  0x2e   : > { %v403_v7 = vadd.f32 %v851_v9, %v333_v62  ;;  %v404_v8 = vadd.f32 %v851_v9, %v334_v63  ;;  %v405_v10 = vadd.f32 %v851_v9, %v335_v1  ;;  %v406_v11 = vadd.f32 %v851_v9, %v336_v2 }
  0x2f   : > { %v407_v12 = vadd.f32 %v851_v9, %v337_v3  ;;  %v408_v13 = vadd.f32 %v851_v9, %v338_v4  ;;  %v464_v16 = vmax.f32 %v401_v5, 0.0  ;;  %v465_v17 = vmax.f32 %v402_v6, 0.0 }
  0x30   : > { %v466_v18 = vmax.f32 %v403_v7, 0.0  ;;  %v467_v19 = vmax.f32 %v404_v8, 0.0  ;;  %v468_v22 = vmax.f32 %v405_v10, 0.0  ;;  %v469_v23 = vmax.f32 %v406_v11, 0.0 }
  0x31   : > { %v470_v24 = vmax.f32 %v407_v12, 0.0  ;;  %v471_v25 = vmax.f32 %v408_v13, 0.0  ;;  %527 = vst [vmem:[%s869_s26 + $0xc0] sm:$0xff] %v464_v16  ;;  %528 = vst [vmem:[%s869_s26 + $0xc8] sm:$0xff] %v465_v17  ;;  %v703_v28 = vunpack.c.l.bf16 %v773_v15  ;;  %v704_v29 = vunpack.c.h.bf16 %v773_v15 }
  0x32   : > { %529 = vst [vmem:[%s869_s26 + $0xd0] sm:$0xff] %v466_v18  ;;  %530 = vst [vmem:[%s869_s26 + $0xd8] sm:$0xff] %v467_v19  ;;  %v707_v30 = vunpack.c.l.bf16 %v774_v20  ;;  %v708_v31 = vunpack.c.h.bf16 %v774_v20  ;;  %v711_v32 = vunpack.c.l.bf16 %v775_v21  ;;  %v712_v33 = vunpack.c.h.bf16 %v775_v21 }
  0x33   : > { %531 = vst [vmem:[%s869_s26 + $0xe0] sm:$0xff] %v468_v22  ;;  %532 = vst [vmem:[%s869_s26 + $0xe8] sm:$0xff] %v469_v23  ;;  %v339_v34 = vmul.f32 %v699_v26, %v842_v0  ;;  %v340_v35 = vmul.f32 %v700_v27, %v842_v0  ;;  %v341_v36 = vmul.f32 %v703_v28, %v842_v0  ;;  %v715_v62 = vunpack.c.l.bf16 %v776_v50 }
  0x34   : > { %533 = vst [vmem:[%s869_s26 + $0xf0] sm:$0xff] %v470_v24  ;;  %534 = vst [vmem:[%s869_s26 + $0xf8] sm:$0xff] %v471_v25  ;;  %v342_v37 = vmul.f32 %v704_v29, %v842_v0  ;;  %v343_v38 = vmul.f32 %v707_v30, %v842_v0  ;;  %v344_v39 = vmul.f32 %v708_v31, %v842_v0  ;;  %v716_v63 = vunpack.c.h.bf16 %v776_v50  ;;  %v780_v24 = vld [vmem:[%s837_s18 + $0xc0] sm:$0xff]   ;;  %v781_v25 = vld [vmem:[%s837_s18 + $0xc8] sm:$0xff]  }
  0x35   : > { %v345_v40 = vmul.f32 %v711_v32, %v842_v0  ;;  %v346_v41 = vmul.f32 %v712_v33, %v842_v0  ;;  %v409_v42 = vadd.f32 %v851_v9, %v339_v34  ;;  %v410_v43 = vadd.f32 %v851_v9, %v340_v35  ;;  %v782_v30 = vld [vmem:[%s837_s18 + $0xd0] sm:$0xff]   ;;  %v783_v31 = vld [vmem:[%s837_s18 + $0xd8] sm:$0xff]  }
  0x36   : > { %v411_v44 = vadd.f32 %v851_v9, %v341_v36  ;;  %v412_v45 = vadd.f32 %v851_v9, %v342_v37  ;;  %v413_v46 = vadd.f32 %v851_v9, %v343_v38  ;;  %v414_v47 = vadd.f32 %v851_v9, %v344_v39 }
  0x37   : > { %v415_v48 = vadd.f32 %v851_v9, %v345_v40  ;;  %v416_v49 = vadd.f32 %v851_v9, %v346_v41  ;;  %v472_v52 = vmax.f32 %v409_v42, 0.0  ;;  %v473_v53 = vmax.f32 %v410_v43, 0.0 }
  0x38   : > { %v474_v54 = vmax.f32 %v411_v44, 0.0  ;;  %v475_v55 = vmax.f32 %v412_v45, 0.0  ;;  %v476_v58 = vmax.f32 %v413_v46, 0.0  ;;  %v477_v59 = vmax.f32 %v414_v47, 0.0 }
  0x39   : > { %v478_v60 = vmax.f32 %v415_v48, 0.0  ;;  %v479_v61 = vmax.f32 %v416_v49, 0.0  ;;  %535 = vst [vmem:[%s869_s26 + $0x100] sm:$0xff] %v472_v52  ;;  %536 = vst [vmem:[%s869_s26 + $0x108] sm:$0xff] %v473_v53  ;;  %v719_v1 = vunpack.c.l.bf16 %v777_v51  ;;  %v720_v2 = vunpack.c.h.bf16 %v777_v51 }
  0x3a   : > { %537 = vst [vmem:[%s869_s26 + $0x110] sm:$0xff] %v474_v54  ;;  %538 = vst [vmem:[%s869_s26 + $0x118] sm:$0xff] %v475_v55  ;;  %v723_v3 = vunpack.c.l.bf16 %v778_v56  ;;  %v724_v4 = vunpack.c.h.bf16 %v778_v56  ;;  %v727_v5 = vunpack.c.l.bf16 %v779_v57  ;;  %v728_v6 = vunpack.c.h.bf16 %v779_v57 }
  0x3b   : > { %539 = vst [vmem:[%s869_s26 + $0x120] sm:$0xff] %v476_v58  ;;  %540 = vst [vmem:[%s869_s26 + $0x128] sm:$0xff] %v477_v59  ;;  %v347_v7 = vmul.f32 %v715_v62, %v842_v0  ;;  %v348_v8 = vmul.f32 %v716_v63, %v842_v0  ;;  %v349_v10 = vmul.f32 %v719_v1, %v842_v0  ;;  %v731_v36 = vunpack.c.l.bf16 %v780_v24  ;;  %v786_v62 = vld [vmem:[%s837_s18 + $0xf0] sm:$0xff]  }
  0x3c   : > { %541 = vst [vmem:[%s869_s26 + $0x130] sm:$0xff] %v478_v60  ;;  %542 = vst [vmem:[%s869_s26 + $0x138] sm:$0xff] %v479_v61  ;;  %v350_v11 = vmul.f32 %v720_v2, %v842_v0  ;;  %v351_v12 = vmul.f32 %v723_v3, %v842_v0  ;;  %v352_v13 = vmul.f32 %v724_v4, %v842_v0  ;;  %v732_v37 = vunpack.c.h.bf16 %v780_v24  ;;  %v784_v60 = vld [vmem:[%s837_s18 + $0xe0] sm:$0xff]   ;;  %v785_v61 = vld [vmem:[%s837_s18 + $0xe8] sm:$0xff]  }
  0x3d   : > { %v353_v14 = vmul.f32 %v727_v5, %v842_v0  ;;  %v354_v15 = vmul.f32 %v728_v6, %v842_v0  ;;  %v417_v16 = vadd.f32 %v851_v9, %v347_v7  ;;  %v418_v17 = vadd.f32 %v851_v9, %v348_v8  ;;  %v236_v4 = vld [vmem:[%s837_s18 + $0xf8] sm:$0xf] }
  0x3e   : > { %v419_v18 = vadd.f32 %v851_v9, %v349_v10  ;;  %v420_v19 = vadd.f32 %v851_v9, %v350_v11  ;;  %v421_v20 = vadd.f32 %v851_v9, %v351_v12  ;;  %v422_v21 = vadd.f32 %v851_v9, %v352_v13 }
  0x3f   : > { %v423_v22 = vadd.f32 %v851_v9, %v353_v14  ;;  %v424_v23 = vadd.f32 %v851_v9, %v354_v15  ;;  %v480_v26 = vmax.f32 %v417_v16, 0.0  ;;  %v481_v27 = vmax.f32 %v418_v17, 0.0 }
  0x40   : > { %v482_v28 = vmax.f32 %v419_v18, 0.0  ;;  %v483_v29 = vmax.f32 %v420_v19, 0.0  ;;  %v484_v32 = vmax.f32 %v421_v20, 0.0  ;;  %v485_v33 = vmax.f32 %v422_v21, 0.0 }
  0x41   : > { %v486_v34 = vmax.f32 %v423_v22, 0.0  ;;  %v487_v35 = vmax.f32 %v424_v23, 0.0  ;;  %543 = vst [vmem:[%s869_s26 + $0x140] sm:$0xff] %v480_v26  ;;  %544 = vst [vmem:[%s869_s26 + $0x148] sm:$0xff] %v481_v27  ;;  %v735_v38 = vunpack.c.l.bf16 %v781_v25  ;;  %v736_v39 = vunpack.c.h.bf16 %v781_v25 }
  0x42   : > { %545 = vst [vmem:[%s869_s26 + $0x150] sm:$0xff] %v482_v28  ;;  %546 = vst [vmem:[%s869_s26 + $0x158] sm:$0xff] %v483_v29  ;;  %v739_v40 = vunpack.c.l.bf16 %v782_v30  ;;  %v740_v41 = vunpack.c.h.bf16 %v782_v30  ;;  %v743_v42 = vunpack.c.l.bf16 %v783_v31  ;;  %v744_v43 = vunpack.c.h.bf16 %v783_v31 }
  0x43   : > { %547 = vst [vmem:[%s869_s26 + $0x160] sm:$0xff] %v484_v32  ;;  %548 = vst [vmem:[%s869_s26 + $0x168] sm:$0xff] %v485_v33  ;;  %v355_v44 = vmul.f32 %v731_v36, %v842_v0  ;;  %v356_v45 = vmul.f32 %v732_v37, %v842_v0  ;;  %v357_v46 = vmul.f32 %v735_v38, %v842_v0  ;;  %v747_v10 = vunpack.c.l.bf16 %v784_v60 }
  0x44   : > { %549 = vst [vmem:[%s869_s26 + $0x170] sm:$0xff] %v486_v34  ;;  %550 = vst [vmem:[%s869_s26 + $0x178] sm:$0xff] %v487_v35  ;;  %v358_v47 = vmul.f32 %v736_v39, %v842_v0  ;;  %v359_v48 = vmul.f32 %v739_v40, %v842_v0  ;;  %v360_v49 = vmul.f32 %v740_v41, %v842_v0  ;;  %v748_v11 = vunpack.c.h.bf16 %v784_v60 }
  0x45   : > { %v361_v50 = vmul.f32 %v743_v42, %v842_v0  ;;  %v362_v51 = vmul.f32 %v744_v43, %v842_v0  ;;  %v425_v52 = vadd.f32 %v851_v9, %v355_v44  ;;  %v426_v53 = vadd.f32 %v851_v9, %v356_v45 }
  0x46   : > { %v427_v54 = vadd.f32 %v851_v9, %v357_v46  ;;  %v428_v55 = vadd.f32 %v851_v9, %v358_v47  ;;  %v429_v56 = vadd.f32 %v851_v9, %v359_v48  ;;  %v430_v57 = vadd.f32 %v851_v9, %v360_v49 }
  0x47   : > { %v431_v58 = vadd.f32 %v851_v9, %v361_v50  ;;  %v432_v59 = vadd.f32 %v851_v9, %v362_v51  ;;  %v488_v63 = vmax.f32 %v425_v52, 0.0  ;;  %v489_v1 = vmax.f32 %v426_v53, 0.0 }
  0x48   : > { %v490_v2 = vmax.f32 %v427_v54, 0.0  ;;  %v491_v3 = vmax.f32 %v428_v55, 0.0  ;;  %v492_v5 = vmax.f32 %v429_v56, 0.0  ;;  %v493_v6 = vmax.f32 %v430_v57, 0.0 }
  0x49   : > { %v494_v7 = vmax.f32 %v431_v58, 0.0  ;;  %v495_v8 = vmax.f32 %v432_v59, 0.0  ;;  %551 = vst [vmem:[%s869_s26 + $0x180] sm:$0xff] %v488_v63  ;;  %552 = vst [vmem:[%s869_s26 + $0x188] sm:$0xff] %v489_v1  ;;  %v751_v12 = vunpack.c.l.bf16 %v785_v61  ;;  %v752_v13 = vunpack.c.h.bf16 %v785_v61 }
  0x4a   : > { %553 = vst [vmem:[%s869_s26 + $0x190] sm:$0xff] %v490_v2  ;;  %554 = vst [vmem:[%s869_s26 + $0x198] sm:$0xff] %v491_v3  ;;  %v755_v14 = vunpack.c.l.bf16 %v786_v62  ;;  %v756_v15 = vunpack.c.h.bf16 %v786_v62  ;;  %v299_v16 = vunpack.c.l.bf16 %v236_v4  ;;  %v363_v17 = vmul.f32 %v747_v10, %v842_v0 }
  0x4b   : > { %555 = vst [vmem:[%s869_s26 + $0x1a0] sm:$0xff] %v492_v5  ;;  %556 = vst [vmem:[%s869_s26 + $0x1a8] sm:$0xff] %v493_v6  ;;  %v364_v18 = vmul.f32 %v748_v11, %v842_v0  ;;  %v365_v19 = vmul.f32 %v751_v12, %v842_v0  ;;  %v366_v20 = vmul.f32 %v752_v13, %v842_v0 }
  0x4c   : > { %557 = vst [vmem:[%s869_s26 + $0x1b0] sm:$0xff] %v494_v7  ;;  %558 = vst [vmem:[%s869_s26 + $0x1b8] sm:$0xff] %v495_v8  ;;  %v367_v21 = vmul.f32 %v755_v14, %v842_v0  ;;  %v368_v22 = vmul.f32 %v756_v15, %v842_v0  ;;  %v369_v23 = vmul.f32 %v842_v0, %v299_v16 }
  0x4d   : > { %v433_v24 = vadd.f32 %v851_v9, %v363_v17  ;;  %v434_v25 = vadd.f32 %v851_v9, %v364_v18  ;;  %v435_v26 = vadd.f32 %v851_v9, %v365_v19  ;;  %v436_v27 = vadd.f32 %v851_v9, %v366_v20 }
  0x4e   : > { %v437_v28 = vadd.f32 %v851_v9, %v367_v21  ;;  %v438_v29 = vadd.f32 %v851_v9, %v368_v22  ;;  %v439_v0 = vadd.f32 %v851_v9, %v369_v23 }
  0x4f   : > { %v496_v30 = vmax.f32 %v433_v24, 0.0  ;;  %v497_v31 = vmax.f32 %v434_v25, 0.0  ;;  %v498_v32 = vmax.f32 %v435_v26, 0.0  ;;  %v499_v33 = vmax.f32 %v436_v27, 0.0 }
  0x50   : > { %v500_v34 = vmax.f32 %v437_v28, 0.0  ;;  %v501_v35 = vmax.f32 %v438_v29, 0.0  ;;  %v502_v36 = vmax.f32 %v439_v0, 0.0 }
  0x51   : > { %559 = vst [vmem:[%s869_s26 + $0x1c0] sm:$0xff] %v496_v30  ;;  %560 = vst [vmem:[%s869_s26 + $0x1c8] sm:$0xff] %v497_v31 }
  0x52   : > { %561 = vst [vmem:[%s869_s26 + $0x1d0] sm:$0xff] %v498_v32  ;;  %562 = vst [vmem:[%s869_s26 + $0x1d8] sm:$0xff] %v499_v33 }
  0x53   : > { %563 = vst [vmem:[%s869_s26 + $0x1e0] sm:$0xff] %v500_v34  ;;  %564 = vst [vmem:[%s869_s26 + $0x1e8] sm:$0xff] %v501_v35 }
  0x54   : > { %565 = vst [vmem:[%s869_s26 + $0x1f0] sm:$0xff] %v502_v36 }
  0x55 PF: > { %s13_s12 = sadd.s32 1, %s801_s12  }
  0x56   : > { %p10_p4 = scmp.ge.s32.totalorder %s13_s12, 4  }
  0x58   :  { %12 = sbr.rel (!%p10_p4) target bundleno = 1 (0x1), region = 62 }

// kernel: apply_node_func.4
= control target key start
LH: loop header
LB: loop body
LE: loop exit
PB: predicated region body
PF: predicated region fallthrough
CT: control target
= control target key end

     0   :  { %s3227_s21 = smov 0   ;;  %s3695_s0 = inlined_call_operand.vmem [shape: bf16[1008,32], index: 0, kind: input, shape index: {}]   ;;  %s3696_s1 = inlined_call_operand.vmem [shape: bf16[32,128], index: 1, kind: input, shape index: {}]   ;;  %s3697_s2 = inlined_call_operand.vmem [shape: f32[1,128], index: 2, kind: input, shape index: {}]   ;;  %s3698_s3 = inlined_call_operand.vmem [shape: f32[1,128], index: 3, kind: input, shape index: {}]   ;;  %s3699_s4 = inlined_call_operand.vmem [shape: bf16[128,128], index: 4, kind: input, shape index: {}]   ;;  %s3700_s5 = inlined_call_operand.vmem [shape: bf16[1008,128], index: 5, kind: output, shape index: {0}]   ;;  %s3701_s6 = inlined_call_operand.vmem [shape: f32[16,128], index: 6, kind: output, shape index: {1}]  }
   0x1 LB: > { %s3233_s22 = sadd.s32 4294967295, %s3190_s21   ;;  %p2405_p0 = scmp.ge.s32.totalorder %s3190_s21, 1  ;;  %s3190_s21 = sphi %s3227_s21, %s17_s21  }
   0x2   : > { %p216_p1 = scmp.lt.s32.totalorder %s3190_s21, 3 }
   0x4   : > { %p217_p2 = pnand %p2405_p0, %p216_p1 }
   0x5   : > { %v3140_v0 = vld [vmem:[%s3696_s1] sm:$0xff] (!%p217_p2)   ;;  %s250_s25 = smul.u32 (!%p217_p2), 63, %s3233_s22  ;;  %v3141_v1 = vld [vmem:[%s3696_s1 + $0x8] sm:$0xff] (!%p217_p2)   ;;  %vm504_vm0 = vcmask (!%p217_p2), 261120   ;;  %v3176_v4 = vld [vmem:[%s3699_s4 + $0x10] sm:$0xff] (!%p217_p2)   ;;  %v1092_v42 = vlaneseq (!%p217_p2)  ;;  %p262_p4 = scmp.lt.s32.totalorder (!%p217_p2), %s3233_s22, 1 }
   0x6   : > { %220 = sbr.rel (%p217_p2) target bundleno = 604 (0x25c), region = 40  ;;  %2968 = vmatprep.subr.bf16.mxu0 (!%p217_p2), %v3140_v0  ;;  %v3168_v2 = vld [vmem:[%s3699_s4] sm:$0xff] (!%p217_p2)   ;;  %v3173_v3 = vld [vmem:[%s3699_s4 + $0x8] sm:$0xff] (!%p217_p2)   ;;  %v3177_v8 = vld [vmem:[%s3699_s4 + $0x18] sm:$0xff] (!%p217_p2)  }
   0x7   : > { %p251_p3 = scmp.lt.s32.totalorder (!%p217_p2), %s250_s25, 125  ;;  %2969 = vmatpush3.bf16.msra.mxu0 (!%p217_p2), %v3140_v0  ;;  %3116 = vmatprep.subr.bf16.mxu1 (!%p217_p2), %v3168_v2  ;;  %v3178_v9 = vld [vmem:[%s3699_s4 + $0x20] sm:$0xff] (!%p217_p2)   ;;  %v3179_v12 = vld [vmem:[%s3699_s4 + $0x28] sm:$0xff] (!%p217_p2)   ;;  %v3180_v19 = vld [vmem:[%s3699_s4 + $0x30] sm:$0xff] (!%p217_p2)   ;;  %v3342_v43 = vshrl.u32 (!%p217_p2), %v1092_v42, 7  ;;  %s1156_s27 = smul.u32 (!%p217_p2), 504, %s3233_s22 }
   0x8   : > { %2970 = vmatprep.subr.bf16.mxu0 (!%p217_p2), %v3141_v1  ;;  %3124 = vmatpush3.bf16.msra.mxu1 (!%p217_p2), %v3168_v2  ;;  %v3181_v20 = vld [vmem:[%s3699_s4 + $0x38] sm:$0xff] (!%p217_p2)   ;;  %v3349_v45 = vld [vmem:[%s3697_s2] ss:$0 sm:$0xff] (!%p217_p2) }
   0x9   : > { %3117 = vmatprep.subr.bf16.mxu1 (!%p217_p2), %v3173_v3  ;;  %v1094_v44 = vadd.s32 (!%p217_p2), 8, %v3342_v43  ;;  %v3351_v46 = vstv (!%p217_p2), %s1156_s27  ;;  %v1095_v47 = vadd.s32 (!%p217_p2), 16, %v3342_v43  ;;  %v1096_v48 = vadd.s32 (!%p217_p2), 24, %v3342_v43  ;;  %v3358_v50 = vld [vmem:[%s3698_s3] ss:$0 sm:$0xff] (!%p217_p2) }
   0xa   : > { %v1158_v53 = vadd.s32 (!%p217_p2), %v3351_v46, %v3342_v43 }
   0xb   : > { %2971 = vmatpush3.bf16.msra.mxu0 (!%p217_p2), %v3141_v1  ;;  %v1159_v54 = vadd.s32 (!%p217_p2), %v3351_v46, %v1094_v44  ;;  %v1160_v57 = vadd.s32 (!%p217_p2), %v3351_v46, %v1095_v47  ;;  %v1161_v61 = vadd.s32 (!%p217_p2), %v3351_v46, %v1096_v48  ;;  %v1097_v1 = vadd.s32 (!%p217_p2), 32, %v3342_v43 }
   0xc   : > { %3036 = vmatprep.subr.bf16.mxu0 (!%p217_p2), %v3168_v2  ;;  %3125 = vmatpush3.bf16.msra.mxu1 (!%p217_p2), %v3173_v3  ;;  %vm1221_vm1 = vcmp.lt.s32.totalorder (!%p217_p2), %v1158_v53, 1000 }
   0xd   : > { %s3703_s25 = smov (!%p251_p3, %s250_s25), 125  ;;  %3118 = vmatprep.subr.bf16.mxu1 %v3176_v4  ;;  %vm1222_vm2 = vcmp.lt.s32.totalorder %v1159_v54, 1000  ;;  %vm1223_vm3 = vcmp.lt.s32.totalorder %v1160_v57, 1000  ;;  %vm1224_vm4 = vcmp.lt.s32.totalorder %v1161_v61, 1000  ;;  %v1105_v57 = vadd.s32 96, %v3342_v43  ;;  %s3705_s22 = smov (!%p262_p4, %s3233_s22), 1 }
   0xe   : > { %s2406_s8 = sshll.u32 %s3703_s25, 2  ;;  %vm2485_vm5 = vmpackc.low %vm1222_vm2, %vm1221_vm1  ;;  %s2408_s25 = sshll.u32 %s3705_s22, 3 }
   0xf   : > { %s3258_s11 = scalar_lea.vmem %s3695_s0, %s2406_s8  ;;  %vm2488_vm6 = vmpackc.low %vm1224_vm4, %vm1223_vm3  ;;  %s3653_s15 = scalar_lea.vmem %s3700_s5, %s2406_s8 }
  0x10   : > { %v3142_v5 = vld [vmem:[%s3258_s11] sm:$0xff]   ;;  %v3143_v6 = vld [vmem:[%s3258_s11 + $0x8] sm:$0xff]   ;;  %v3144_v7 = vld [vmem:[%s3258_s11 + $0x10] sm:$0xff]   ;;  %3126 = vmatpush3.bf16.msra.mxu1 %v3176_v4  ;;  %s265_s17 = scalar_lea.vmem %s3701_s6, %s2408_s25 }
  0x11   : > { %2972 = vmatprep.mubr.msk.bf16.mxu0 %vm504_vm0, %v3142_v5  ;;  %3119 = vmatprep.subr.bf16.mxu1 %v3177_v8  ;;  %v3145_v10 = vld [vmem:[%s3258_s11 + $0x18] sm:$0xff]   ;;  %v3146_v11 = vld [vmem:[%s3258_s11 + $0x20] sm:$0xff]   ;;  %v3147_v13 = vld [vmem:[%s3258_s11 + $0x28] sm:$0xff]  }
  0x12   : > { %2973 = vmatmul.mubr.msk.bf16.vlgmr.msra.gmra.mrb[0].mxu0 %vm504_vm0, %v3143_v6  ;;  %v3148_v14 = vld [vmem:[%s3258_s11 + $0x30] sm:$0xff]   ;;  %v3149_v15 = vld [vmem:[%s3258_s11 + $0x38] sm:$0xff]   ;;  %v3150_v16 = vld [vmem:[%s3258_s11 + $0x40] sm:$0xff]  }
  0x13   : > { %2976 = vmatprep.mubr.msk.bf16.mxu0 %vm504_vm0, %v3144_v7  ;;  %3037 = vmatpush3.bf16.msra.mxu0 %v3168_v2  ;;  %v3151_v17 = vld [vmem:[%s3258_s11 + $0x48] sm:$0xff]   ;;  %v3152_v18 = vld [vmem:[%s3258_s11 + $0x50] sm:$0xff]   ;;  %v3153_v21 = vld [vmem:[%s3258_s11 + $0x58] sm:$0xff]   ;;  %v1100_v7 = vadd.s32 56, %v3342_v43 }
  0x14   : > { %3038 = vmatprep.subr.bf16.mxu0 %v3173_v3  ;;  %3127 = vmatpush3.bf16.msra.mxu1 %v3177_v8  ;;  %v3154_v22 = vld [vmem:[%s3258_s11 + $0x60] sm:$0xff]   ;;  %v3155_v23 = vld [vmem:[%s3258_s11 + $0x68] sm:$0xff]   ;;  %v3156_v24 = vld [vmem:[%s3258_s11 + $0x70] sm:$0xff]  }
  0x15   : > { %3120 = vmatprep.subr.bf16.mxu1 %v3178_v9  ;;  %v3157_v25 = vld [vmem:[%s3258_s11 + $0x78] sm:$0xff]   ;;  %v3158_v26 = vld [vmem:[%s3258_s11 + $0x80] sm:$0xff]   ;;  %v3159_v27 = vld [vmem:[%s3258_s11 + $0x88] sm:$0xff]  }
  0x16   : > { %v3160_v28 = vld [vmem:[%s3258_s11 + $0x90] sm:$0xff]   ;;  %v3161_v29 = vld [vmem:[%s3258_s11 + $0x98] sm:$0xff]   ;;  %v3162_v30 = vld [vmem:[%s3258_s11 + $0xa0] sm:$0xff]  }
  0x17   : > { %3039 = vmatpush3.bf16.msra.mxu0 %v3173_v3  ;;  %v3163_v31 = vld [vmem:[%s3258_s11 + $0xa8] sm:$0xff]   ;;  %v3164_v32 = vld [vmem:[%s3258_s11 + $0xb0] sm:$0xff]   ;;  %v3165_v33 = vld [vmem:[%s3258_s11 + $0xb8] sm:$0xff]   ;;  %v1098_v3 = vadd.s32 40, %v3342_v43 }
  0x18   : > { %3040 = vmatprep.subr.bf16.mxu0 %v3176_v4  ;;  %3128 = vmatpush3.bf16.msra.mxu1 %v3178_v9  ;;  %v3166_v34 = vld [vmem:[%s3258_s11 + $0xc0] sm:$0xff]   ;;  %v3167_v35 = vld [vmem:[%s3258_s11 + $0xc8] sm:$0xff]   ;;  %v3169_v36 = vld [vmem:[%s3258_s11 + $0xd0] sm:$0xff]  }
  0x19   : > { %3121 = vmatprep.subr.bf16.mxu1 %v3179_v12  ;;  %v3170_v37 = vld [vmem:[%s3258_s11 + $0xd8] sm:$0xff]   ;;  %v3171_v38 = vld [vmem:[%s3258_s11 + $0xe0] sm:$0xff]   ;;  %v3172_v39 = vld [vmem:[%s3258_s11 + $0xe8] sm:$0xff]  }
  0x1a   : > { %2977 = vmatmul.mubr.msk.bf16.gmra.mrb[4].mxu0 %vm504_vm0, %v3145_v10  ;;  %v3174_v40 = vld [vmem:[%s3258_s11 + $0xf0] sm:$0xff]   ;;  %v3175_v41 = vld [vmem:[%s3258_s11 + $0xf8] ss:$0 sps:$4 sm:$0xff]  }
  0x1b   : > { %2980 = vmatprep.mubr.msk.bf16.mxu0 %vm504_vm0, %v3146_v11  ;;  %3041 = vmatpush3.bf16.msra.mxu0 %v3176_v4  ;;  %v1099_v4 = vadd.s32 48, %v3342_v43 }
  0x1c   : > { %3042 = vmatprep.subr.bf16.mxu0 %v3177_v8  ;;  %3129 = vmatpush3.bf16.msra.mxu1 %v3179_v12 }
  0x1d   : > { %3122 = vmatprep.subr.bf16.mxu1 %v3180_v19 }
  0x1f   : > { %3043 = vmatpush3.bf16.msra.mxu0 %v3177_v8 }
  0x20   : > { %3044 = vmatprep.subr.bf16.mxu0 %v3178_v9  ;;  %3130 = vmatpush3.bf16.msra.mxu1 %v3180_v19 }
  0x21   : > { %3123 = vmatprep.subr.bf16.mxu1 %v3181_v20 }
  0x22   : > { %2981 = vmatmul.mubr.msk.bf16.gmra.mrb[8].mxu0 %vm504_vm0, %v3147_v13 }
  0x23   : > { %2984 = vmatprep.mubr.msk.bf16.mxu0 %vm504_vm0, %v3148_v14  ;;  %3045 = vmatpush3.bf16.msra.mxu0 %v3178_v9  ;;  %v1162_v14 = vadd.s32 %v3351_v46, %v1097_v1 }
  0x24   : > { %3046 = vmatprep.subr.bf16.mxu0 %v3179_v12  ;;  %3131 = vmatpush3.bf16.msra.mxu1 %v3181_v20 }
  0x25   : > { %vm1225_vm7 = vcmp.lt.s32.totalorder %v1162_v14, 1000 }
  0x27   : > { %3047 = vmatpush3.bf16.msra.mxu0 %v3179_v12 }
  0x28   : > { %3048 = vmatprep.subr.bf16.mxu0 %v3180_v19 }
  0x2a   : > { %2985 = vmatmul.mubr.msk.bf16.gmra.mrb[12].mxu0 %vm504_vm0, %v3149_v15 }
  0x2b   : > { %2988 = vmatprep.mubr.msk.bf16.mxu0 %vm504_vm0, %v3150_v16  ;;  %3049 = vmatpush3.bf16.msra.mxu0 %v3180_v19  ;;  %v1164_v19 = vadd.s32 %v3351_v46, %v1099_v4 }
  0x2c   : > { %3050 = vmatprep.subr.bf16.mxu0 %v3181_v20 }
  0x2d   : > { %vm1227_vm9 = vcmp.lt.s32.totalorder %v1164_v19, 1000  ;;  %v1109_v19 = vadd.s32 128, %v3342_v43 }
  0x2f   : > { %3051 = vmatpush3.bf16.msra.mxu0 %v3181_v20 }
  0x32   : > { %2989 = vmatmul.mubr.msk.bf16.gmra.mrb[16].mxu0 %vm504_vm0, %v3151_v17 }
  0x33   : > { %2992 = vmatprep.mubr.msk.bf16.mxu0 %vm504_vm0, %v3152_v18  ;;  %v1163_v18 = vadd.s32 %v3351_v46, %v1098_v3 }
  0x35   : > { %vm1226_vm8 = vcmp.lt.s32.totalorder %v1163_v18, 1000 }
  0x36   : > { %vm2491_vm11 = vmpackc.low %vm1226_vm8, %vm1225_vm7 }
  0x3a   : > { %2993 = vmatmul.mubr.msk.bf16.gmra.mrb[20].mxu0 %vm504_vm0, %v3153_v21 }
  0x3b   : > { %2996 = vmatprep.mubr.msk.bf16.mxu0 %vm504_vm0, %v3154_v22 }
  0x42   : > { %2997 = vmatmul.mubr.msk.bf16.gmra.mrb[24].mxu0 %vm504_vm0, %v3155_v23  ;;  %v1165_v23 = vadd.s32 %v3351_v46, %v1100_v7 }
  0x43   : > { %3000 = vmatprep.mubr.msk.bf16.mxu0 %vm504_vm0, %v3156_v24 }
  0x44   : > { %vm1228_vm10 = vcmp.lt.s32.totalorder %v1165_v23, 1000 }
  0x45   : > { %vm2494_vm12 = vmpackc.low %vm1228_vm10, %vm1227_vm9 }
  0x4a   : > { %3001 = vmatmul.mubr.msk.bf16.gmra.mrb[28].mxu0 %vm504_vm0, %v3157_v25 }
  0x4b   : > { %3004 = vmatprep.mubr.msk.bf16.mxu0 %vm504_vm0, %v3158_v26 }
  0x52   : > { %3005 = vmatmul.mubr.msk.bf16.gmra.mrb[32].mxu0 %vm504_vm0, %v3159_v27  ;;  %v1101_v27 = vadd.s32 64, %v3342_v43 }
  0x53   : > { %3008 = vmatprep.mubr.msk.bf16.mxu0 %vm504_vm0, %v3160_v28  ;;  %v1102_v28 = vadd.s32 72, %v3342_v43 }
  0x5a   : > { %3009 = vmatmul.mubr.msk.bf16.gmra.mrb[36].mxu0 %vm504_vm0, %v3161_v29 }
  0x5b   : > { %3012 = vmatprep.mubr.msk.bf16.mxu0 %vm504_vm0, %v3162_v30  ;;  %v1103_v30 = vadd.s32 80, %v3342_v43 }
  0x5d   : > { %v1168_v48 = vadd.s32 %v3351_v46, %v1103_v30 }
  0x5f   : > { %vm1231_vm15 = vcmp.lt.s32.totalorder %v1168_v48, 1000  ;;  %v1113_v48 = vadd.s32 160, %v3342_v43 }
  0x62   : > { %3013 = vmatmul.mubr.msk.bf16.gmra.mrb[40].mxu0 %vm504_vm0, %v3163_v31 }
  0x63   : > { %3016 = vmatprep.mubr.msk.bf16.mxu0 %vm504_vm0, %v3164_v32 }
  0x6a   : > { %3017 = vmatmul.mubr.msk.bf16.gmra.mrb[44].mxu0 %vm504_vm0, %v3165_v33  ;;  %v1104_v33 = vadd.s32 88, %v3342_v43 }
  0x6b   : > { %3020 = vmatprep.mubr.msk.bf16.mxu0 %vm504_vm0, %v3166_v34 }
  0x6c   : > { %v1169_v53 = vadd.s32 %v3351_v46, %v1104_v33 }
  0x72   : > { %3021 = vmatmul.mubr.msk.bf16.gmra.mrb[48].mxu0 %vm504_vm0, %v3167_v35 }
  0x73   : > { %3024 = vmatprep.mubr.msk.bf16.mxu0 %vm504_vm0, %v3169_v36 }
  0x7a   : > { %3025 = vmatmul.mubr.msk.bf16.gmra.mrb[52].mxu0 %vm504_vm0, %v3170_v37 }
  0x7b   : > { %3028 = vmatprep.mubr.msk.bf16.mxu0 %vm504_vm0, %v3171_v38 }
  0x82   : > { %3029 = vmatmul.mubr.msk.bf16.gmra.mrb[56].mxu0 %vm504_vm0, %v3172_v39 }
  0x83   : > { %3032 = vmatprep.mubr.msk.bf16.mxu0 %vm504_vm0, %v3174_v40  ;;  %v1166_v40 = vadd.s32 %v3351_v46, %v1101_v27 }
  0x85   : > { %vm1229_vm13 = vcmp.lt.s32.totalorder %v1166_v40, 1000 }
  0x8a   : > { %3033 = vmatmul.mubr.msk.bf16.gmra.mrb[60].mxu0 %vm504_vm0, %v3175_v41  ;;  %v1167_v41 = vadd.s32 %v3351_v46, %v1102_v28  ;;  %vm1232_vm0 = vcmp.lt.s32.totalorder %v1169_v53, 1000 }
  0x8b   : > { %vm2500_vm2 = vmpackc.low %vm1232_vm0, %vm1231_vm15 }
  0x8c   : > { %vm1230_vm14 = vcmp.lt.s32.totalorder %v1167_v41, 1000 }
  0x8d   : > { %vm2497_vm1 = vmpackc.low %vm1230_vm14, %vm1229_vm13 }
  0xe5   : > { %v2974_v49 = vpop.f32.mrb[0].mxu0 }
  0xe6   : > { %v898_v51 = vmul.f32 %v2974_v49, %v3349_v45  ;;  %v635_v52 = vpop.f32.mrb[1].mxu0 }
  0xe7   : > { %v896_v55 = vmul.f32 %v3349_v45, %v635_v52  ;;  %v2975_v56 = vpop.f32.mrb[2].mxu0 }
  0xe8   : > { %v968_v58 = vadd.f32 %v3358_v50, %v898_v51  ;;  %v899_v59 = vmul.f32 %v2975_v56, %v3349_v45  ;;  %v638_v60 = vpop.f32.mrb[3].mxu0 }
  0xe9   : > { %v966_v62 = vadd.f32 %v3358_v50, %v896_v55  ;;  %v897_v63 = vmul.f32 %v3349_v45, %v638_v60  ;;  %v1107_v60 = vadd.s32 112, %v3342_v43 }
  0xea   : > { %v969_v0 = vadd.f32 %v3358_v50, %v899_v59  ;;  %v1031_v5 = vmax.f32 %v968_v58, 0.0  ;;  %v1106_v59 = vadd.s32 104, %v3342_v43 }
  0xeb   : > { %v967_v2 = vadd.f32 %v3358_v50, %v897_v63  ;;  %v1029_v8 = vmax.f32 %v966_v62, 0.0  ;;  %v1108_v63 = vadd.s32 120, %v3342_v43 }
  0xec   : > { %v1032_v6 = vmax.f32 %v969_v0, 0.0 }
  0xed   : > { %v1030_v9 = vmax.f32 %v967_v2, 0.0  ;;  %v2978_v10 = vpop.f32.mrb[4].mxu0 }
  0xee   : > { %v2489_v11 = vpack.c.bf16 %v1032_v6, %v1031_v5  ;;  %v902_v12 = vmul.f32 %v2978_v10, %v3349_v45  ;;  %v651_v13 = vpop.f32.mrb[5].mxu0  ;;  %v1170_v6 = vadd.s32 %v3351_v46, %v1105_v57  ;;  %v1171_v10 = vadd.s32 %v3351_v46, %v1106_v59 }
  0xef   : > { %v2486_v15 = vpack.c.bf16 %v1030_v9, %v1029_v8  ;;  %v900_v16 = vmul.f32 %v3349_v45, %v651_v13  ;;  %v2979_v17 = vpop.f32.mrb[6].mxu0 }
  0xf0   : > { %v972_v20 = vadd.f32 %v3358_v50, %v902_v12  ;;  %v903_v21 = vmul.f32 %v2979_v17, %v3349_v45  ;;  %v654_v22 = vpop.f32.mrb[7].mxu0  ;;  %vm1233_vm3 = vcmp.lt.s32.totalorder %v1170_v6, 1000  ;;  %vm1234_vm4 = vcmp.lt.s32.totalorder %v1171_v10, 1000 }
  0xf1   : > { %v970_v24 = vadd.f32 %v3358_v50, %v900_v16  ;;  %v901_v25 = vmul.f32 %v3349_v45, %v654_v22  ;;  %3052 = vmatprep.mubr.msk.bf16.mxu0 %vm2485_vm5, %v2486_v15  ;;  %v1173_v15 = vadd.s32 %v3351_v46, %v1108_v63  ;;  %v1111_v22 = vadd.s32 144, %v3342_v43  ;;  %vm2503_vm7 = vmpackc.low %vm1234_vm4, %vm1233_vm3 }
  0xf2   : > { %v973_v26 = vadd.f32 %v3358_v50, %v903_v21  ;;  %3053 = vmatmul.mubr.msk.bf16.vlgmr.msra.gmra.mrb[64].mxu0 %vm2488_vm6, %v2489_v11  ;;  %v1035_v31 = vmax.f32 %v972_v20, 0.0  ;;  %v1172_v11 = vadd.s32 %v3351_v46, %v1107_v60  ;;  %v1110_v20 = vadd.s32 136, %v3342_v43 }
  0xf3   : > { %v971_v29 = vadd.f32 %v3358_v50, %v901_v25  ;;  %v1033_v34 = vmax.f32 %v970_v24, 0.0  ;;  %vm1236_vm6 = vcmp.lt.s32.totalorder %v1173_v15, 1000  ;;  %v1112_v25 = vadd.s32 152, %v3342_v43 }
  0xf4   : > { %v1036_v32 = vmax.f32 %v973_v26, 0.0  ;;  %vm1235_vm5 = vcmp.lt.s32.totalorder %v1172_v11, 1000  ;;  %v1175_v33 = vadd.s32 %v3351_v46, %v1110_v20  ;;  %v1117_v11 = vadd.s32 192, %v3342_v43 }
  0xf5   : > { %v1034_v35 = vmax.f32 %v971_v29, 0.0  ;;  %v2982_v36 = vpop.f32.mrb[8].mxu0  ;;  %vm2506_vm8 = vmpackc.low %vm1236_vm6, %vm1235_vm5  ;;  %v1177_v41 = vadd.s32 %v3351_v46, %v1112_v25 }
  0xf6   : > { %v2495_v37 = vpack.c.bf16 %v1036_v32, %v1035_v31  ;;  %v906_v38 = vmul.f32 %v2982_v36, %v3349_v45  ;;  %v667_v39 = vpop.f32.mrb[9].mxu0  ;;  %v1174_v32 = vadd.s32 %v3351_v46, %v1109_v19  ;;  %vm1238_vm10 = vcmp.lt.s32.totalorder %v1175_v33, 1000 }
  0xf7   : > { %v904_v42 = vmul.f32 %v3349_v45, %v667_v39  ;;  %v2983_v44 = vpop.f32.mrb[10].mxu0  ;;  %v2492_v47 = vpack.c.bf16 %v1034_v35, %v1033_v34 }
  0xf8   : > { %v976_v49 = vadd.f32 %v3358_v50, %v906_v38  ;;  %v907_v51 = vmul.f32 %v2983_v44, %v3349_v45  ;;  %v670_v52 = vpop.f32.mrb[11].mxu0  ;;  %vm1237_vm9 = vcmp.lt.s32.totalorder %v1174_v32, 1000 }
  0xf9   : > { %v974_v54 = vadd.f32 %v3358_v50, %v904_v42  ;;  %v905_v55 = vmul.f32 %v3349_v45, %v670_v52  ;;  %3056 = vmatprep.mubr.msk.bf16.mxu1 %vm2491_vm11, %v2492_v47  ;;  %v1115_v52 = vadd.s32 176, %v3342_v43  ;;  %vm2509_vm13 = vmpackc.low %vm1238_vm10, %vm1237_vm9 }
  0xfa   : > { %v977_v56 = vadd.f32 %v3358_v50, %v907_v51  ;;  %3057 = vmatmul.mubr.msk.bf16.vlgmr.msra.gmra.mrb[0].mxu1 %vm2494_vm12, %v2495_v37  ;;  %v1039_v61 = vmax.f32 %v976_v49, 0.0  ;;  %v1176_v37 = vadd.s32 %v3351_v46, %v1111_v22  ;;  %v1114_v51 = vadd.s32 168, %v3342_v43 }
  0xfb   : > { %v975_v58 = vadd.f32 %v3358_v50, %v905_v55  ;;  %v1037_v0 = vmax.f32 %v974_v54, 0.0  ;;  %vm1240_vm12 = vcmp.lt.s32.totalorder %v1177_v41, 1000  ;;  %v1116_v55 = vadd.s32 184, %v3342_v43 }
  0xfc   : > { %v1040_v62 = vmax.f32 %v977_v56, 0.0  ;;  %vm1239_vm11 = vcmp.lt.s32.totalorder %v1176_v37, 1000  ;;  %v1121_v37 = vadd.s32 224, %v3342_v43 }
  0xfd   : > { %v1038_v1 = vmax.f32 %v975_v58, 0.0  ;;  %v2986_v2 = vpop.f32.mrb[12].mxu0  ;;  %vm2512_vm14 = vmpackc.low %vm1240_vm12, %vm1239_vm11 }
  0xfe   : > { %v2501_v3 = vpack.c.bf16 %v1040_v62, %v1039_v61  ;;  %v910_v4 = vmul.f32 %v2986_v2, %v3349_v45  ;;  %v683_v5 = vpop.f32.mrb[13].mxu0  ;;  %v1178_v62 = vadd.s32 %v3351_v46, %v1113_v48  ;;  %v1179_v2 = vadd.s32 %v3351_v46, %v1114_v51 }
  0xff   : > { %v2498_v7 = vpack.c.bf16 %v1038_v1, %v1037_v0  ;;  %v908_v8 = vmul.f32 %v3349_v45, %v683_v5  ;;  %v2987_v9 = vpop.f32.mrb[14].mxu0 }
 0x100   : > { %v980_v12 = vadd.f32 %v3358_v50, %v910_v4  ;;  %v911_v13 = vmul.f32 %v2987_v9, %v3349_v45  ;;  %v686_v14 = vpop.f32.mrb[15].mxu0  ;;  %vm1241_vm15 = vcmp.lt.s32.totalorder %v1178_v62, 1000  ;;  %vm1242_vm0 = vcmp.lt.s32.totalorder %v1179_v2, 1000 }
 0x101   : > { %v978_v16 = vadd.f32 %v3358_v50, %v908_v8  ;;  %v909_v17 = vmul.f32 %v3349_v45, %v686_v14  ;;  %3060 = vmatprep.mubr.msk.bf16.mxu1 %vm2497_vm1, %v2498_v7  ;;  %v1181_v7 = vadd.s32 %v3351_v46, %v1116_v55  ;;  %v1119_v14 = vadd.s32 208, %v3342_v43  ;;  %vm2515_vm3 = vmpackc.low %vm1242_vm0, %vm1241_vm15 }
 0x102   : > { %v981_v18 = vadd.f32 %v3358_v50, %v911_v13  ;;  %3061 = vmatmul.mubr.msk.bf16.gmra.mrb[4].mxu1 %vm2500_vm2, %v2501_v3  ;;  %v1043_v23 = vmax.f32 %v980_v12, 0.0  ;;  %v1180_v3 = vadd.s32 %v3351_v46, %v1115_v52  ;;  %v1118_v12 = vadd.s32 200, %v3342_v43 }
 0x103   : > { %v979_v21 = vadd.f32 %v3358_v50, %v909_v17  ;;  %v1041_v26 = vmax.f32 %v978_v16, 0.0  ;;  %vm1244_vm2 = vcmp.lt.s32.totalorder %v1181_v7, 1000  ;;  %v1120_v17 = vadd.s32 216, %v3342_v43 }
 0x104   : > { %v1044_v24 = vmax.f32 %v981_v18, 0.0  ;;  %vm1243_vm1 = vcmp.lt.s32.totalorder %v1180_v3, 1000  ;;  %v1183_v25 = vadd.s32 %v3351_v46, %v1118_v12  ;;  %v1125_v3 = vadd.s32 256, %v3342_v43 }
 0x105   : > { %v1042_v27 = vmax.f32 %v979_v21, 0.0  ;;  %v2990_v28 = vpop.f32.mrb[16].mxu0  ;;  %vm2518_vm4 = vmpackc.low %vm1244_vm2, %vm1243_vm1  ;;  %v1185_v33 = vadd.s32 %v3351_v46, %v1120_v17 }
 0x106   : > { %v2507_v29 = vpack.c.bf16 %v1044_v24, %v1043_v23  ;;  %v914_v30 = vmul.f32 %v2990_v28, %v3349_v45  ;;  %v699_v31 = vpop.f32.mrb[17].mxu0  ;;  %v1182_v24 = vadd.s32 %v3351_v46, %v1117_v11  ;;  %vm1246_vm6 = vcmp.lt.s32.totalorder %v1183_v25, 1000 }
 0x107   : > { %v2504_v34 = vpack.c.bf16 %v1042_v27, %v1041_v26  ;;  %v912_v35 = vmul.f32 %v3349_v45, %v699_v31  ;;  %v2991_v36 = vpop.f32.mrb[18].mxu0 }
 0x108   : > { %v984_v38 = vadd.f32 %v3358_v50, %v914_v30  ;;  %v915_v39 = vmul.f32 %v2991_v36, %v3349_v45  ;;  %v702_v40 = vpop.f32.mrb[19].mxu0  ;;  %vm1245_vm5 = vcmp.lt.s32.totalorder %v1182_v24, 1000 }
 0x109   : > { %v982_v42 = vadd.f32 %v3358_v50, %v912_v35  ;;  %v913_v44 = vmul.f32 %v3349_v45, %v702_v40  ;;  %3064 = vmatprep.mubr.msk.bf16.mxu1 %vm2503_vm7, %v2504_v34  ;;  %v1123_v40 = vadd.s32 240, %v3342_v43  ;;  %vm2521_vm9 = vmpackc.low %vm1246_vm6, %vm1245_vm5 }
 0x10a   : > { %v985_v47 = vadd.f32 %v3358_v50, %v915_v39  ;;  %3065 = vmatmul.mubr.msk.bf16.gmra.mrb[8].mxu1 %vm2506_vm8, %v2507_v29  ;;  %v1047_v53 = vmax.f32 %v984_v38, 0.0  ;;  %v1184_v29 = vadd.s32 %v3351_v46, %v1119_v14  ;;  %v1122_v39 = vadd.s32 232, %v3342_v43 }
 0x10b   : > { %v983_v49 = vadd.f32 %v3358_v50, %v913_v44  ;;  %v1045_v56 = vmax.f32 %v982_v42, 0.0  ;;  %vm1248_vm8 = vcmp.lt.s32.totalorder %v1185_v33, 1000  ;;  %v1124_v44 = vadd.s32 248, %v3342_v43 }
 0x10c   : > { %v1048_v54 = vmax.f32 %v985_v47, 0.0  ;;  %vm1247_vm7 = vcmp.lt.s32.totalorder %v1184_v29, 1000  ;;  %v1129_v29 = vadd.s32 288, %v3342_v43 }
 0x10d   : > { %v1046_v57 = vmax.f32 %v983_v49, 0.0  ;;  %v2994_v58 = vpop.f32.mrb[20].mxu0  ;;  %vm2524_vm10 = vmpackc.low %vm1248_vm8, %vm1247_vm7 }
 0x10e   : > { %v2513_v59 = vpack.c.bf16 %v1048_v54, %v1047_v53  ;;  %v918_v60 = vmul.f32 %v2994_v58, %v3349_v45  ;;  %v715_v61 = vpop.f32.mrb[21].mxu0  ;;  %v1186_v54 = vadd.s32 %v3351_v46, %v1121_v37  ;;  %v1187_v58 = vadd.s32 %v3351_v46, %v1122_v39 }
 0x10f   : > { %v2510_v63 = vpack.c.bf16 %v1046_v57, %v1045_v56  ;;  %v916_v0 = vmul.f32 %v3349_v45, %v715_v61  ;;  %v2995_v1 = vpop.f32.mrb[22].mxu0 }
 0x110   : > { %v988_v4 = vadd.f32 %v3358_v50, %v918_v60  ;;  %v919_v5 = vmul.f32 %v2995_v1, %v3349_v45  ;;  %v718_v6 = vpop.f32.mrb[23].mxu0  ;;  %vm1249_vm11 = vcmp.lt.s32.totalorder %v1186_v54, 1000  ;;  %vm1250_vm12 = vcmp.lt.s32.totalorder %v1187_v58, 1000 }
 0x111   : > { %v986_v8 = vadd.f32 %v3358_v50, %v916_v0  ;;  %v917_v9 = vmul.f32 %v3349_v45, %v718_v6  ;;  %3068 = vmatprep.mubr.msk.bf16.mxu1 %vm2509_vm13, %v2510_v63  ;;  %v1189_v63 = vadd.s32 %v3351_v46, %v1124_v44  ;;  %v1127_v6 = vadd.s32 272, %v3342_v43  ;;  %vm2527_vm15 = vmpackc.low %vm1250_vm12, %vm1249_vm11 }
 0x112   : > { %v989_v10 = vadd.f32 %v3358_v50, %v919_v5  ;;  %3069 = vmatmul.mubr.msk.bf16.gmra.mrb[12].mxu1 %vm2512_vm14, %v2513_v59  ;;  %v1051_v15 = vmax.f32 %v988_v4, 0.0  ;;  %v1188_v59 = vadd.s32 %v3351_v46, %v1123_v40  ;;  %v1126_v4 = vadd.s32 264, %v3342_v43 }
 0x113   : > { %v987_v13 = vadd.f32 %v3358_v50, %v917_v9  ;;  %v1049_v18 = vmax.f32 %v986_v8, 0.0  ;;  %vm1252_vm14 = vcmp.lt.s32.totalorder %v1189_v63, 1000  ;;  %v1128_v9 = vadd.s32 280, %v3342_v43 }
 0x114   : > { %v1052_v16 = vmax.f32 %v989_v10, 0.0  ;;  %vm1251_vm13 = vcmp.lt.s32.totalorder %v1188_v59, 1000  ;;  %v1191_v17 = vadd.s32 %v3351_v46, %v1126_v4  ;;  %v1133_v59 = vadd.s32 320, %v3342_v43 }
 0x115   : > { %v1050_v19 = vmax.f32 %v987_v13, 0.0  ;;  %v2998_v20 = vpop.f32.mrb[24].mxu0  ;;  %vm2530_vm0 = vmpackc.low %vm1252_vm14, %vm1251_vm13  ;;  %v1193_v25 = vadd.s32 %v3351_v46, %v1128_v9 }
 0x116   : > { %v2519_v21 = vpack.c.bf16 %v1052_v16, %v1051_v15  ;;  %v922_v22 = vmul.f32 %v2998_v20, %v3349_v45  ;;  %v731_v23 = vpop.f32.mrb[25].mxu0  ;;  %v1190_v16 = vadd.s32 %v3351_v46, %v1125_v3  ;;  %vm1254_vm2 = vcmp.lt.s32.totalorder %v1191_v17, 1000 }
 0x117   : > { %v2516_v26 = vpack.c.bf16 %v1050_v19, %v1049_v18  ;;  %v920_v27 = vmul.f32 %v3349_v45, %v731_v23  ;;  %v2999_v28 = vpop.f32.mrb[26].mxu0 }
 0x118   : > { %v992_v30 = vadd.f32 %v3358_v50, %v922_v22  ;;  %v923_v31 = vmul.f32 %v2999_v28, %v3349_v45  ;;  %v734_v32 = vpop.f32.mrb[27].mxu0  ;;  %vm1253_vm1 = vcmp.lt.s32.totalorder %v1190_v16, 1000 }
 0x119   : > { %v990_v34 = vadd.f32 %v3358_v50, %v920_v27  ;;  %v921_v35 = vmul.f32 %v3349_v45, %v734_v32  ;;  %3072 = vmatprep.mubr.msk.bf16.mxu1 %vm2515_vm3, %v2516_v26  ;;  %v1131_v32 = vadd.s32 304, %v3342_v43  ;;  %vm2533_vm5 = vmpackc.low %vm1254_vm2, %vm1253_vm1 }
 0x11a   : > { %v993_v36 = vadd.f32 %v3358_v50, %v923_v31  ;;  %3073 = vmatmul.mubr.msk.bf16.gmra.mrb[16].mxu1 %vm2518_vm4, %v2519_v21  ;;  %v1055_v41 = vmax.f32 %v992_v30, 0.0  ;;  %v1192_v21 = vadd.s32 %v3351_v46, %v1127_v6  ;;  %v1130_v31 = vadd.s32 296, %v3342_v43 }
 0x11b   : > { %v991_v38 = vadd.f32 %v3358_v50, %v921_v35  ;;  %v1053_v47 = vmax.f32 %v990_v34, 0.0  ;;  %vm1256_vm4 = vcmp.lt.s32.totalorder %v1193_v25, 1000  ;;  %v1132_v35 = vadd.s32 312, %v3342_v43 }
 0x11c   : > { %v1056_v42 = vmax.f32 %v993_v36, 0.0  ;;  %vm1255_vm3 = vcmp.lt.s32.totalorder %v1192_v21, 1000  ;;  %v1137_v21 = vadd.s32 352, %v3342_v43 }
 0x11d   : > { %v1054_v48 = vmax.f32 %v991_v38, 0.0  ;;  %v3002_v49 = vpop.f32.mrb[28].mxu0  ;;  %vm2536_vm6 = vmpackc.low %vm1256_vm4, %vm1255_vm3 }
 0x11e   : > { %v2525_v51 = vpack.c.bf16 %v1056_v42, %v1055_v41  ;;  %v926_v52 = vmul.f32 %v3002_v49, %v3349_v45  ;;  %v747_v53 = vpop.f32.mrb[29].mxu0  ;;  %v1194_v42 = vadd.s32 %v3351_v46, %v1129_v29  ;;  %v1195_v49 = vadd.s32 %v3351_v46, %v1130_v31 }
 0x11f   : > { %v2522_v55 = vpack.c.bf16 %v1054_v48, %v1053_v47  ;;  %v924_v56 = vmul.f32 %v3349_v45, %v747_v53  ;;  %v3003_v57 = vpop.f32.mrb[30].mxu0 }
 0x120   : > { %v996_v60 = vadd.f32 %v3358_v50, %v926_v52  ;;  %v927_v61 = vmul.f32 %v3003_v57, %v3349_v45  ;;  %v750_v62 = vpop.f32.mrb[31].mxu0  ;;  %vm1257_vm7 = vcmp.lt.s32.totalorder %v1194_v42, 1000  ;;  %vm1258_vm8 = vcmp.lt.s32.totalorder %v1195_v49, 1000 }
 0x121   : > { %v994_v0 = vadd.f32 %v3358_v50, %v924_v56  ;;  %v925_v1 = vmul.f32 %v3349_v45, %v750_v62  ;;  %3076 = vmatprep.mubr.msk.bf16.mxu1 %vm2521_vm9, %v2522_v55  ;;  %v1197_v55 = vadd.s32 %v3351_v46, %v1132_v35  ;;  %v1135_v62 = vadd.s32 336, %v3342_v43  ;;  %vm2539_vm11 = vmpackc.low %vm1258_vm8, %vm1257_vm7 }
 0x122   : > { %v997_v2 = vadd.f32 %v3358_v50, %v927_v61  ;;  %3077 = vmatmul.mubr.msk.bf16.gmra.mrb[20].mxu1 %vm2524_vm10, %v2525_v51  ;;  %v1059_v7 = vmax.f32 %v996_v60, 0.0  ;;  %v1196_v51 = vadd.s32 %v3351_v46, %v1131_v32  ;;  %v1134_v60 = vadd.s32 328, %v3342_v43 }
 0x123   : > { %v995_v5 = vadd.f32 %v3358_v50, %v925_v1  ;;  %v1057_v10 = vmax.f32 %v994_v0, 0.0  ;;  %vm1260_vm10 = vcmp.lt.s32.totalorder %v1197_v55, 1000  ;;  %v1136_v1 = vadd.s32 344, %v3342_v43 }
 0x124   : > { %v1060_v8 = vmax.f32 %v997_v2, 0.0  ;;  %vm1259_vm9 = vcmp.lt.s32.totalorder %v1196_v51, 1000  ;;  %v1199_v9 = vadd.s32 %v3351_v46, %v1134_v60  ;;  %v1141_v51 = vadd.s32 384, %v3342_v43 }
 0x125   : > { %v1058_v11 = vmax.f32 %v995_v5, 0.0  ;;  %v3006_v12 = vpop.f32.mrb[32].mxu0  ;;  %vm2542_vm12 = vmpackc.low %vm1260_vm10, %vm1259_vm9  ;;  %v1201_v17 = vadd.s32 %v3351_v46, %v1136_v1 }
 0x126   : > { %v2531_v13 = vpack.c.bf16 %v1060_v8, %v1059_v7  ;;  %v930_v14 = vmul.f32 %v3006_v12, %v3349_v45  ;;  %v763_v15 = vpop.f32.mrb[33].mxu0  ;;  %v1198_v8 = vadd.s32 %v3351_v46, %v1133_v59  ;;  %vm1262_vm14 = vcmp.lt.s32.totalorder %v1199_v9, 1000 }
 0x127   : > { %v2528_v18 = vpack.c.bf16 %v1058_v11, %v1057_v10  ;;  %v928_v19 = vmul.f32 %v3349_v45, %v763_v15  ;;  %v3007_v20 = vpop.f32.mrb[34].mxu0 }
 0x128   : > { %v1000_v22 = vadd.f32 %v3358_v50, %v930_v14  ;;  %v931_v23 = vmul.f32 %v3007_v20, %v3349_v45  ;;  %v766_v24 = vpop.f32.mrb[35].mxu0  ;;  %vm1261_vm13 = vcmp.lt.s32.totalorder %v1198_v8, 1000 }
 0x129   : > { %v998_v26 = vadd.f32 %v3358_v50, %v928_v19  ;;  %v929_v27 = vmul.f32 %v3349_v45, %v766_v24  ;;  %3080 = vmatprep.mubr.msk.bf16.mxu1 %vm2527_vm15, %v2528_v18  ;;  %v1139_v24 = vadd.s32 368, %v3342_v43  ;;  %vm2545_vm1 = vmpackc.low %vm1262_vm14, %vm1261_vm13 }
 0x12a   : > { %v1001_v28 = vadd.f32 %v3358_v50, %v931_v23  ;;  %3081 = vmatmul.mubr.msk.bf16.gmra.mrb[24].mxu1 %vm2530_vm0, %v2531_v13  ;;  %v1063_v33 = vmax.f32 %v1000_v22, 0.0  ;;  %v1200_v13 = vadd.s32 %v3351_v46, %v1135_v62  ;;  %v1138_v23 = vadd.s32 360, %v3342_v43 }
 0x12b   : > { %v999_v30 = vadd.f32 %v3358_v50, %v929_v27  ;;  %v1061_v36 = vmax.f32 %v998_v26, 0.0  ;;  %vm1264_vm0 = vcmp.lt.s32.totalorder %v1201_v17, 1000  ;;  %v1140_v27 = vadd.s32 376, %v3342_v43 }
 0x12c   : > { %v1064_v34 = vmax.f32 %v1001_v28, 0.0  ;;  %vm1263_vm15 = vcmp.lt.s32.totalorder %v1200_v13, 1000  ;;  %v1145_v13 = vadd.s32 416, %v3342_v43 }
 0x12d   : > { %v1062_v37 = vmax.f32 %v999_v30, 0.0  ;;  %v3010_v38 = vpop.f32.mrb[36].mxu0  ;;  %vm2548_vm2 = vmpackc.low %vm1264_vm0, %vm1263_vm15 }
 0x12e   : > { %v2537_v39 = vpack.c.bf16 %v1064_v34, %v1063_v33  ;;  %v934_v40 = vmul.f32 %v3010_v38, %v3349_v45  ;;  %v779_v41 = vpop.f32.mrb[37].mxu0  ;;  %v1202_v34 = vadd.s32 %v3351_v46, %v1137_v21  ;;  %v1203_v38 = vadd.s32 %v3351_v46, %v1138_v23 }
 0x12f   : > { %v2534_v44 = vpack.c.bf16 %v1062_v37, %v1061_v36  ;;  %v932_v47 = vmul.f32 %v3349_v45, %v779_v41  ;;  %v3011_v48 = vpop.f32.mrb[38].mxu0 }
 0x130   : > { %v1004_v52 = vadd.f32 %v3358_v50, %v934_v40  ;;  %v935_v53 = vmul.f32 %v3011_v48, %v3349_v45  ;;  %v782_v54 = vpop.f32.mrb[39].mxu0  ;;  %vm1265_vm3 = vcmp.lt.s32.totalorder %v1202_v34, 1000  ;;  %vm1266_vm4 = vcmp.lt.s32.totalorder %v1203_v38, 1000 }
 0x131   : > { %v1002_v56 = vadd.f32 %v3358_v50, %v932_v47  ;;  %v933_v57 = vmul.f32 %v3349_v45, %v782_v54  ;;  %3084 = vmatprep.mubr.msk.bf16.mxu1 %vm2533_vm5, %v2534_v44  ;;  %v1205_v44 = vadd.s32 %v3351_v46, %v1140_v27  ;;  %v1143_v54 = vadd.s32 400, %v3342_v43  ;;  %vm2551_vm7 = vmpackc.low %vm1266_vm4, %vm1265_vm3 }
 0x132   : > { %v1005_v58 = vadd.f32 %v3358_v50, %v935_v53  ;;  %3085 = vmatmul.mubr.msk.bf16.gmra.mrb[28].mxu1 %vm2536_vm6, %v2537_v39  ;;  %v1067_v63 = vmax.f32 %v1004_v52, 0.0  ;;  %v1204_v39 = vadd.s32 %v3351_v46, %v1139_v24  ;;  %v1142_v52 = vadd.s32 392, %v3342_v43 }
 0x133   : > { %v1003_v61 = vadd.f32 %v3358_v50, %v933_v57  ;;  %v1065_v2 = vmax.f32 %v1002_v56, 0.0  ;;  %vm1268_vm6 = vcmp.lt.s32.totalorder %v1205_v44, 1000  ;;  %v1144_v57 = vadd.s32 408, %v3342_v43 }
 0x134   : > { %v1068_v0 = vmax.f32 %v1005_v58, 0.0  ;;  %vm1267_vm5 = vcmp.lt.s32.totalorder %v1204_v39, 1000  ;;  %v1207_v1 = vadd.s32 %v3351_v46, %v1142_v52  ;;  %v1149_v39 = vadd.s32 448, %v3342_v43 }
 0x135   : > { %v1066_v3 = vmax.f32 %v1003_v61, 0.0  ;;  %v3014_v4 = vpop.f32.mrb[40].mxu0  ;;  %vm2554_vm8 = vmpackc.low %vm1268_vm6, %vm1267_vm5  ;;  %v1209_v9 = vadd.s32 %v3351_v46, %v1144_v57 }
 0x136   : > { %v2543_v5 = vpack.c.bf16 %v1068_v0, %v1067_v63  ;;  %v938_v6 = vmul.f32 %v3014_v4, %v3349_v45  ;;  %v795_v7 = vpop.f32.mrb[41].mxu0  ;;  %v1206_v0 = vadd.s32 %v3351_v46, %v1141_v51  ;;  %vm1270_vm10 = vcmp.lt.s32.totalorder %v1207_v1, 1000 }
 0x137   : > { %v2540_v10 = vpack.c.bf16 %v1066_v3, %v1065_v2  ;;  %v936_v11 = vmul.f32 %v3349_v45, %v795_v7  ;;  %v3015_v12 = vpop.f32.mrb[42].mxu0 }
 0x138   : > { %v1008_v14 = vadd.f32 %v3358_v50, %v938_v6  ;;  %v939_v15 = vmul.f32 %v3015_v12, %v3349_v45  ;;  %v798_v16 = vpop.f32.mrb[43].mxu0  ;;  %vm1269_vm9 = vcmp.lt.s32.totalorder %v1206_v0, 1000 }
 0x139   : > { %v1006_v18 = vadd.f32 %v3358_v50, %v936_v11  ;;  %v937_v19 = vmul.f32 %v3349_v45, %v798_v16  ;;  %3088 = vmatprep.mubr.msk.bf16.mxu1 %vm2539_vm11, %v2540_v10  ;;  %v1147_v16 = vadd.s32 432, %v3342_v43  ;;  %vm2557_vm13 = vmpackc.low %vm1270_vm10, %vm1269_vm9 }
 0x13a   : > { %v1009_v20 = vadd.f32 %v3358_v50, %v939_v15  ;;  %3089 = vmatmul.mubr.msk.bf16.gmra.mrb[32].mxu1 %vm2542_vm12, %v2543_v5  ;;  %v1071_v25 = vmax.f32 %v1008_v14, 0.0  ;;  %v1208_v5 = vadd.s32 %v3351_v46, %v1143_v54  ;;  %v1146_v15 = vadd.s32 424, %v3342_v43 }
 0x13b   : > { %v1007_v22 = vadd.f32 %v3358_v50, %v937_v19  ;;  %v1069_v28 = vmax.f32 %v1006_v18, 0.0  ;;  %vm1272_vm12 = vcmp.lt.s32.totalorder %v1209_v9, 1000  ;;  %v1148_v19 = vadd.s32 440, %v3342_v43 }
 0x13c   : > { %v1072_v26 = vmax.f32 %v1009_v20, 0.0  ;;  %vm1271_vm11 = vcmp.lt.s32.totalorder %v1208_v5, 1000 }
 0x13d   : > { %v1070_v29 = vmax.f32 %v1007_v22, 0.0  ;;  %v3018_v30 = vpop.f32.mrb[44].mxu0  ;;  %vm2560_vm14 = vmpackc.low %vm1272_vm12, %vm1271_vm11 }
 0x13e   : > { %v2549_v31 = vpack.c.bf16 %v1072_v26, %v1071_v25  ;;  %v942_v32 = vmul.f32 %v3018_v30, %v3349_v45  ;;  %v811_v33 = vpop.f32.mrb[45].mxu0  ;;  %v1210_v26 = vadd.s32 %v3351_v46, %v1145_v13  ;;  %v1211_v30 = vadd.s32 %v3351_v46, %v1146_v15 }
 0x13f   : > { %v2546_v35 = vpack.c.bf16 %v1070_v29, %v1069_v28  ;;  %v940_v36 = vmul.f32 %v3349_v45, %v811_v33  ;;  %v3019_v37 = vpop.f32.mrb[46].mxu0 }
 0x140   : > { %v1012_v40 = vadd.f32 %v3358_v50, %v942_v32  ;;  %v943_v41 = vmul.f32 %v3019_v37, %v3349_v45  ;;  %v814_v42 = vpop.f32.mrb[47].mxu0  ;;  %vm1273_vm15 = vcmp.lt.s32.totalorder %v1210_v26, 1000  ;;  %vm1274_vm0 = vcmp.lt.s32.totalorder %v1211_v30, 1000 }
 0x141   : > { %v1010_v47 = vadd.f32 %v3358_v50, %v940_v36  ;;  %v941_v48 = vmul.f32 %v3349_v45, %v814_v42  ;;  %3092 = vmatprep.mubr.msk.bf16.mxu1 %vm2545_vm1, %v2546_v35  ;;  %v1213_v35 = vadd.s32 %v3351_v46, %v1148_v19  ;;  %v1151_v42 = vadd.s32 464, %v3342_v43  ;;  %vm2563_vm3 = vmpackc.low %vm1274_vm0, %vm1273_vm15 }
 0x142   : > { %v1013_v49 = vadd.f32 %v3358_v50, %v943_v41  ;;  %3093 = vmatmul.mubr.msk.bf16.gmra.mrb[36].mxu1 %vm2548_vm2, %v2549_v31  ;;  %v1075_v55 = vmax.f32 %v1012_v40, 0.0  ;;  %v1212_v31 = vadd.s32 %v3351_v46, %v1147_v16  ;;  %v1150_v40 = vadd.s32 456, %v3342_v43 }
 0x143   : > { %v1011_v53 = vadd.f32 %v3358_v50, %v941_v48  ;;  %v1073_v58 = vmax.f32 %v1010_v47, 0.0  ;;  %vm1276_vm2 = vcmp.lt.s32.totalorder %v1213_v35, 1000  ;;  %v1152_v48 = vadd.s32 472, %v3342_v43 }
 0x144   : > { %v1076_v56 = vmax.f32 %v1013_v49, 0.0  ;;  %vm1275_vm1 = vcmp.lt.s32.totalorder %v1212_v31, 1000  ;;  %v1215_v57 = vadd.s32 %v3351_v46, %v1150_v40  ;;  %vm2309_vm0 = vcmask 1040384  }
 0x145   : > { %v1074_v59 = vmax.f32 %v1011_v53, 0.0  ;;  %v3022_v60 = vpop.f32.mrb[48].mxu0  ;;  %vm2566_vm4 = vmpackc.low %vm1276_vm2, %vm1275_vm1  ;;  %v1217_v1 = vadd.s32 %v3351_v46, %v1152_v48  ;;  %vm2311_vm1 = vcmask 1041408  }
 0x146   : > { %v2555_v61 = vpack.c.bf16 %v1076_v56, %v1075_v55  ;;  %v946_v62 = vmul.f32 %v3022_v60, %v3349_v45  ;;  %v827_v63 = vpop.f32.mrb[49].mxu0  ;;  %v1214_v56 = vadd.s32 %v3351_v46, %v1149_v39  ;;  %vm1278_vm6 = vcmp.lt.s32.totalorder %v1215_v57, 1000 }
 0x147   : > { %v2552_v2 = vpack.c.bf16 %v1074_v59, %v1073_v58  ;;  %v944_v3 = vmul.f32 %v3349_v45, %v827_v63  ;;  %v3023_v4 = vpop.f32.mrb[50].mxu0 }
 0x148   : > { %v1016_v6 = vadd.f32 %v3358_v50, %v946_v62  ;;  %v947_v7 = vmul.f32 %v3023_v4, %v3349_v45  ;;  %v830_v8 = vpop.f32.mrb[51].mxu0  ;;  %vm1277_vm5 = vcmp.lt.s32.totalorder %v1214_v56, 1000 }
 0x149   : > { %v1014_v10 = vadd.f32 %v3358_v50, %v944_v3  ;;  %v945_v11 = vmul.f32 %v3349_v45, %v830_v8  ;;  %3096 = vmatprep.mubr.msk.bf16.mxu1 %vm2551_vm7, %v2552_v2  ;;  %vm2569_vm9 = vmpackc.low %vm1278_vm6, %vm1277_vm5 }
 0x14a   : > { %v1017_v12 = vadd.f32 %v3358_v50, %v947_v7  ;;  %3097 = vmatmul.mubr.msk.bf16.gmra.mrb[40].mxu1 %vm2554_vm8, %v2555_v61  ;;  %v1079_v17 = vmax.f32 %v1016_v6, 0.0  ;;  %v1216_v61 = vadd.s32 %v3351_v46, %v1151_v42  ;;  %v1153_v6 = vadd.s32 480, %v3342_v43 }
 0x14b   : > { %v1015_v14 = vadd.f32 %v3358_v50, %v945_v11  ;;  %v1077_v20 = vmax.f32 %v1014_v10, 0.0  ;;  %v1154_v7 = vadd.s32 488, %v3342_v43  ;;  %vm1280_vm8 = vcmp.lt.s32.totalorder %v1217_v1, 1000 }
 0x14c   : > { %v1080_v18 = vmax.f32 %v1017_v12, 0.0  ;;  %vm1279_vm7 = vcmp.lt.s32.totalorder %v1216_v61, 1000  ;;  %v1155_v10 = vadd.s32 496, %v3342_v43  ;;  %v1218_v43 = vadd.s32 %v3351_v46, %v1153_v6 }
 0x14d   : > { %v1078_v21 = vmax.f32 %v1015_v14, 0.0  ;;  %v3026_v22 = vpop.f32.mrb[52].mxu0  ;;  %vm2572_vm10 = vmpackc.low %vm1280_vm8, %vm1279_vm7 }
 0x14e   : > { %v2561_v23 = vpack.c.bf16 %v1080_v18, %v1079_v17  ;;  %v950_v24 = vmul.f32 %v3026_v22, %v3349_v45  ;;  %v843_v25 = vpop.f32.mrb[53].mxu0  ;;  %v3182_v17 = vld [vmem:[%s3697_s2] ss:$0 sm:$0xff]  ;;  %vm1281_vm11 = vcmp.lt.s32.totalorder %v1218_v43, 1000 }
 0x14f   : > { %v2558_v27 = vpack.c.bf16 %v1078_v21, %v1077_v20  ;;  %v948_v28 = vmul.f32 %v3349_v45, %v843_v25  ;;  %v3027_v29 = vpop.f32.mrb[54].mxu0  ;;  %v1219_v20 = vadd.s32 %v3351_v46, %v1154_v7 }
 0x150   : > { %v1020_v32 = vadd.f32 %v3358_v50, %v950_v24  ;;  %v951_v33 = vmul.f32 %v3027_v29, %v3349_v45  ;;  %v846_v34 = vpop.f32.mrb[55].mxu0 }
 0x151   : > { %v1018_v36 = vadd.f32 %v3358_v50, %v948_v28  ;;  %v949_v37 = vmul.f32 %v3349_v45, %v846_v34  ;;  %3100 = vmatprep.mubr.msk.bf16.mxu1 %vm2557_vm13, %v2558_v27  ;;  %vm1282_vm12 = vcmp.lt.s32.totalorder %v1219_v20, 1000 }
 0x152   : > { %v1021_v38 = vadd.f32 %v3358_v50, %v951_v33  ;;  %3101 = vmatmul.mubr.msk.bf16.gmra.mrb[44].mxu1 %vm2560_vm14, %v2561_v23  ;;  %v1083_v44 = vmax.f32 %v1020_v32, 0.0  ;;  %v1220_v23 = vadd.s32 %v3351_v46, %v1155_v10  ;;  %vm2575_vm14 = vmpackc.low %vm1282_vm12, %vm1281_vm11 }
 0x153   : > { %v1019_v41 = vadd.f32 %v3358_v50, %v949_v37  ;;  %v1081_v49 = vmax.f32 %v1018_v36, 0.0 }
 0x154   : > { %v1084_v47 = vmax.f32 %v1021_v38, 0.0  ;;  %vm1283_vm13 = vcmp.lt.s32.totalorder %v1220_v23, 1000 }
 0x155   : > { %v1082_v51 = vmax.f32 %v1019_v41, 0.0  ;;  %v3030_v52 = vpop.f32.mrb[56].mxu0  ;;  %vm2578_vm15 = vmpackc.low %vm1283_vm13, %vm1283_vm13 }
 0x156   : > { %v2567_v53 = vpack.c.bf16 %v1084_v47, %v1083_v44  ;;  %v954_v54 = vmul.f32 %v3030_v52, %v3349_v45  ;;  %v859_v55 = vpop.f32.mrb[57].mxu0 }
 0x157   : > { %v2564_v58 = vpack.c.bf16 %v1082_v51, %v1081_v49  ;;  %v952_v59 = vmul.f32 %v3349_v45, %v859_v55  ;;  %v3031_v60 = vpop.f32.mrb[58].mxu0 }
 0x158   : > { %v1024_v62 = vadd.f32 %v3358_v50, %v954_v54  ;;  %v955_v63 = vmul.f32 %v3031_v60, %v3349_v45  ;;  %v862_v0 = vpop.f32.mrb[59].mxu0 }
 0x159   : > { %v1022_v2 = vadd.f32 %v3358_v50, %v952_v59  ;;  %v953_v3 = vmul.f32 %v3349_v45, %v862_v0  ;;  %3104 = vmatprep.mubr.msk.bf16.mxu1 %vm2563_vm3, %v2564_v58 }
 0x15a   : > { %v1025_v4 = vadd.f32 %v3358_v50, %v955_v63  ;;  %3105 = vmatmul.mubr.msk.bf16.gmra.mrb[48].mxu1 %vm2566_vm4, %v2567_v53  ;;  %v1087_v8 = vmax.f32 %v1024_v62, 0.0 }
 0x15b   : > { %v1023_v5 = vadd.f32 %v3358_v50, %v953_v3  ;;  %v1085_v11 = vmax.f32 %v1022_v2, 0.0 }
 0x15c   : > { %v1088_v9 = vmax.f32 %v1025_v4, 0.0 }
 0x15d   : > { %v1086_v12 = vmax.f32 %v1023_v5, 0.0  ;;  %v3034_v13 = vpop.f32.mrb[60].mxu0 }
 0x15e   : > { %v2573_v14 = vpack.c.bf16 %v1088_v9, %v1087_v8  ;;  %v958_v15 = vmul.f32 %v3034_v13, %v3349_v45  ;;  %v875_v16 = vpop.f32.mrb[61].mxu0  ;;  %v3183_v45 = vld [vmem:[%s3698_s3] ss:$0 sm:$0xff] }
 0x15f   : > { %v2570_v50 = vpack.c.bf16 %v1086_v12, %v1085_v11  ;;  %v956_v18 = vmul.f32 %v3182_v17, %v875_v16  ;;  %v3035_v19 = vpop.f32.mrb[62].mxu0 }
 0x160   : > { %v1028_v21 = vadd.f32 %v3183_v45, %v958_v15  ;;  %v878_v22 = vpop.f32.mrb[63].mxu0 }
 0x161   : > { %v1026_v24 = vadd.f32 %v3183_v45, %v956_v18  ;;  %v957_v25 = vmul.f32 %v3182_v17, %v878_v22  ;;  %3108 = vmatprep.mubr.msk.bf16.mxu1 %vm2569_vm9, %v2570_v50 }
 0x162   : > { %3109 = vmatmul.mubr.msk.bf16.gmra.mrb[52].mxu1 %vm2572_vm10, %v2573_v14  ;;  %v1091_v27 = vmax.f32 %v1028_v21, 0.0 }
 0x163   : > { %v1027_v26 = vadd.f32 %v3183_v45, %v957_v25  ;;  %v1089_v28 = vmax.f32 %v1026_v24, 0.0 }
 0x164   : > { %v2579_v31 = vpack.c.bf16 %v1091_v27, %v1091_v27 }
 0x165   : > { %v1090_v29 = vmax.f32 %v1027_v26, 0.0 }
 0x167   : > { %v2576_v30 = vpack.c.bf16 %v1090_v29, %v1089_v28 }
 0x169   : > { %3112 = vmatprep.mubr.msk.bf16.mxu1 %vm2575_vm14, %v2576_v30 }
 0x16a   : > { %3113 = vmatmul.mubr.msk.bf16.gmra.mrb[56].mxu1 %vm2578_vm15, %v2579_v31 }
 0x1c5   : > { %v3054_v32 = vpop.f32.mrb[64].mxu0 }
 0x1c6   : > { %v1477_v46 = vpop.f32.mrb[65].mxu0 }
 0x1c7   : > { %v3055_v33 = vpop.f32.mrb[66].mxu0 }
 0x1c8   : > { %v1732_v34 = vpack.c.bf16 %v3055_v33, %v3054_v32  ;;  %v1480_v35 = vpop.f32.mrb[67].mxu0 }
 0x1c9   : > { %v1731_v36 = vpack.c.bf16 %v1480_v35, %v1477_v46 }
 0x1ca   : > { %2864 = vst [vmem:[%s3653_s15 + $0x8] sm:$0xff] %v1732_v34   ;;  %v2049_v37 = vunpack.c.l.bf16 %v1732_v34  ;;  %v2050_v40 = vunpack.c.h.bf16 %v1732_v34 }
 0x1cb   : > { %2713 = vst [vmem:[%s3653_s15] sm:$0xff] %v1731_v36   ;;  %v2047_v38 = vunpack.c.l.bf16 %v1731_v36  ;;  %v2048_v39 = vunpack.c.h.bf16 %v1731_v36 }
 0x1cc   : > { %v2180_v49 = vmul.f32 %v2049_v37, %v2049_v37  ;;  %v2181_v56 = vmul.f32 %v2050_v40, %v2050_v40 }
 0x1cd   : > { %v2110_v41 = vadd.f32 %v2048_v39, %v2047_v38  ;;  %v2178_v42 = vmul.f32 %v2047_v38, %v2047_v38  ;;  %v2179_v44 = vmul.f32 %v2048_v39, %v2048_v39  ;;  %v3058_v47 = vpop.f32.mrb[0].mxu1 }
 0x1ce   : > { %v1493_v48 = vpop.f32.mrb[1].mxu1 }
 0x1cf   : > { %v2111_v51 = vadd.f32 %v2110_v41, %v2049_v37  ;;  %v2241_v52 = vadd.f32 %v2179_v44, %v2178_v42  ;;  %v3059_v53 = vpop.f32.mrb[2].mxu1 }
 0x1d0   : > { %v1734_v54 = vpack.c.bf16 %v3059_v53, %v3058_v47  ;;  %v1496_v55 = vpop.f32.mrb[3].mxu1 }
 0x1d1   : > { %v2242_v57 = vadd.f32 %v2241_v52, %v2180_v49  ;;  %v1733_v58 = vpack.c.bf16 %v1496_v55, %v1493_v48  ;;  %v2112_v59 = vadd.f32 %v2111_v51, %v2050_v40 }
 0x1d2   : > { %2866 = vst [vmem:[%s3653_s15 + $0x18] sm:$0xff] %v1734_v54   ;;  %v2053_v63 = vunpack.c.l.bf16 %v1734_v54  ;;  %v2054_v3 = vunpack.c.h.bf16 %v1734_v54 }
 0x1d3   : > { %2865 = vst [vmem:[%s3653_s15 + $0x10] sm:$0xff] %v1733_v58   ;;  %v2051_v60 = vunpack.c.l.bf16 %v1733_v58  ;;  %v2052_v61 = vunpack.c.h.bf16 %v1733_v58  ;;  %v2243_v62 = vadd.f32 %v2242_v57, %v2181_v56 }
 0x1d4   : > { %v2184_v11 = vmul.f32 %v2053_v63, %v2053_v63  ;;  %v2185_v15 = vmul.f32 %v2054_v3, %v2054_v3 }
 0x1d5   : > { %v2113_v0 = vadd.f32 %v2112_v59, %v2051_v60  ;;  %v2182_v1 = vmul.f32 %v2051_v60, %v2051_v60  ;;  %v3062_v2 = vpop.f32.mrb[4].mxu1  ;;  %v2183_v6 = vmul.f32 %v2052_v61, %v2052_v61 }
 0x1d6   : > { %v1509_v4 = vpop.f32.mrb[5].mxu1 }
 0x1d7   : > { %v2114_v5 = vadd.f32 %v2113_v0, %v2052_v61  ;;  %v2244_v7 = vadd.f32 %v2243_v62, %v2182_v1  ;;  %v3063_v8 = vpop.f32.mrb[6].mxu1 }
 0x1d8   : > { %v1736_v9 = vpack.c.bf16 %v3063_v8, %v3062_v2  ;;  %v1512_v10 = vpop.f32.mrb[7].mxu1 }
 0x1d9   : > { %v2115_v12 = vadd.f32 %v2114_v5, %v2053_v63  ;;  %v2245_v13 = vadd.f32 %v2244_v7, %v2183_v6  ;;  %v1735_v14 = vpack.c.bf16 %v1512_v10, %v1509_v4 }
 0x1da   : > { %2868 = vst [vmem:[%s3653_s15 + $0x28] sm:$0xff] %v1736_v9   ;;  %v2057_v19 = vunpack.c.l.bf16 %v1736_v9  ;;  %v2058_v22 = vunpack.c.h.bf16 %v1736_v9 }
 0x1db   : > { %v2246_v16 = vadd.f32 %v2245_v13, %v2184_v11  ;;  %2867 = vst [vmem:[%s3653_s15 + $0x20] sm:$0xff] %v1735_v14   ;;  %v2055_v50 = vunpack.c.l.bf16 %v1735_v14  ;;  %v2056_v17 = vunpack.c.h.bf16 %v1735_v14  ;;  %v2116_v18 = vadd.f32 %v2115_v12, %v2054_v3 }
 0x1dc   : > { %v2188_v30 = vmul.f32 %v2057_v19, %v2057_v19  ;;  %v2189_v33 = vmul.f32 %v2058_v22, %v2058_v22 }
 0x1dd   : > { %v2117_v43 = vadd.f32 %v2116_v18, %v2055_v50  ;;  %v2186_v20 = vmul.f32 %v2055_v50, %v2055_v50  ;;  %v2247_v45 = vadd.f32 %v2246_v16, %v2185_v15  ;;  %v3066_v21 = vpop.f32.mrb[8].mxu1  ;;  %v2187_v25 = vmul.f32 %v2056_v17, %v2056_v17 }
 0x1de   : > { %v1525_v23 = vpop.f32.mrb[9].mxu1 }
 0x1df   : > { %v2118_v24 = vadd.f32 %v2117_v43, %v2056_v17  ;;  %v2248_v26 = vadd.f32 %v2247_v45, %v2186_v20  ;;  %v3067_v27 = vpop.f32.mrb[10].mxu1 }
 0x1e0   : > { %v1738_v28 = vpack.c.bf16 %v3067_v27, %v3066_v21  ;;  %v1528_v29 = vpop.f32.mrb[11].mxu1 }
 0x1e1   : > { %v2119_v31 = vadd.f32 %v2118_v24, %v2057_v19  ;;  %v2249_v32 = vadd.f32 %v2248_v26, %v2187_v25  ;;  %v1737_v46 = vpack.c.bf16 %v1528_v29, %v1525_v23 }
 0x1e2   : > { %2870 = vst [vmem:[%s3653_s15 + $0x38] sm:$0xff] %v1738_v28   ;;  %v2061_v38 = vunpack.c.l.bf16 %v1738_v28  ;;  %v2062_v44 = vunpack.c.h.bf16 %v1738_v28 }
 0x1e3   : > { %v2250_v34 = vadd.f32 %v2249_v32, %v2188_v30  ;;  %2869 = vst [vmem:[%s3653_s15 + $0x30] sm:$0xff] %v1737_v46   ;;  %v2059_v35 = vunpack.c.l.bf16 %v1737_v46  ;;  %v2060_v36 = vunpack.c.h.bf16 %v1737_v46  ;;  %v2120_v37 = vadd.f32 %v2119_v31, %v2058_v22 }
 0x1e4   : > { %v2192_v55 = vmul.f32 %v2061_v38, %v2061_v38  ;;  %v2193_v59 = vmul.f32 %v2062_v44, %v2062_v44 }
 0x1e5   : > { %v2121_v39 = vadd.f32 %v2120_v37, %v2059_v35  ;;  %v2190_v40 = vmul.f32 %v2059_v35, %v2059_v35  ;;  %v2251_v41 = vadd.f32 %v2250_v34, %v2189_v33  ;;  %v3070_v42 = vpop.f32.mrb[12].mxu1  ;;  %v2191_v49 = vmul.f32 %v2060_v36, %v2060_v36 }
 0x1e6   : > { %v1541_v47 = vpop.f32.mrb[13].mxu1 }
 0x1e7   : > { %v2122_v48 = vadd.f32 %v2121_v39, %v2060_v36  ;;  %v2252_v51 = vadd.f32 %v2251_v41, %v2190_v40  ;;  %v3071_v52 = vpop.f32.mrb[14].mxu1 }
 0x1e8   : > { %v1740_v53 = vpack.c.bf16 %v3071_v52, %v3070_v42  ;;  %v1544_v54 = vpop.f32.mrb[15].mxu1 }
 0x1e9   : > { %v2123_v56 = vadd.f32 %v2122_v48, %v2061_v38  ;;  %v2253_v57 = vadd.f32 %v2252_v51, %v2191_v49  ;;  %v1739_v58 = vpack.c.bf16 %v1544_v54, %v1541_v47 }
 0x1ea   : > { %2872 = vst [vmem:[%s3653_s15 + $0x48] sm:$0xff] %v1740_v53   ;;  %v2065_v0 = vunpack.c.l.bf16 %v1740_v53  ;;  %v2066_v5 = vunpack.c.h.bf16 %v1740_v53 }
 0x1eb   : > { %v2254_v60 = vadd.f32 %v2253_v57, %v2192_v55  ;;  %2871 = vst [vmem:[%s3653_s15 + $0x40] sm:$0xff] %v1739_v58   ;;  %v2063_v61 = vunpack.c.l.bf16 %v1739_v58  ;;  %v2064_v62 = vunpack.c.h.bf16 %v1739_v58  ;;  %v2124_v63 = vadd.f32 %v2123_v56, %v2062_v44 }
 0x1ec   : > { %v2196_v13 = vmul.f32 %v2065_v0, %v2065_v0  ;;  %v2197_v50 = vmul.f32 %v2066_v5, %v2066_v5 }
 0x1ed   : > { %v2125_v1 = vadd.f32 %v2124_v63, %v2063_v61  ;;  %v2194_v2 = vmul.f32 %v2063_v61, %v2063_v61  ;;  %v2255_v3 = vadd.f32 %v2254_v60, %v2193_v59  ;;  %v3074_v4 = vpop.f32.mrb[16].mxu1  ;;  %v2195_v8 = vmul.f32 %v2064_v62, %v2064_v62 }
 0x1ee   : > { %v1557_v6 = vpop.f32.mrb[17].mxu1 }
 0x1ef   : > { %v2126_v7 = vadd.f32 %v2125_v1, %v2064_v62  ;;  %v2256_v9 = vadd.f32 %v2255_v3, %v2194_v2  ;;  %v3075_v10 = vpop.f32.mrb[18].mxu1 }
 0x1f0   : > { %v1742_v11 = vpack.c.bf16 %v3075_v10, %v3074_v4  ;;  %v1560_v12 = vpop.f32.mrb[19].mxu1 }
 0x1f1   : > { %v2127_v14 = vadd.f32 %v2126_v7, %v2065_v0  ;;  %v2257_v15 = vadd.f32 %v2256_v9, %v2195_v8  ;;  %v1741_v16 = vpack.c.bf16 %v1560_v12, %v1557_v6 }
 0x1f2   : > { %2874 = vst [vmem:[%s3653_s15 + $0x58] sm:$0xff] %v1742_v11   ;;  %v2069_v20 = vunpack.c.l.bf16 %v1742_v11  ;;  %v2070_v24 = vunpack.c.h.bf16 %v1742_v11 }
 0x1f3   : > { %v2258_v17 = vadd.f32 %v2257_v15, %v2196_v13  ;;  %2873 = vst [vmem:[%s3653_s15 + $0x50] sm:$0xff] %v1741_v16   ;;  %v2067_v18 = vunpack.c.l.bf16 %v1741_v16  ;;  %v2068_v19 = vunpack.c.h.bf16 %v1741_v16  ;;  %v2128_v43 = vadd.f32 %v2127_v14, %v2066_v5 }
 0x1f4   : > { %v2200_v32 = vmul.f32 %v2069_v20, %v2069_v20  ;;  %v2201_v35 = vmul.f32 %v2070_v24, %v2070_v24 }
 0x1f5   : > { %v2129_v45 = vadd.f32 %v2128_v43, %v2067_v18  ;;  %v2198_v21 = vmul.f32 %v2067_v18, %v2067_v18  ;;  %v2259_v22 = vadd.f32 %v2258_v17, %v2197_v50  ;;  %v3078_v23 = vpop.f32.mrb[20].mxu1  ;;  %v2199_v27 = vmul.f32 %v2068_v19, %v2068_v19 }
 0x1f6   : > { %v1573_v25 = vpop.f32.mrb[21].mxu1 }
 0x1f7   : > { %v2130_v26 = vadd.f32 %v2129_v45, %v2068_v19  ;;  %v2260_v28 = vadd.f32 %v2259_v22, %v2198_v21  ;;  %v3079_v29 = vpop.f32.mrb[22].mxu1 }
 0x1f8   : > { %v1744_v30 = vpack.c.bf16 %v3079_v29, %v3078_v23  ;;  %v1576_v31 = vpop.f32.mrb[23].mxu1 }
 0x1f9   : > { %v2131_v46 = vadd.f32 %v2130_v26, %v2069_v20  ;;  %v2261_v33 = vadd.f32 %v2260_v28, %v2199_v27  ;;  %v1743_v34 = vpack.c.bf16 %v1576_v31, %v1573_v25 }
 0x1fa   : > { %2876 = vst [vmem:[%s3653_s15 + $0x68] sm:$0xff] %v1744_v30   ;;  %v2073_v40 = vunpack.c.l.bf16 %v1744_v30  ;;  %v2074_v48 = vunpack.c.h.bf16 %v1744_v30 }
 0x1fb   : > { %v2262_v36 = vadd.f32 %v2261_v33, %v2200_v32  ;;  %2875 = vst [vmem:[%s3653_s15 + $0x60] sm:$0xff] %v1743_v34   ;;  %v2071_v37 = vunpack.c.l.bf16 %v1743_v34  ;;  %v2072_v38 = vunpack.c.h.bf16 %v1743_v34  ;;  %v2132_v39 = vadd.f32 %v2131_v46, %v2070_v24 }
 0x1fc   : > { %v2204_v57 = vmul.f32 %v2073_v40, %v2073_v40  ;;  %v2205_v61 = vmul.f32 %v2074_v48, %v2074_v48 }
 0x1fd   : > { %v2133_v41 = vadd.f32 %v2132_v39, %v2071_v37  ;;  %v2202_v42 = vmul.f32 %v2071_v37, %v2071_v37  ;;  %v2263_v44 = vadd.f32 %v2262_v36, %v2201_v35  ;;  %v3082_v47 = vpop.f32.mrb[24].mxu1  ;;  %v2203_v52 = vmul.f32 %v2072_v38, %v2072_v38 }
 0x1fe   : > { %v1589_v49 = vpop.f32.mrb[25].mxu1 }
 0x1ff   : > { %v2134_v51 = vadd.f32 %v2133_v41, %v2072_v38  ;;  %v2264_v53 = vadd.f32 %v2263_v44, %v2202_v42  ;;  %v3083_v54 = vpop.f32.mrb[26].mxu1 }
 0x200   : > { %v1746_v55 = vpack.c.bf16 %v3083_v54, %v3082_v47  ;;  %v1592_v56 = vpop.f32.mrb[27].mxu1 }
 0x201   : > { %v2135_v58 = vadd.f32 %v2134_v51, %v2073_v40  ;;  %v2265_v59 = vadd.f32 %v2264_v53, %v2203_v52  ;;  %v1745_v60 = vpack.c.bf16 %v1592_v56, %v1589_v49 }
 0x202   : > { %2878 = vst [vmem:[%s3653_s15 + $0x78] sm:$0xff] %v1746_v55   ;;  %v2077_v2 = vunpack.c.l.bf16 %v1746_v55  ;;  %v2078_v7 = vunpack.c.h.bf16 %v1746_v55 }
 0x203   : > { %v2266_v62 = vadd.f32 %v2265_v59, %v2204_v57  ;;  %2877 = vst [vmem:[%s3653_s15 + $0x70] sm:$0xff] %v1745_v60   ;;  %v2075_v63 = vunpack.c.l.bf16 %v1745_v60  ;;  %v2076_v0 = vunpack.c.h.bf16 %v1745_v60  ;;  %v2136_v1 = vadd.f32 %v2135_v58, %v2074_v48 }
 0x204   : > { %v2208_v15 = vmul.f32 %v2077_v2, %v2077_v2  ;;  %v2209_v18 = vmul.f32 %v2078_v7, %v2078_v7 }
 0x205   : > { %v2137_v3 = vadd.f32 %v2136_v1, %v2075_v63  ;;  %v2206_v4 = vmul.f32 %v2075_v63, %v2075_v63  ;;  %v2267_v5 = vadd.f32 %v2266_v62, %v2205_v61  ;;  %v3086_v6 = vpop.f32.mrb[28].mxu1  ;;  %v2207_v10 = vmul.f32 %v2076_v0, %v2076_v0 }
 0x206   : > { %v1605_v8 = vpop.f32.mrb[29].mxu1 }
 0x207   : > { %v2138_v9 = vadd.f32 %v2137_v3, %v2076_v0  ;;  %v2268_v11 = vadd.f32 %v2267_v5, %v2206_v4  ;;  %v3087_v12 = vpop.f32.mrb[30].mxu1 }
 0x208   : > { %v1748_v13 = vpack.c.bf16 %v3087_v12, %v3086_v6  ;;  %v1608_v14 = vpop.f32.mrb[31].mxu1 }
 0x209   : > { %v2139_v16 = vadd.f32 %v2138_v9, %v2077_v2  ;;  %v2269_v50 = vadd.f32 %v2268_v11, %v2207_v10  ;;  %v1747_v17 = vpack.c.bf16 %v1608_v14, %v1605_v8 }
 0x20a   : > { %2880 = vst [vmem:[%s3653_s15 + $0x88] sm:$0xff] %v1748_v13   ;;  %v2081_v21 = vunpack.c.l.bf16 %v1748_v13  ;;  %v2082_v26 = vunpack.c.h.bf16 %v1748_v13 }
 0x20b   : > { %v2270_v19 = vadd.f32 %v2269_v50, %v2208_v15  ;;  %2879 = vst [vmem:[%s3653_s15 + $0x80] sm:$0xff] %v1747_v17   ;;  %v2079_v43 = vunpack.c.l.bf16 %v1747_v17  ;;  %v2080_v20 = vunpack.c.h.bf16 %v1747_v17  ;;  %v2140_v45 = vadd.f32 %v2139_v16, %v2078_v7 }
 0x20c   : > { %v2212_v33 = vmul.f32 %v2081_v21, %v2081_v21  ;;  %v2213_v37 = vmul.f32 %v2082_v26, %v2082_v26 }
 0x20d   : > { %v2141_v22 = vadd.f32 %v2140_v45, %v2079_v43  ;;  %v2210_v23 = vmul.f32 %v2079_v43, %v2079_v43  ;;  %v2271_v24 = vadd.f32 %v2270_v19, %v2209_v18  ;;  %v3090_v25 = vpop.f32.mrb[32].mxu1  ;;  %v2211_v29 = vmul.f32 %v2080_v20, %v2080_v20 }
 0x20e   : > { %v1621_v27 = vpop.f32.mrb[33].mxu1 }
 0x20f   : > { %v2142_v28 = vadd.f32 %v2141_v22, %v2080_v20  ;;  %v2272_v30 = vadd.f32 %v2271_v24, %v2210_v23  ;;  %v3091_v31 = vpop.f32.mrb[34].mxu1 }
 0x210   : > { %v1750_v32 = vpack.c.bf16 %v3091_v31, %v3090_v25  ;;  %v1624_v46 = vpop.f32.mrb[35].mxu1 }
 0x211   : > { %v2143_v34 = vadd.f32 %v2142_v28, %v2081_v21  ;;  %v2273_v35 = vadd.f32 %v2272_v30, %v2211_v29  ;;  %v1749_v36 = vpack.c.bf16 %v1624_v46, %v1621_v27 }
 0x212   : > { %2882 = vst [vmem:[%s3653_s15 + $0x98] sm:$0xff] %v1750_v32   ;;  %v2085_v42 = vunpack.c.l.bf16 %v1750_v32  ;;  %v2086_v51 = vunpack.c.h.bf16 %v1750_v32 }
 0x213   : > { %v2274_v38 = vadd.f32 %v2273_v35, %v2212_v33  ;;  %2881 = vst [vmem:[%s3653_s15 + $0x90] sm:$0xff] %v1749_v36   ;;  %v2083_v39 = vunpack.c.l.bf16 %v1749_v36  ;;  %v2084_v40 = vunpack.c.h.bf16 %v1749_v36  ;;  %v2144_v41 = vadd.f32 %v2143_v34, %v2082_v26 }
 0x214   : > { %v2216_v59 = vmul.f32 %v2085_v42, %v2085_v42  ;;  %v2217_v63 = vmul.f32 %v2086_v51, %v2086_v51 }
 0x215   : > { %v2145_v44 = vadd.f32 %v2144_v41, %v2083_v39  ;;  %v2214_v47 = vmul.f32 %v2083_v39, %v2083_v39  ;;  %v2275_v48 = vadd.f32 %v2274_v38, %v2213_v37  ;;  %v3094_v49 = vpop.f32.mrb[36].mxu1  ;;  %v2215_v54 = vmul.f32 %v2084_v40, %v2084_v40 }
 0x216   : > { %v1637_v52 = vpop.f32.mrb[37].mxu1 }
 0x217   : > { %v2146_v53 = vadd.f32 %v2145_v44, %v2084_v40  ;;  %v2276_v55 = vadd.f32 %v2275_v48, %v2214_v47  ;;  %v3095_v56 = vpop.f32.mrb[38].mxu1 }
 0x218   : > { %v1752_v57 = vpack.c.bf16 %v3095_v56, %v3094_v49  ;;  %v1640_v58 = vpop.f32.mrb[39].mxu1 }
 0x219   : > { %v2147_v60 = vadd.f32 %v2146_v53, %v2085_v42  ;;  %v2277_v61 = vadd.f32 %v2276_v55, %v2215_v54  ;;  %v1751_v62 = vpack.c.bf16 %v1640_v58, %v1637_v52 }
 0x21a   : > { %2884 = vst [vmem:[%s3653_s15 + $0xa8] sm:$0xff] %v1752_v57   ;;  %v2089_v4 = vunpack.c.l.bf16 %v1752_v57  ;;  %v2090_v9 = vunpack.c.h.bf16 %v1752_v57 }
 0x21b   : > { %v2278_v0 = vadd.f32 %v2277_v61, %v2216_v59  ;;  %2883 = vst [vmem:[%s3653_s15 + $0xa0] sm:$0xff] %v1751_v62   ;;  %v2087_v1 = vunpack.c.l.bf16 %v1751_v62  ;;  %v2088_v2 = vunpack.c.h.bf16 %v1751_v62  ;;  %v2148_v3 = vadd.f32 %v2147_v60, %v2086_v51 }
 0x21c   : > { %v2220_v50 = vmul.f32 %v2089_v4, %v2089_v4  ;;  %v2221_v43 = vmul.f32 %v2090_v9, %v2090_v9 }
 0x21d   : > { %v2149_v5 = vadd.f32 %v2148_v3, %v2087_v1  ;;  %v2218_v6 = vmul.f32 %v2087_v1, %v2087_v1  ;;  %v2279_v7 = vadd.f32 %v2278_v0, %v2217_v63  ;;  %v3098_v8 = vpop.f32.mrb[40].mxu1  ;;  %v2219_v12 = vmul.f32 %v2088_v2, %v2088_v2 }
 0x21e   : > { %v1653_v10 = vpop.f32.mrb[41].mxu1 }
 0x21f   : > { %v2150_v11 = vadd.f32 %v2149_v5, %v2088_v2  ;;  %v2280_v13 = vadd.f32 %v2279_v7, %v2218_v6  ;;  %v3099_v14 = vpop.f32.mrb[42].mxu1 }
 0x220   : > { %v1754_v15 = vpack.c.bf16 %v3099_v14, %v3098_v8  ;;  %v1656_v16 = vpop.f32.mrb[43].mxu1 }
 0x221   : > { %v2151_v17 = vadd.f32 %v2150_v11, %v2089_v4  ;;  %v2281_v18 = vadd.f32 %v2280_v13, %v2219_v12  ;;  %v1753_v19 = vpack.c.bf16 %v1656_v16, %v1653_v10 }
 0x222   : > { %2886 = vst [vmem:[%s3653_s15 + $0xb8] sm:$0xff] %v1754_v15   ;;  %v2093_v23 = vunpack.c.l.bf16 %v1754_v15  ;;  %v2094_v28 = vunpack.c.h.bf16 %v1754_v15 }
 0x223   : > { %v2282_v20 = vadd.f32 %v2281_v18, %v2220_v50  ;;  %2885 = vst [vmem:[%s3653_s15 + $0xb0] sm:$0xff] %v1753_v19   ;;  %v2091_v45 = vunpack.c.l.bf16 %v1753_v19  ;;  %v2092_v21 = vunpack.c.h.bf16 %v1753_v19  ;;  %v2152_v22 = vadd.f32 %v2151_v17, %v2090_v9 }
 0x224   : > { %v2224_v35 = vmul.f32 %v2093_v23, %v2093_v23  ;;  %v2225_v39 = vmul.f32 %v2094_v28, %v2094_v28 }
 0x225   : > { %v2153_v24 = vadd.f32 %v2152_v22, %v2091_v45  ;;  %v2222_v25 = vmul.f32 %v2091_v45, %v2091_v45  ;;  %v2283_v26 = vadd.f32 %v2282_v20, %v2221_v43  ;;  %v3102_v27 = vpop.f32.mrb[44].mxu1  ;;  %v2223_v31 = vmul.f32 %v2092_v21, %v2092_v21 }
 0x226   : > { %v1669_v29 = vpop.f32.mrb[45].mxu1 }
 0x227   : > { %v2154_v30 = vadd.f32 %v2153_v24, %v2092_v21  ;;  %v2284_v32 = vadd.f32 %v2283_v26, %v2222_v25  ;;  %v3103_v46 = vpop.f32.mrb[46].mxu1 }
 0x228   : > { %v1756_v33 = vpack.c.bf16 %v3103_v46, %v3102_v27  ;;  %v1672_v34 = vpop.f32.mrb[47].mxu1 }
 0x229   : > { %v2155_v36 = vadd.f32 %v2154_v30, %v2093_v23  ;;  %v2285_v37 = vadd.f32 %v2284_v32, %v2223_v31  ;;  %v1755_v38 = vpack.c.bf16 %v1672_v34, %v1669_v29 }
 0x22a   : > { %2888 = vst [vmem:[%s3653_s15 + $0xc8] sm:$0xff] %v1756_v33   ;;  %v2097_v47 = vunpack.c.l.bf16 %v1756_v33  ;;  %v2098_v53 = vunpack.c.h.bf16 %v1756_v33 }
 0x22b   : > { %v2286_v40 = vadd.f32 %v2285_v37, %v2224_v35  ;;  %2887 = vst [vmem:[%s3653_s15 + $0xc0] sm:$0xff] %v1755_v38   ;;  %v2095_v41 = vunpack.c.l.bf16 %v1755_v38  ;;  %v2096_v42 = vunpack.c.h.bf16 %v1755_v38  ;;  %v2156_v44 = vadd.f32 %v2155_v36, %v2094_v28 }
 0x22c   : > { %v2228_v61 = vmul.f32 %v2097_v47, %v2097_v47  ;;  %v2229_v1 = vmul.f32 %v2098_v53, %v2098_v53 }
 0x22d   : > { %v2157_v48 = vadd.f32 %v2156_v44, %v2095_v41  ;;  %v2226_v49 = vmul.f32 %v2095_v41, %v2095_v41  ;;  %v2287_v51 = vadd.f32 %v2286_v40, %v2225_v39  ;;  %v3106_v52 = vpop.f32.mrb[48].mxu1  ;;  %v2227_v56 = vmul.f32 %v2096_v42, %v2096_v42 }
 0x22e   : > { %v1685_v54 = vpop.f32.mrb[49].mxu1 }
 0x22f   : > { %v2158_v55 = vadd.f32 %v2157_v48, %v2096_v42  ;;  %v2288_v57 = vadd.f32 %v2287_v51, %v2226_v49  ;;  %v3107_v58 = vpop.f32.mrb[50].mxu1 }
 0x230   : > { %v1758_v59 = vpack.c.bf16 %v3107_v58, %v3106_v52  ;;  %v1688_v60 = vpop.f32.mrb[51].mxu1 }
 0x231   : > { %v2159_v62 = vadd.f32 %v2158_v55, %v2097_v47  ;;  %v2289_v63 = vadd.f32 %v2288_v57, %v2227_v56  ;;  %v1757_v0 = vpack.c.bf16 %v1688_v60, %v1685_v54 }
 0x232   : > { %2890 = vst [vmem:[%s3653_s15 + $0xd8] sm:$0xff] %v1758_v59   ;;  %v2101_v6 = vunpack.c.l.bf16 %v1758_v59  ;;  %v2102_v11 = vunpack.c.h.bf16 %v1758_v59 }
 0x233   : > { %v2290_v2 = vadd.f32 %v2289_v63, %v2228_v61  ;;  %2889 = vst [vmem:[%s3653_s15 + $0xd0] sm:$0xff] %v1757_v0   ;;  %v2099_v3 = vunpack.c.l.bf16 %v1757_v0  ;;  %v2100_v4 = vunpack.c.h.bf16 %v1757_v0  ;;  %v2160_v5 = vadd.f32 %v2159_v62, %v2098_v53 }
 0x234   : > { %v2232_v18 = vmul.f32 %v2101_v6, %v2101_v6  ;;  %v2233_v45 = vmul.f32 %v2102_v11, %v2102_v11 }
 0x235   : > { %v2161_v7 = vadd.f32 %v2160_v5, %v2099_v3  ;;  %v2230_v8 = vmul.f32 %v2099_v3, %v2099_v3  ;;  %v2291_v9 = vadd.f32 %v2290_v2, %v2229_v1  ;;  %v3110_v10 = vpop.f32.mrb[52].mxu1  ;;  %v2231_v14 = vmul.f32 %v2100_v4, %v2100_v4 }
 0x236   : > { %v1701_v12 = vpop.f32.mrb[53].mxu1 }
 0x237   : > { %v2162_v13 = vadd.f32 %v2161_v7, %v2100_v4  ;;  %v2292_v15 = vadd.f32 %v2291_v9, %v2230_v8  ;;  %v3111_v16 = vpop.f32.mrb[54].mxu1 }
 0x238   : > { %v1760_v50 = vpack.c.bf16 %v3111_v16, %v3110_v10  ;;  %v1704_v17 = vpop.f32.mrb[55].mxu1 }
 0x239   : > { %v2163_v19 = vadd.f32 %v2162_v13, %v2101_v6  ;;  %v2293_v43 = vadd.f32 %v2292_v15, %v2231_v14  ;;  %v1759_v20 = vpack.c.bf16 %v1704_v17, %v1701_v12 }
 0x23a   : > { %2892 = vst [vmem:[%s3653_s15 + $0xe8] sm:$0xff] %v1760_v50   ;;  %v2105_v25 = vunpack.c.l.bf16 %v1760_v50  ;;  %v2106_v30 = vunpack.c.h.bf16 %v1760_v50 }
 0x23b   : > { %v2294_v21 = vadd.f32 %v2293_v43, %v2232_v18  ;;  %2891 = vst [vmem:[%s3653_s15 + $0xe0] sm:$0xff] %v1759_v20   ;;  %v2103_v22 = vunpack.c.l.bf16 %v1759_v20  ;;  %v2104_v23 = vunpack.c.h.bf16 %v1759_v20  ;;  %v2164_v24 = vadd.f32 %v2163_v19, %v2102_v11 }
 0x23c   : > { %v2236_v37 = vmul.f32 %v2105_v25, %v2105_v25  ;;  %v2237_v41 = vmul.f32 %v2106_v30, %v2106_v30 }
 0x23d   : > { %v2165_v26 = vadd.f32 %v2164_v24, %v2103_v22  ;;  %v2234_v27 = vmul.f32 %v2103_v22, %v2103_v22  ;;  %v2295_v28 = vadd.f32 %v2294_v21, %v2233_v45  ;;  %v3114_v29 = vpop.f32.mrb[56].mxu1  ;;  %v2235_v33 = vmul.f32 %v2104_v23, %v2104_v23 }
 0x23e   : > { %v1762_v31 = vpack.c.bf16 %v3114_v29, %v3114_v29  ;;  %v1717_v32 = vpop.f32.mrb[57].mxu1 }
 0x23f   : > { %v2166_v46 = vadd.f32 %v2165_v26, %v2104_v23  ;;  %v2296_v34 = vadd.f32 %v2295_v28, %v2234_v27  ;;  %v3115_v35 = vpop.f32.mrb[58].mxu1 }
 0x240   : > { %2046 = vst [vmem:[%s3653_s15 + $0xf8] sm:$0xf] %v1762_v31  ;;  %v1720_v36 = vpop.f32.mrb[59].mxu1  ;;  %v2109_v49 = vunpack.c.l.bf16 %v1762_v31 }
 0x241   : > { %v2167_v38 = vadd.f32 %v2166_v46, %v2105_v25  ;;  %v2297_v39 = vadd.f32 %v2296_v34, %v2235_v33  ;;  %v1761_v40 = vpack.c.bf16 %v1720_v36, %v1717_v32 }
 0x242   : > { %v2240_v57 = vmul.f32 %v2109_v49, %v2109_v49 }
 0x243   : > { %v2298_v42 = vadd.f32 %v2297_v39, %v2236_v37  ;;  %2893 = vst [vmem:[%s3653_s15 + $0xf0] sm:$0xff] %v1761_v40   ;;  %v2107_v44 = vunpack.c.l.bf16 %v1761_v40  ;;  %v2108_v47 = vunpack.c.h.bf16 %v1761_v40  ;;  %v2168_v48 = vadd.f32 %v2167_v38, %v2106_v30 }
 0x245   : > { %v2169_v51 = vadd.f32 %v2168_v48, %v2107_v44  ;;  %v2238_v52 = vmul.f32 %v2107_v44, %v2107_v44  ;;  %v2299_v53 = vadd.f32 %v2298_v42, %v2237_v41  ;;  %v2239_v55 = vmul.f32 %v2108_v47, %v2108_v47 }
 0x247   : > { %v2170_v54 = vadd.f32 %v2169_v51, %v2108_v47  ;;  %v2300_v56 = vadd.f32 %v2299_v53, %v2238_v52 }
 0x249   : > { %v2171_v58 = vadd.f32 %v2170_v54, %v2109_v49  ;;  %v2301_v59 = vadd.f32 %v2300_v56, %v2239_v55 }
 0x24b   : > { %v2172_v60 = vrot.slane %v2171_v58, 4  ;;  %v2302_v61 = vadd.f32 %v2301_v59, %v2240_v57 }
 0x24d   : > { %v2173_v62 = vadd.f32 %v2172_v60, %v2171_v58  ;;  %v2303_v63 = vrot.slane %v2302_v61, 4 }
 0x24f   : > { %v2174_v0 = vrot.slane %v2173_v62, 2  ;;  %v2304_v1 = vadd.f32 %v2303_v63, %v2302_v61 }
 0x251   : > { %v2175_v2 = vadd.f32 %v2174_v0, %v2173_v62  ;;  %v2305_v3 = vrot.slane %v2304_v1, 2 }
 0x253   : > { %v2176_v4 = vrot.slane %v2175_v2, 1  ;;  %v2306_v5 = vadd.f32 %v2305_v3, %v2304_v1 }
 0x255   : > { %v2307_v6 = vrot.slane %v2306_v5, 1  ;;  %v2177_v7 = vadd.f32 %v2176_v4, %v2175_v2 }
 0x257   : > { %v2308_v8 = vadd.f32 %v2307_v6, %v2306_v5 }
 0x259   : > { %v2310_v9 = vsel %vm2309_vm0, %v2177_v7, %v2308_v8 }
 0x25a   : > { %v2312_v10 = vsel %vm2311_vm1, %v2310_v9, 0.0 }
 0x25b   : > { %2313 = vst [vmem:[%s265_s17] sm:$0xff] %v2312_v10 }
 0x25c PF: > { %s17_s21 = sadd.s32 1, %s3190_s21  }
 0x25d   : > { %p14_p5 = scmp.ge.s32.totalorder %s17_s21, 4  }
 0x25f   :  { %16 = sbr.rel (!%p14_p5) target bundleno = 1 (0x1), region = 82 }

// kernel: apply_node_func.3
= control target key start
LH: loop header
LB: loop body
LE: loop exit
PB: predicated region body
PF: predicated region fallthrough
CT: control target
= control target key end

     0   :  { %s1270_s9 = smov 0   ;;  %s1519_s0 = inlined_call_operand.vmem [shape: bf16[1008,32], index: 0, kind: input, shape index: {}]   ;;  %s1520_s1 = inlined_call_operand.vmem [shape: bf16[32,128], index: 1, kind: input, shape index: {}]   ;;  %s1521_s2 = inlined_call_operand.vmem [shape: f32[16,128], index: 2, kind: output, shape index: {}]  }
   0x1 LB: > { %s1276_s10 = sadd.s32 4294967295, %s1253_s9   ;;  %p1028_p0 = scmp.ge.s32.totalorder %s1253_s9, 1  ;;  %s1253_s9 = sphi %s1270_s9, %s12_s9  }
   0x2   : > { %p113_p1 = scmp.lt.s32.totalorder %s1253_s9, 3 }
   0x4   : > { %p114_p2 = pnand %p1028_p0, %p113_p1 }
   0x5   : > { %v1213_v0 = vld [vmem:[%s1520_s1] sm:$0xff] (!%p114_p2)   ;;  %s134_s13 = smul.u32 (!%p114_p2), 63, %s1276_s10  ;;  %v1214_v1 = vld [vmem:[%s1520_s1 + $0x8] sm:$0xff] (!%p114_p2)   ;;  %vm382_vm0 = vcmask (!%p114_p2), 261120   ;;  %p140_p4 = scmp.lt.s32.totalorder (!%p114_p2), %s1276_s10, 1  ;;  %vm966_vm1 = vcmask (!%p114_p2), 1040384  }
   0x6   : > { %117 = sbr.rel (%p114_p2) target bundleno = 374 (0x176), region = 28  ;;  %1133 = vmatprep.subr.bf16.mxu0 (!%p114_p2), %v1213_v0  ;;  %1201 = vmatprep.subr.bf16.mxu1 (!%p114_p2), %v1213_v0  ;;  %vm968_vm2 = vcmask (!%p114_p2), 1041408  }
   0x7   : > { %p135_p3 = scmp.lt.s32.totalorder (!%p114_p2), %s134_s13, 125  ;;  %1134 = vmatpush3.bf16.msra.mxu0 (!%p114_p2), %v1213_v0  ;;  %1203 = vmatpush3.bf16.msra.mxu1 (!%p114_p2), %v1213_v0 }
   0x8   : > { %1135 = vmatprep.subr.bf16.mxu0 (!%p114_p2), %v1214_v1  ;;  %1202 = vmatprep.subr.bf16.mxu1 (!%p114_p2), %v1214_v1 }
   0xb   : > { %1136 = vmatpush3.bf16.msra.mxu0 (!%p114_p2), %v1214_v1  ;;  %1204 = vmatpush3.bf16.msra.mxu1 (!%p114_p2), %v1214_v1 }
   0xd   : > { %s1523_s13 = smov (!%p135_p3, %s134_s13), 125  ;;  %s1525_s10 = smov (!%p140_p4, %s1276_s10), 1 }
   0xe   : > { %s1029_s16 = sshll.u32 %s1523_s13, 2  ;;  %s1030_s20 = sshll.u32 %s1525_s10, 3 }
   0xf   : > { %s1290_s19 = scalar_lea.vmem %s1519_s0, %s1029_s16  ;;  %s143_s23 = scalar_lea.vmem %s1521_s2, %s1030_s20 }
  0x10   : > { %v1215_v2 = vld [vmem:[%s1290_s19] sm:$0xff]   ;;  %v1216_v3 = vld [vmem:[%s1290_s19 + $0x8] sm:$0xff]   ;;  %v1217_v4 = vld [vmem:[%s1290_s19 + $0x10] sm:$0xff]  }
  0x11   : > { %1137 = vmatprep.mubr.msk.bf16.mxu0 %vm382_vm0, %v1215_v2  ;;  %v1218_v5 = vld [vmem:[%s1290_s19 + $0x18] sm:$0xff]   ;;  %v1219_v6 = vld [vmem:[%s1290_s19 + $0x20] sm:$0xff]   ;;  %v1220_v7 = vld [vmem:[%s1290_s19 + $0x28] sm:$0xff]  }
  0x12   : > { %1138 = vmatmul.mubr.msk.bf16.vlgmr.msra.gmra.mrb[0].mxu0 %vm382_vm0, %v1216_v3  ;;  %v1221_v8 = vld [vmem:[%s1290_s19 + $0x30] sm:$0xff]   ;;  %v1231_v9 = vld [vmem:[%s1290_s19 + $0x80] sm:$0xff]   ;;  %v1232_v10 = vld [vmem:[%s1290_s19 + $0x88] sm:$0xff]  }
  0x13   : > { %1141 = vmatprep.mubr.msk.bf16.mxu0 %vm382_vm0, %v1217_v4  ;;  %1169 = vmatprep.mubr.msk.bf16.mxu1 %vm382_vm0, %v1231_v9  ;;  %v1233_v11 = vld [vmem:[%s1290_s19 + $0x90] sm:$0xff]   ;;  %v1222_v12 = vld [vmem:[%s1290_s19 + $0x38] sm:$0xff]   ;;  %v1223_v13 = vld [vmem:[%s1290_s19 + $0x40] sm:$0xff]  }
  0x14   : > { %1170 = vmatmul.mubr.msk.bf16.vlgmr.msra.gmra.mrb[0].mxu1 %vm382_vm0, %v1232_v10  ;;  %v1234_v14 = vld [vmem:[%s1290_s19 + $0x98] sm:$0xff]   ;;  %v1235_v15 = vld [vmem:[%s1290_s19 + $0xa0] sm:$0xff]   ;;  %v1224_v16 = vld [vmem:[%s1290_s19 + $0x48] sm:$0xff]  }
  0x15   : > { %1173 = vmatprep.mubr.msk.bf16.mxu1 %vm382_vm0, %v1233_v11  ;;  %v1236_v17 = vld [vmem:[%s1290_s19 + $0xa8] sm:$0xff]   ;;  %v1225_v18 = vld [vmem:[%s1290_s19 + $0x50] sm:$0xff]   ;;  %v1226_v20 = vld [vmem:[%s1290_s19 + $0x58] sm:$0xff]  }
  0x16   : > { %v1237_v19 = vld [vmem:[%s1290_s19 + $0xb0] sm:$0xff]   ;;  %v1238_v21 = vld [vmem:[%s1290_s19 + $0xb8] sm:$0xff]   ;;  %v1227_v22 = vld [vmem:[%s1290_s19 + $0x60] sm:$0xff]  }
  0x17   : > { %v1239_v23 = vld [vmem:[%s1290_s19 + $0xc0] sm:$0xff]   ;;  %v1228_v24 = vld [vmem:[%s1290_s19 + $0x68] sm:$0xff]   ;;  %v1229_v26 = vld [vmem:[%s1290_s19 + $0x70] sm:$0xff]  }
  0x18   : > { %v1240_v25 = vld [vmem:[%s1290_s19 + $0xc8] sm:$0xff]   ;;  %v1241_v27 = vld [vmem:[%s1290_s19 + $0xd0] sm:$0xff]   ;;  %v1230_v28 = vld [vmem:[%s1290_s19 + $0x78] sm:$0xff]  }
  0x19   : > { %v1242_v29 = vld [vmem:[%s1290_s19 + $0xd8] sm:$0xff]   ;;  %v1243_v30 = vld [vmem:[%s1290_s19 + $0xe0] sm:$0xff]   ;;  %v1244_v31 = vld [vmem:[%s1290_s19 + $0xe8] sm:$0xff]  }
  0x1a   : > { %1142 = vmatmul.mubr.msk.bf16.gmra.mrb[4].mxu0 %vm382_vm0, %v1218_v5  ;;  %v1245_v32 = vld [vmem:[%s1290_s19 + $0xf0] sm:$0xff]   ;;  %v1246_v33 = vld [vmem:[%s1290_s19 + $0xf8] ss:$0 sps:$4 sm:$0xff]  }
  0x1b   : > { %1145 = vmatprep.mubr.msk.bf16.mxu0 %vm382_vm0, %v1219_v6 }
  0x1c   : > { %1174 = vmatmul.mubr.msk.bf16.gmra.mrb[4].mxu1 %vm382_vm0, %v1234_v14 }
  0x1d   : > { %1177 = vmatprep.mubr.msk.bf16.mxu1 %vm382_vm0, %v1235_v15 }
  0x22   : > { %1146 = vmatmul.mubr.msk.bf16.gmra.mrb[8].mxu0 %vm382_vm0, %v1220_v7 }
  0x23   : > { %1149 = vmatprep.mubr.msk.bf16.mxu0 %vm382_vm0, %v1221_v8 }
  0x24   : > { %1178 = vmatmul.mubr.msk.bf16.gmra.mrb[8].mxu1 %vm382_vm0, %v1236_v17 }
  0x25   : > { %1181 = vmatprep.mubr.msk.bf16.mxu1 %vm382_vm0, %v1237_v19 }
  0x2a   : > { %1150 = vmatmul.mubr.msk.bf16.gmra.mrb[12].mxu0 %vm382_vm0, %v1222_v12 }
  0x2b   : > { %1153 = vmatprep.mubr.msk.bf16.mxu0 %vm382_vm0, %v1223_v13 }
  0x2c   : > { %1182 = vmatmul.mubr.msk.bf16.gmra.mrb[12].mxu1 %vm382_vm0, %v1238_v21 }
  0x2d   : > { %1185 = vmatprep.mubr.msk.bf16.mxu1 %vm382_vm0, %v1239_v23 }
  0x32   : > { %1154 = vmatmul.mubr.msk.bf16.gmra.mrb[16].mxu0 %vm382_vm0, %v1224_v16 }
  0x33   : > { %1157 = vmatprep.mubr.msk.bf16.mxu0 %vm382_vm0, %v1225_v18 }
  0x34   : > { %1186 = vmatmul.mubr.msk.bf16.gmra.mrb[16].mxu1 %vm382_vm0, %v1240_v25 }
  0x35   : > { %1189 = vmatprep.mubr.msk.bf16.mxu1 %vm382_vm0, %v1241_v27 }
  0x3a   : > { %1158 = vmatmul.mubr.msk.bf16.gmra.mrb[20].mxu0 %vm382_vm0, %v1226_v20 }
  0x3b   : > { %1161 = vmatprep.mubr.msk.bf16.mxu0 %vm382_vm0, %v1227_v22 }
  0x3c   : > { %1190 = vmatmul.mubr.msk.bf16.gmra.mrb[20].mxu1 %vm382_vm0, %v1242_v29 }
  0x3d   : > { %1193 = vmatprep.mubr.msk.bf16.mxu1 %vm382_vm0, %v1243_v30 }
  0x42   : > { %1162 = vmatmul.mubr.msk.bf16.gmra.mrb[24].mxu0 %vm382_vm0, %v1228_v24 }
  0x43   : > { %1165 = vmatprep.mubr.msk.bf16.mxu0 %vm382_vm0, %v1229_v26 }
  0x44   : > { %1194 = vmatmul.mubr.msk.bf16.gmra.mrb[24].mxu1 %vm382_vm0, %v1244_v31 }
  0x45   : > { %1197 = vmatprep.mubr.msk.bf16.mxu1 %vm382_vm0, %v1245_v32 }
  0x4a   : > { %1166 = vmatmul.mubr.msk.bf16.gmra.mrb[28].mxu0 %vm382_vm0, %v1230_v28 }
  0x4c   : > { %1198 = vmatmul.mubr.msk.bf16.gmra.mrb[28].mxu1 %vm382_vm0, %v1246_v33 }
  0xe5   : > { %v1139_v34 = vpop.f32.mrb[0].mxu0 }
  0xe6   : > { %v513_v35 = vpop.f32.mrb[1].mxu0  ;;  %v837_v41 = vmul.f32 %v1139_v34, %v1139_v34 }
  0xe7   : > { %v1140_v36 = vpop.f32.mrb[2].mxu0  ;;  %v835_v38 = vmul.f32 %v513_v35, %v513_v35  ;;  %v1356_v0 = vpop.f32.mrb[0].mxu1 }
  0xe8   : > { %v516_v37 = vpop.f32.mrb[3].mxu0  ;;  %v838_v44 = vmul.f32 %v1140_v36, %v1140_v36  ;;  %v1358_v2 = vpop.f32.mrb[1].mxu1 }
  0xe9   : > { %v767_v39 = vadd.f32 %v516_v37, %v513_v35  ;;  %v836_v40 = vmul.f32 %v516_v37, %v516_v37  ;;  %v1360_v7 = vpop.f32.mrb[2].mxu1 }
  0xea   : > { %v1362_v9 = vpop.f32.mrb[3].mxu1 }
  0xeb   : > { %v768_v42 = vadd.f32 %v1139_v34, %v767_v39  ;;  %v898_v43 = vadd.f32 %v836_v40, %v835_v38 }
  0xed   : > { %v899_v45 = vadd.f32 %v898_v43, %v837_v41  ;;  %v1143_v46 = vpop.f32.mrb[4].mxu0  ;;  %v769_v47 = vadd.f32 %v1140_v36, %v768_v42 }
  0xee   : > { %v529_v48 = vpop.f32.mrb[5].mxu0  ;;  %v841_v57 = vmul.f32 %v1143_v46, %v1143_v46 }
  0xef   : > { %v770_v49 = vadd.f32 %v769_v47, %v529_v48  ;;  %v839_v50 = vmul.f32 %v529_v48, %v529_v48  ;;  %v900_v51 = vadd.f32 %v899_v45, %v838_v44  ;;  %v1144_v52 = vpop.f32.mrb[6].mxu0  ;;  %v1364_v20 = vpop.f32.mrb[4].mxu1 }
  0xf0   : > { %v532_v53 = vpop.f32.mrb[7].mxu0  ;;  %v842_v60 = vmul.f32 %v1144_v52, %v1144_v52  ;;  %v1366_v22 = vpop.f32.mrb[5].mxu1 }
  0xf1   : > { %v901_v54 = vadd.f32 %v900_v51, %v839_v50  ;;  %v771_v55 = vadd.f32 %v770_v49, %v532_v53  ;;  %v840_v56 = vmul.f32 %v532_v53, %v532_v53  ;;  %v1368_v27 = vpop.f32.mrb[6].mxu1 }
  0xf2   : > { %v1370_v29 = vpop.f32.mrb[7].mxu1 }
  0xf3   : > { %v772_v58 = vadd.f32 %v1143_v46, %v771_v55  ;;  %v902_v59 = vadd.f32 %v901_v54, %v840_v56 }
  0xf5   : > { %v903_v61 = vadd.f32 %v902_v59, %v841_v57  ;;  %v1147_v62 = vpop.f32.mrb[8].mxu0  ;;  %v773_v63 = vadd.f32 %v1144_v52, %v772_v58 }
  0xf6   : > { %v545_v1 = vpop.f32.mrb[9].mxu0  ;;  %v845_v13 = vmul.f32 %v1147_v62, %v1147_v62 }
  0xf7   : > { %v774_v3 = vadd.f32 %v773_v63, %v545_v1  ;;  %v843_v4 = vmul.f32 %v545_v1, %v545_v1  ;;  %v904_v5 = vadd.f32 %v903_v61, %v842_v60  ;;  %v1148_v6 = vpop.f32.mrb[10].mxu0  ;;  %v1372_v40 = vpop.f32.mrb[8].mxu1 }
  0xf8   : > { %v548_v8 = vpop.f32.mrb[11].mxu0  ;;  %v846_v16 = vmul.f32 %v1148_v6, %v1148_v6  ;;  %v1374_v42 = vpop.f32.mrb[9].mxu1 }
  0xf9   : > { %v905_v10 = vadd.f32 %v904_v5, %v843_v4  ;;  %v775_v11 = vadd.f32 %v774_v3, %v548_v8  ;;  %v844_v12 = vmul.f32 %v548_v8, %v548_v8  ;;  %v1376_v47 = vpop.f32.mrb[10].mxu1 }
  0xfa   : > { %v1378_v49 = vpop.f32.mrb[11].mxu1 }
  0xfb   : > { %v776_v14 = vadd.f32 %v1147_v62, %v775_v11  ;;  %v906_v15 = vadd.f32 %v905_v10, %v844_v12 }
  0xfd   : > { %v907_v17 = vadd.f32 %v906_v15, %v845_v13  ;;  %v1151_v18 = vpop.f32.mrb[12].mxu0  ;;  %v777_v19 = vadd.f32 %v1148_v6, %v776_v14 }
  0xfe   : > { %v561_v21 = vpop.f32.mrb[13].mxu0  ;;  %v849_v33 = vmul.f32 %v1151_v18, %v1151_v18 }
  0xff   : > { %v778_v23 = vadd.f32 %v777_v19, %v561_v21  ;;  %v847_v24 = vmul.f32 %v561_v21, %v561_v21  ;;  %v908_v25 = vadd.f32 %v907_v17, %v846_v16  ;;  %v1152_v26 = vpop.f32.mrb[14].mxu0  ;;  %v1380_v60 = vpop.f32.mrb[12].mxu1 }
 0x100   : > { %v564_v28 = vpop.f32.mrb[15].mxu0  ;;  %v850_v36 = vmul.f32 %v1152_v26, %v1152_v26  ;;  %v1382_v62 = vpop.f32.mrb[13].mxu1 }
 0x101   : > { %v909_v30 = vadd.f32 %v908_v25, %v847_v24  ;;  %v779_v31 = vadd.f32 %v778_v23, %v564_v28  ;;  %v848_v32 = vmul.f32 %v564_v28, %v564_v28  ;;  %v1384_v5 = vpop.f32.mrb[14].mxu1 }
 0x102   : > { %v1386_v8 = vpop.f32.mrb[15].mxu1 }
 0x103   : > { %v780_v34 = vadd.f32 %v1151_v18, %v779_v31  ;;  %v910_v35 = vadd.f32 %v909_v30, %v848_v32 }
 0x105   : > { %v911_v37 = vadd.f32 %v910_v35, %v849_v33  ;;  %v1155_v38 = vpop.f32.mrb[16].mxu0  ;;  %v781_v39 = vadd.f32 %v1152_v26, %v780_v34 }
 0x106   : > { %v577_v41 = vpop.f32.mrb[17].mxu0  ;;  %v853_v53 = vmul.f32 %v1155_v38, %v1155_v38 }
 0x107   : > { %v782_v43 = vadd.f32 %v781_v39, %v577_v41  ;;  %v851_v44 = vmul.f32 %v577_v41, %v577_v41  ;;  %v912_v45 = vadd.f32 %v911_v37, %v850_v36  ;;  %v1156_v46 = vpop.f32.mrb[18].mxu0  ;;  %v1388_v21 = vpop.f32.mrb[16].mxu1 }
 0x108   : > { %v580_v48 = vpop.f32.mrb[19].mxu0  ;;  %v854_v56 = vmul.f32 %v1156_v46, %v1156_v46  ;;  %v1390_v24 = vpop.f32.mrb[17].mxu1 }
 0x109   : > { %v913_v50 = vadd.f32 %v912_v45, %v851_v44  ;;  %v783_v51 = vadd.f32 %v782_v43, %v580_v48  ;;  %v852_v52 = vmul.f32 %v580_v48, %v580_v48  ;;  %v1392_v31 = vpop.f32.mrb[18].mxu1 }
 0x10a   : > { %v1394_v33 = vpop.f32.mrb[19].mxu1 }
 0x10b   : > { %v784_v54 = vadd.f32 %v1155_v38, %v783_v51  ;;  %v914_v55 = vadd.f32 %v913_v50, %v852_v52 }
 0x10d   : > { %v915_v57 = vadd.f32 %v914_v55, %v853_v53  ;;  %v1159_v58 = vpop.f32.mrb[20].mxu0  ;;  %v785_v59 = vadd.f32 %v1156_v46, %v784_v54 }
 0x10e   : > { %v593_v61 = vpop.f32.mrb[21].mxu0  ;;  %v857_v13 = vmul.f32 %v1159_v58, %v1159_v58 }
 0x10f   : > { %v786_v63 = vadd.f32 %v785_v59, %v593_v61  ;;  %v855_v1 = vmul.f32 %v593_v61, %v593_v61  ;;  %v916_v3 = vadd.f32 %v915_v57, %v854_v56  ;;  %v1160_v4 = vpop.f32.mrb[22].mxu0  ;;  %v1396_v46 = vpop.f32.mrb[20].mxu1 }
 0x110   : > { %v596_v6 = vpop.f32.mrb[23].mxu0  ;;  %v858_v16 = vmul.f32 %v1160_v4, %v1160_v4  ;;  %v1398_v50 = vpop.f32.mrb[21].mxu1 }
 0x111   : > { %v917_v10 = vadd.f32 %v916_v3, %v855_v1  ;;  %v787_v11 = vadd.f32 %v786_v63, %v596_v6  ;;  %v856_v12 = vmul.f32 %v596_v6, %v596_v6  ;;  %v1400_v55 = vpop.f32.mrb[22].mxu1 }
 0x112   : > { %v1402_v57 = vpop.f32.mrb[23].mxu1 }
 0x113   : > { %v788_v14 = vadd.f32 %v1159_v58, %v787_v11  ;;  %v918_v15 = vadd.f32 %v917_v10, %v856_v12  ;;  %v867_v11 = vmul.f32 %v1358_v2, %v1358_v2 }
 0x115   : > { %v919_v17 = vadd.f32 %v918_v15, %v857_v13  ;;  %v1163_v18 = vpop.f32.mrb[24].mxu0  ;;  %v789_v19 = vadd.f32 %v1160_v4, %v788_v14 }
 0x116   : > { %v609_v23 = vpop.f32.mrb[25].mxu0  ;;  %v861_v37 = vmul.f32 %v1163_v18, %v1163_v18 }
 0x117   : > { %v790_v25 = vadd.f32 %v789_v19, %v609_v23  ;;  %v859_v26 = vmul.f32 %v609_v23, %v609_v23  ;;  %v920_v28 = vadd.f32 %v919_v17, %v858_v16  ;;  %v1164_v30 = vpop.f32.mrb[26].mxu0  ;;  %v1406_v12 = vpop.f32.mrb[24].mxu1  ;;  %v868_v23 = vmul.f32 %v1362_v9, %v1362_v9 }
 0x118   : > { %v612_v32 = vpop.f32.mrb[27].mxu0  ;;  %v862_v41 = vmul.f32 %v1164_v30, %v1164_v30  ;;  %v1408_v13 = vpop.f32.mrb[25].mxu1 }
 0x119   : > { %v921_v34 = vadd.f32 %v920_v28, %v859_v26  ;;  %v791_v35 = vadd.f32 %v790_v25, %v612_v32  ;;  %v860_v36 = vmul.f32 %v612_v32, %v612_v32  ;;  %v1411_v16 = vpop.f32.mrb[26].mxu1  ;;  %v869_v25 = vmul.f32 %v1356_v0, %v1356_v0 }
 0x11a   : > { %v1413_v17 = vpop.f32.mrb[27].mxu1 }
 0x11b   : > { %v792_v38 = vadd.f32 %v1163_v18, %v791_v35  ;;  %v922_v39 = vadd.f32 %v921_v34, %v860_v36  ;;  %v871_v34 = vmul.f32 %v1366_v22, %v1366_v22 }
 0x11d   : > { %v923_v43 = vadd.f32 %v922_v39, %v861_v37  ;;  %v1167_v44 = vpop.f32.mrb[28].mxu0  ;;  %v793_v45 = vadd.f32 %v1164_v30, %v792_v38 }
 0x11e   : > { %v625_v48 = vpop.f32.mrb[29].mxu0  ;;  %v865_v63 = vmul.f32 %v1167_v44, %v1167_v44 }
 0x11f   : > { %v794_v51 = vadd.f32 %v793_v45, %v625_v48  ;;  %v863_v52 = vmul.f32 %v625_v48, %v625_v48  ;;  %v924_v53 = vadd.f32 %v923_v43, %v862_v41  ;;  %v1168_v54 = vpop.f32.mrb[30].mxu0  ;;  %v1426_v35 = vpop.f32.mrb[28].mxu1  ;;  %v872_v43 = vmul.f32 %v1370_v29, %v1370_v29 }
 0x120   : > { %v628_v56 = vpop.f32.mrb[31].mxu0  ;;  %v866_v4 = vmul.f32 %v1168_v54, %v1168_v54  ;;  %v1428_v36 = vpop.f32.mrb[29].mxu1  ;;  %v874_v48 = vmul.f32 %v1368_v27, %v1368_v27 }
 0x121   : > { %v925_v58 = vadd.f32 %v924_v53, %v863_v52  ;;  %v795_v59 = vadd.f32 %v794_v51, %v628_v56  ;;  %v864_v61 = vmul.f32 %v628_v56, %v628_v56  ;;  %v1200_v38 = vpop.f32.mrb[30].mxu1  ;;  %v875_v52 = vmul.f32 %v1374_v42, %v1374_v42 }
 0x122   : > { %v1431_v39 = vpop.f32.mrb[31].mxu1  ;;  %v888_v38 = vmul.f32 %v1402_v57, %v1402_v57 }
 0x123   : > { %v796_v1 = vadd.f32 %v1167_v44, %v795_v59  ;;  %v926_v3 = vadd.f32 %v925_v58, %v864_v61  ;;  %v876_v58 = vmul.f32 %v1378_v49, %v1378_v49 }
 0x125   : > { %v927_v6 = vadd.f32 %v926_v3, %v865_v63  ;;  %v797_v10 = vadd.f32 %v1168_v54, %v796_v1 }
 0x127   : > { %v798_v14 = vadd.f32 %v797_v10, %v1358_v2  ;;  %v928_v15 = vadd.f32 %v927_v6, %v866_v4  ;;  %v870_v2 = vmul.f32 %v1360_v7, %v1360_v7  ;;  %v880_v10 = vmul.f32 %v1386_v8, %v1386_v8 }
 0x129   : > { %v929_v18 = vadd.f32 %v928_v15, %v867_v11  ;;  %v799_v19 = vadd.f32 %v798_v14, %v1362_v9 }
 0x12b   : > { %v800_v26 = vadd.f32 %v1356_v0, %v799_v19  ;;  %v930_v28 = vadd.f32 %v929_v18, %v868_v23 }
 0x12d   : > { %v931_v30 = vadd.f32 %v930_v28, %v869_v25  ;;  %v801_v32 = vadd.f32 %v1360_v7, %v800_v26  ;;  %v873_v7 = vmul.f32 %v1364_v20, %v1364_v20  ;;  %v884_v26 = vmul.f32 %v1394_v33, %v1394_v33 }
 0x12f   : > { %v802_v9 = vadd.f32 %v801_v32, %v1366_v22  ;;  %v932_v37 = vadd.f32 %v931_v30, %v870_v2 }
 0x131   : > { %v933_v0 = vadd.f32 %v932_v37, %v871_v34  ;;  %v803_v41 = vadd.f32 %v802_v9, %v1370_v29 }
 0x133   : > { %v804_v44 = vadd.f32 %v1364_v20, %v803_v41  ;;  %v934_v45 = vadd.f32 %v933_v0, %v872_v43  ;;  %v877_v20 = vmul.f32 %v1372_v40, %v1372_v40 }
 0x135   : > { %v935_v22 = vadd.f32 %v934_v45, %v873_v7  ;;  %v805_v51 = vadd.f32 %v1368_v27, %v804_v44  ;;  %v878_v27 = vmul.f32 %v1376_v47, %v1376_v47 }
 0x137   : > { %v806_v53 = vadd.f32 %v805_v51, %v1374_v42  ;;  %v936_v54 = vadd.f32 %v935_v22, %v874_v48  ;;  %v879_v42 = vmul.f32 %v1382_v62, %v1382_v62  ;;  %v892_v22 = vmul.f32 %v1413_v17, %v1413_v17 }
 0x139   : > { %v937_v56 = vadd.f32 %v936_v54, %v875_v52  ;;  %v807_v29 = vadd.f32 %v806_v53, %v1378_v49  ;;  %v895_v54 = vmul.f32 %v1428_v36, %v1428_v36 }
 0x13b   : > { %v808_v59 = vadd.f32 %v1372_v40, %v807_v29  ;;  %v938_v61 = vadd.f32 %v937_v56, %v876_v58  ;;  %v881_v40 = vmul.f32 %v1380_v60, %v1380_v60 }
 0x13d   : > { %v939_v63 = vadd.f32 %v938_v61, %v877_v20  ;;  %v809_v1 = vadd.f32 %v1376_v47, %v808_v59  ;;  %v882_v47 = vmul.f32 %v1384_v5, %v1384_v5  ;;  %v897_v20 = vmul.f32 %v1426_v35, %v1426_v35 }
 0x13f   : > { %v810_v3 = vadd.f32 %v809_v1, %v1382_v62  ;;  %v940_v4 = vadd.f32 %v939_v63, %v878_v27  ;;  %v883_v62 = vmul.f32 %v1390_v24, %v1390_v24 }
 0x141   : > { %v941_v6 = vadd.f32 %v940_v4, %v879_v42  ;;  %v811_v49 = vadd.f32 %v810_v3, %v1386_v8 }
 0x143   : > { %v812_v11 = vadd.f32 %v1380_v60, %v811_v49  ;;  %v942_v14 = vadd.f32 %v941_v6, %v880_v10  ;;  %v885_v60 = vmul.f32 %v1388_v21, %v1388_v21 }
 0x145   : > { %v943_v15 = vadd.f32 %v942_v14, %v881_v40  ;;  %v813_v18 = vadd.f32 %v1384_v5, %v812_v11  ;;  %v886_v5 = vmul.f32 %v1392_v31, %v1392_v31 }
 0x147   : > { %v814_v19 = vadd.f32 %v813_v18, %v1390_v24  ;;  %v944_v23 = vadd.f32 %v943_v15, %v882_v47  ;;  %v887_v24 = vmul.f32 %v1398_v50, %v1398_v50 }
 0x149   : > { %v945_v25 = vadd.f32 %v944_v23, %v883_v62  ;;  %v815_v8 = vadd.f32 %v814_v19, %v1394_v33 }
 0x14b   : > { %v816_v28 = vadd.f32 %v1388_v21, %v815_v8  ;;  %v946_v2 = vadd.f32 %v945_v25, %v884_v26  ;;  %v889_v21 = vmul.f32 %v1396_v46, %v1396_v46 }
 0x14d   : > { %v947_v30 = vadd.f32 %v946_v2, %v885_v60  ;;  %v817_v32 = vadd.f32 %v1392_v31, %v816_v28  ;;  %v890_v31 = vmul.f32 %v1400_v55, %v1400_v55 }
 0x14f   : > { %v818_v34 = vadd.f32 %v817_v32, %v1398_v50  ;;  %v948_v9 = vadd.f32 %v947_v30, %v886_v5  ;;  %v891_v50 = vmul.f32 %v1408_v13, %v1408_v13 }
 0x151   : > { %v949_v37 = vadd.f32 %v948_v9, %v887_v24  ;;  %v819_v33 = vadd.f32 %v818_v34, %v1402_v57 }
 0x153   : > { %v820_v0 = vadd.f32 %v1396_v46, %v819_v33  ;;  %v950_v41 = vadd.f32 %v949_v37, %v888_v38  ;;  %v893_v46 = vmul.f32 %v1406_v12, %v1406_v12 }
 0x155   : > { %v951_v43 = vadd.f32 %v950_v41, %v889_v21  ;;  %v821_v7 = vadd.f32 %v1400_v55, %v820_v0  ;;  %v894_v55 = vmul.f32 %v1411_v16, %v1411_v16 }
 0x157   : > { %v822_v44 = vadd.f32 %v821_v7, %v1408_v13  ;;  %v952_v45 = vadd.f32 %v951_v43, %v890_v31 }
 0x159   : > { %v953_v48 = vadd.f32 %v952_v45, %v891_v50  ;;  %v823_v57 = vadd.f32 %v822_v44, %v1413_v17 }
 0x15b   : > { %v824_v51 = vadd.f32 %v1406_v12, %v823_v57  ;;  %v954_v52 = vadd.f32 %v953_v48, %v892_v22  ;;  %v896_v12 = vmul.f32 %v1431_v39, %v1431_v39 }
 0x15d   : > { %v955_v53 = vadd.f32 %v954_v52, %v893_v46  ;;  %v825_v13 = vadd.f32 %v1411_v16, %v824_v51 }
 0x15f   : > { %v826_v56 = vadd.f32 %v825_v13, %v1428_v36  ;;  %v956_v17 = vadd.f32 %v955_v53, %v894_v55 }
 0x161   : > { %v957_v29 = vadd.f32 %v956_v17, %v895_v54  ;;  %v827_v58 = vadd.f32 %v826_v56, %v1431_v39 }
 0x163   : > { %v828_v59 = vadd.f32 %v1426_v35, %v827_v58  ;;  %v958_v61 = vadd.f32 %v957_v29, %v896_v12 }
 0x165   : > { %v829_v16 = vrot.slane %v828_v59, 4  ;;  %v959_v27 = vadd.f32 %v958_v61, %v897_v20 }
 0x167   : > { %v830_v63 = vadd.f32 %v829_v16, %v828_v59  ;;  %v960_v1 = vrot.slane %v959_v27, 4 }
 0x169   : > { %v831_v42 = vrot.slane %v830_v63, 2  ;;  %v961_v36 = vadd.f32 %v960_v1, %v959_v27 }
 0x16b   : > { %v832_v3 = vadd.f32 %v831_v42, %v830_v63  ;;  %v962_v4 = vrot.slane %v961_v36, 2 }
 0x16d   : > { %v833_v6 = vrot.slane %v832_v3, 1  ;;  %v963_v49 = vadd.f32 %v962_v4, %v961_v36 }
 0x16f   : > { %v964_v39 = vrot.slane %v963_v49, 1  ;;  %v834_v10 = vadd.f32 %v833_v6, %v832_v3 }
 0x171   : > { %v965_v40 = vadd.f32 %v964_v39, %v963_v49 }
 0x173   : > { %v967_v35 = vsel %vm966_vm1, %v834_v10, %v965_v40 }
 0x174   : > { %v969_v11 = vsel %vm968_vm2, %v967_v35, 0.0 }
 0x175   : > { %970 = vst [vmem:[%s143_s23] sm:$0xff] %v969_v11 }
 0x176 PF: > { %s12_s9 = sadd.s32 1, %s1253_s9  }
 0x177   : > { %p9_p5 = scmp.ge.s32.totalorder %s12_s9, 4  }
 0x179   :  { %11 = sbr.rel (!%p9_p5) target bundleno = 1 (0x1), region = 58 }

// kernel: apply_node_func.5
= control target key start
LH: loop header
LB: loop body
LE: loop exit
PB: predicated region body
PF: predicated region fallthrough
CT: control target
= control target key end

     0   :  { %s823_s12 = smov 0   ;;  %s1079_s0 = inlined_call_operand.vmem [shape: bf16[1008,128], index: 0, kind: input, shape index: {}]   ;;  %s1080_s1 = inlined_call_operand.vmem [shape: f32[1,128], index: 1, kind: input, shape index: {}]   ;;  %s1081_s2 = inlined_call_operand.vmem [shape: f32[1,128], index: 2, kind: input, shape index: {}]   ;;  %s1082_s3 = inlined_call_operand.vmem [shape: f32[1008,128], index: 3, kind: output, shape index: {}]  }
   0x1 LB: > { %s622_s13 = sadd.s32 4294967295, %s801_s12   ;;  %p626_p0 = scmp.ge.s32.totalorder %s801_s12, 1  ;;  %s801_s12 = sphi %s823_s12, %s13_s12  }
   0x2   : > { %p138_p1 = scmp.lt.s32.totalorder %s801_s12, 3 }
   0x4   : > { %p139_p2 = pnand %p626_p0, %p138_p1 }
   0x5   : > { %s162_s14 = smul.u32 (!%p139_p2), 63, %s622_s13  ;;  %v842_v0 = vld [vmem:[%s1080_s1] ss:$0 sm:$0xff] (!%p139_p2) }
   0x6   : > { %142 = sbr.rel (%p139_p2) target bundleno = 85 (0x55), region = 32  ;;  %v851_v9 = vld [vmem:[%s1081_s2] ss:$0 sm:$0xff] (!%p139_p2) }
   0x7   : > { %p163_p3 = scmp.lt.s32.totalorder (!%p139_p2), %s162_s14, 125 }
   0xd   : > { %s1084_s14 = smov (!%p163_p3, %s162_s14), 125 }
   0xe   : > { %s627_s15 = sshll.u32 %s1084_s14, 2  ;;  %s628_s23 = sshll.u32 %s1084_s14, 3 }
   0xf   : > { %s837_s18 = scalar_lea.vmem %s1079_s0, %s627_s15  ;;  %s869_s26 = scalar_lea.vmem %s1082_s3, %s628_s23 }
  0x10   : > { %v634_v1 = vld [vmem:[%s837_s18] sm:$0xff]   ;;  %v757_v2 = vld [vmem:[%s837_s18 + $0x8] sm:$0xff]   ;;  %v758_v3 = vld [vmem:[%s837_s18 + $0x10] sm:$0xff]  }
  0x11   : > { %v635_v4 = vunpack.c.l.bf16 %v634_v1  ;;  %v636_v5 = vunpack.c.h.bf16 %v634_v1  ;;  %v639_v6 = vunpack.c.l.bf16 %v757_v2  ;;  %v640_v7 = vunpack.c.h.bf16 %v757_v2  ;;  %v759_v8 = vld [vmem:[%s837_s18 + $0x18] sm:$0xff]   ;;  %v760_v30 = vld [vmem:[%s837_s18 + $0x20] sm:$0xff]   ;;  %v761_v31 = vld [vmem:[%s837_s18 + $0x28] sm:$0xff]  }
  0x12   : > { %v643_v10 = vunpack.c.l.bf16 %v758_v3  ;;  %v644_v11 = vunpack.c.h.bf16 %v758_v3  ;;  %v647_v12 = vunpack.c.l.bf16 %v759_v8  ;;  %v648_v13 = vunpack.c.h.bf16 %v759_v8  ;;  %v762_v36 = vld [vmem:[%s837_s18 + $0x30] sm:$0xff]   ;;  %v763_v37 = vld [vmem:[%s837_s18 + $0x38] sm:$0xff]   ;;  %v764_v3 = vld [vmem:[%s837_s18 + $0x40] sm:$0xff]  }
  0x13   : > { %v307_v14 = vmul.f32 %v635_v4, %v842_v0  ;;  %v308_v15 = vmul.f32 %v636_v5, %v842_v0  ;;  %v309_v16 = vmul.f32 %v639_v6, %v842_v0  ;;  %v310_v17 = vmul.f32 %v640_v7, %v842_v0  ;;  %v765_v4 = vld [vmem:[%s837_s18 + $0x48] sm:$0xff]  }
  0x14   : > { %v311_v18 = vmul.f32 %v643_v10, %v842_v0  ;;  %v312_v19 = vmul.f32 %v644_v11, %v842_v0  ;;  %v313_v20 = vmul.f32 %v647_v12, %v842_v0  ;;  %v314_v21 = vmul.f32 %v648_v13, %v842_v0  ;;  %v766_v10 = vld [vmem:[%s837_s18 + $0x50] sm:$0xff]   ;;  %v767_v11 = vld [vmem:[%s837_s18 + $0x58] sm:$0xff]  }
  0x15   : > { %v377_v22 = vadd.f32 %v851_v9, %v307_v14  ;;  %v378_v23 = vadd.f32 %v851_v9, %v308_v15  ;;  %v379_v24 = vadd.f32 %v851_v9, %v309_v16  ;;  %v380_v25 = vadd.f32 %v851_v9, %v310_v17 }
  0x16   : > { %v381_v26 = vadd.f32 %v851_v9, %v311_v18  ;;  %v382_v27 = vadd.f32 %v851_v9, %v312_v19  ;;  %v383_v28 = vadd.f32 %v851_v9, %v313_v20  ;;  %v384_v29 = vadd.f32 %v851_v9, %v314_v21 }
  0x17   : > { %v440_v32 = vmax.f32 %v377_v22, 0.0  ;;  %v441_v33 = vmax.f32 %v378_v23, 0.0  ;;  %v442_v34 = vmax.f32 %v379_v24, 0.0  ;;  %v443_v35 = vmax.f32 %v380_v25, 0.0 }
  0x18   : > { %v444_v38 = vmax.f32 %v381_v26, 0.0  ;;  %v445_v39 = vmax.f32 %v382_v27, 0.0  ;;  %v446_v40 = vmax.f32 %v383_v28, 0.0  ;;  %v447_v41 = vmax.f32 %v384_v29, 0.0 }
  0x19   : > { %503 = vst [vmem:[%s869_s26] sm:$0xff] %v440_v32  ;;  %504 = vst [vmem:[%s869_s26 + $0x8] sm:$0xff] %v441_v33  ;;  %v651_v42 = vunpack.c.l.bf16 %v760_v30  ;;  %v652_v43 = vunpack.c.h.bf16 %v760_v30  ;;  %v655_v44 = vunpack.c.l.bf16 %v761_v31  ;;  %v656_v45 = vunpack.c.h.bf16 %v761_v31 }
  0x1a   : > { %505 = vst [vmem:[%s869_s26 + $0x10] sm:$0xff] %v442_v34  ;;  %506 = vst [vmem:[%s869_s26 + $0x18] sm:$0xff] %v443_v35  ;;  %v659_v46 = vunpack.c.l.bf16 %v762_v36  ;;  %v660_v47 = vunpack.c.h.bf16 %v762_v36  ;;  %v663_v48 = vunpack.c.l.bf16 %v763_v37  ;;  %v664_v49 = vunpack.c.h.bf16 %v763_v37 }
  0x1b   : > { %507 = vst [vmem:[%s869_s26 + $0x20] sm:$0xff] %v444_v38  ;;  %508 = vst [vmem:[%s869_s26 + $0x28] sm:$0xff] %v445_v39  ;;  %v315_v50 = vmul.f32 %v651_v42, %v842_v0  ;;  %v316_v51 = vmul.f32 %v652_v43, %v842_v0  ;;  %v317_v52 = vmul.f32 %v655_v44, %v842_v0  ;;  %v667_v16 = vunpack.c.l.bf16 %v764_v3 }
  0x1c   : > { %509 = vst [vmem:[%s869_s26 + $0x30] sm:$0xff] %v446_v40  ;;  %510 = vst [vmem:[%s869_s26 + $0x38] sm:$0xff] %v447_v41  ;;  %v318_v53 = vmul.f32 %v656_v45, %v842_v0  ;;  %v319_v54 = vmul.f32 %v659_v46, %v842_v0  ;;  %v320_v55 = vmul.f32 %v660_v47, %v842_v0  ;;  %v668_v17 = vunpack.c.h.bf16 %v764_v3  ;;  %v768_v40 = vld [vmem:[%s837_s18 + $0x60] sm:$0xff]   ;;  %v769_v41 = vld [vmem:[%s837_s18 + $0x68] sm:$0xff]  }
  0x1d   : > { %v321_v56 = vmul.f32 %v663_v48, %v842_v0  ;;  %v322_v57 = vmul.f32 %v664_v49, %v842_v0  ;;  %v385_v58 = vadd.f32 %v851_v9, %v315_v50  ;;  %v386_v59 = vadd.f32 %v851_v9, %v316_v51  ;;  %v770_v46 = vld [vmem:[%s837_s18 + $0x70] sm:$0xff]   ;;  %v771_v47 = vld [vmem:[%s837_s18 + $0x78] sm:$0xff]  }
  0x1e   : > { %v387_v60 = vadd.f32 %v851_v9, %v317_v52  ;;  %v388_v61 = vadd.f32 %v851_v9, %v318_v53  ;;  %v389_v62 = vadd.f32 %v851_v9, %v319_v54  ;;  %v390_v63 = vadd.f32 %v851_v9, %v320_v55 }
  0x1f   : > { %v391_v1 = vadd.f32 %v851_v9, %v321_v56  ;;  %v392_v2 = vadd.f32 %v851_v9, %v322_v57  ;;  %v448_v5 = vmax.f32 %v385_v58, 0.0  ;;  %v449_v6 = vmax.f32 %v386_v59, 0.0 }
  0x20   : > { %v450_v7 = vmax.f32 %v387_v60, 0.0  ;;  %v451_v8 = vmax.f32 %v388_v61, 0.0  ;;  %v452_v12 = vmax.f32 %v389_v62, 0.0  ;;  %v453_v13 = vmax.f32 %v390_v63, 0.0 }
  0x21   : > { %v454_v14 = vmax.f32 %v391_v1, 0.0  ;;  %v455_v15 = vmax.f32 %v392_v2, 0.0  ;;  %511 = vst [vmem:[%s869_s26 + $0x40] sm:$0xff] %v448_v5  ;;  %512 = vst [vmem:[%s869_s26 + $0x48] sm:$0xff] %v449_v6  ;;  %v671_v18 = vunpack.c.l.bf16 %v765_v4  ;;  %v672_v19 = vunpack.c.h.bf16 %v765_v4 }
  0x22   : > { %513 = vst [vmem:[%s869_s26 + $0x50] sm:$0xff] %v450_v7  ;;  %514 = vst [vmem:[%s869_s26 + $0x58] sm:$0xff] %v451_v8  ;;  %v675_v20 = vunpack.c.l.bf16 %v766_v10  ;;  %v676_v21 = vunpack.c.h.bf16 %v766_v10  ;;  %v679_v22 = vunpack.c.l.bf16 %v767_v11  ;;  %v680_v23 = vunpack.c.h.bf16 %v767_v11 }
  0x23   : > { %515 = vst [vmem:[%s869_s26 + $0x60] sm:$0xff] %v452_v12  ;;  %516 = vst [vmem:[%s869_s26 + $0x68] sm:$0xff] %v453_v13  ;;  %v323_v24 = vmul.f32 %v667_v16, %v842_v0  ;;  %v324_v25 = vmul.f32 %v668_v17, %v842_v0  ;;  %v325_v26 = vmul.f32 %v671_v18, %v842_v0  ;;  %v683_v52 = vunpack.c.l.bf16 %v768_v40 }
  0x24   : > { %517 = vst [vmem:[%s869_s26 + $0x70] sm:$0xff] %v454_v14  ;;  %518 = vst [vmem:[%s869_s26 + $0x78] sm:$0xff] %v455_v15  ;;  %v326_v27 = vmul.f32 %v672_v19, %v842_v0  ;;  %v327_v28 = vmul.f32 %v675_v20, %v842_v0  ;;  %v328_v29 = vmul.f32 %v676_v21, %v842_v0  ;;  %v684_v53 = vunpack.c.h.bf16 %v768_v40  ;;  %v772_v14 = vld [vmem:[%s837_s18 + $0x80] sm:$0xff]   ;;  %v773_v15 = vld [vmem:[%s837_s18 + $0x88] sm:$0xff]  }
  0x25   : > { %v329_v30 = vmul.f32 %v679_v22, %v842_v0  ;;  %v330_v31 = vmul.f32 %v680_v23, %v842_v0  ;;  %v393_v32 = vadd.f32 %v851_v9, %v323_v24  ;;  %v394_v33 = vadd.f32 %v851_v9, %v324_v25  ;;  %v774_v20 = vld [vmem:[%s837_s18 + $0x90] sm:$0xff]   ;;  %v775_v21 = vld [vmem:[%s837_s18 + $0x98] sm:$0xff]  }
  0x26   : > { %v395_v34 = vadd.f32 %v851_v9, %v325_v26  ;;  %v396_v35 = vadd.f32 %v851_v9, %v326_v27  ;;  %v397_v36 = vadd.f32 %v851_v9, %v327_v28  ;;  %v398_v37 = vadd.f32 %v851_v9, %v328_v29 }
  0x27   : > { %v399_v38 = vadd.f32 %v851_v9, %v329_v30  ;;  %v400_v39 = vadd.f32 %v851_v9, %v330_v31  ;;  %v456_v42 = vmax.f32 %v393_v32, 0.0  ;;  %v457_v43 = vmax.f32 %v394_v33, 0.0 }
  0x28   : > { %v458_v44 = vmax.f32 %v395_v34, 0.0  ;;  %v459_v45 = vmax.f32 %v396_v35, 0.0  ;;  %v460_v48 = vmax.f32 %v397_v36, 0.0  ;;  %v461_v49 = vmax.f32 %v398_v37, 0.0 }
  0x29   : > { %v462_v50 = vmax.f32 %v399_v38, 0.0  ;;  %v463_v51 = vmax.f32 %v400_v39, 0.0  ;;  %519 = vst [vmem:[%s869_s26 + $0x80] sm:$0xff] %v456_v42  ;;  %520 = vst [vmem:[%s869_s26 + $0x88] sm:$0xff] %v457_v43  ;;  %v687_v54 = vunpack.c.l.bf16 %v769_v41  ;;  %v688_v55 = vunpack.c.h.bf16 %v769_v41 }
  0x2a   : > { %521 = vst [vmem:[%s869_s26 + $0x90] sm:$0xff] %v458_v44  ;;  %522 = vst [vmem:[%s869_s26 + $0x98] sm:$0xff] %v459_v45  ;;  %v691_v56 = vunpack.c.l.bf16 %v770_v46  ;;  %v692_v57 = vunpack.c.h.bf16 %v770_v46  ;;  %v695_v58 = vunpack.c.l.bf16 %v771_v47  ;;  %v696_v59 = vunpack.c.h.bf16 %v771_v47 }
  0x2b   : > { %523 = vst [vmem:[%s869_s26 + $0xa0] sm:$0xff] %v460_v48  ;;  %524 = vst [vmem:[%s869_s26 + $0xa8] sm:$0xff] %v461_v49  ;;  %v331_v60 = vmul.f32 %v683_v52, %v842_v0  ;;  %v332_v61 = vmul.f32 %v684_v53, %v842_v0  ;;  %v333_v62 = vmul.f32 %v687_v54, %v842_v0  ;;  %v699_v26 = vunpack.c.l.bf16 %v772_v14 }
  0x2c   : > { %525 = vst [vmem:[%s869_s26 + $0xb0] sm:$0xff] %v462_v50  ;;  %526 = vst [vmem:[%s869_s26 + $0xb8] sm:$0xff] %v463_v51  ;;  %v334_v63 = vmul.f32 %v688_v55, %v842_v0  ;;  %v335_v1 = vmul.f32 %v691_v56, %v842_v0  ;;  %v336_v2 = vmul.f32 %v692_v57, %v842_v0  ;;  %v700_v27 = vunpack.c.h.bf16 %v772_v14  ;;  %v776_v50 = vld [vmem:[%s837_s18 + $0xa0] sm:$0xff]   ;;  %v777_v51 = vld [vmem:[%s837_s18 + $0xa8] sm:$0xff]  }
  0x2d   : > { %v337_v3 = vmul.f32 %v695_v58, %v842_v0  ;;  %v338_v4 = vmul.f32 %v696_v59, %v842_v0  ;;  %v401_v5 = vadd.f32 %v851_v9, %v331_v60  ;;  %v402_v6 = vadd.f32 %v851_v9, %v332_v61  ;;  %v778_v56 = vld [vmem:[%s837_s18 + $0xb0] sm:$0xff]   ;;  %v779_v57 = vld [vmem:[%s837_s18 + $0xb8] sm:$0xff]  }
  0x2e   : > { %v403_v7 = vadd.f32 %v851_v9, %v333_v62  ;;  %v404_v8 = vadd.f32 %v851_v9, %v334_v63  ;;  %v405_v10 = vadd.f32 %v851_v9, %v335_v1  ;;  %v406_v11 = vadd.f32 %v851_v9, %v336_v2 }
  0x2f   : > { %v407_v12 = vadd.f32 %v851_v9, %v337_v3  ;;  %v408_v13 = vadd.f32 %v851_v9, %v338_v4  ;;  %v464_v16 = vmax.f32 %v401_v5, 0.0  ;;  %v465_v17 = vmax.f32 %v402_v6, 0.0 }
  0x30   : > { %v466_v18 = vmax.f32 %v403_v7, 0.0  ;;  %v467_v19 = vmax.f32 %v404_v8, 0.0  ;;  %v468_v22 = vmax.f32 %v405_v10, 0.0  ;;  %v469_v23 = vmax.f32 %v406_v11, 0.0 }
  0x31   : > { %v470_v24 = vmax.f32 %v407_v12, 0.0  ;;  %v471_v25 = vmax.f32 %v408_v13, 0.0  ;;  %527 = vst [vmem:[%s869_s26 + $0xc0] sm:$0xff] %v464_v16  ;;  %528 = vst [vmem:[%s869_s26 + $0xc8] sm:$0xff] %v465_v17  ;;  %v703_v28 = vunpack.c.l.bf16 %v773_v15  ;;  %v704_v29 = vunpack.c.h.bf16 %v773_v15 }
  0x32   : > { %529 = vst [vmem:[%s869_s26 + $0xd0] sm:$0xff] %v466_v18  ;;  %530 = vst [vmem:[%s869_s26 + $0xd8] sm:$0xff] %v467_v19  ;;  %v707_v30 = vunpack.c.l.bf16 %v774_v20  ;;  %v708_v31 = vunpack.c.h.bf16 %v774_v20  ;;  %v711_v32 = vunpack.c.l.bf16 %v775_v21  ;;  %v712_v33 = vunpack.c.h.bf16 %v775_v21 }
  0x33   : > { %531 = vst [vmem:[%s869_s26 + $0xe0] sm:$0xff] %v468_v22  ;;  %532 = vst [vmem:[%s869_s26 + $0xe8] sm:$0xff] %v469_v23  ;;  %v339_v34 = vmul.f32 %v699_v26, %v842_v0  ;;  %v340_v35 = vmul.f32 %v700_v27, %v842_v0  ;;  %v341_v36 = vmul.f32 %v703_v28, %v842_v0  ;;  %v715_v62 = vunpack.c.l.bf16 %v776_v50 }
  0x34   : > { %533 = vst [vmem:[%s869_s26 + $0xf0] sm:$0xff] %v470_v24  ;;  %534 = vst [vmem:[%s869_s26 + $0xf8] sm:$0xff] %v471_v25  ;;  %v342_v37 = vmul.f32 %v704_v29, %v842_v0  ;;  %v343_v38 = vmul.f32 %v707_v30, %v842_v0  ;;  %v344_v39 = vmul.f32 %v708_v31, %v842_v0  ;;  %v716_v63 = vunpack.c.h.bf16 %v776_v50  ;;  %v780_v24 = vld [vmem:[%s837_s18 + $0xc0] sm:$0xff]   ;;  %v781_v25 = vld [vmem:[%s837_s18 + $0xc8] sm:$0xff]  }
  0x35   : > { %v345_v40 = vmul.f32 %v711_v32, %v842_v0  ;;  %v346_v41 = vmul.f32 %v712_v33, %v842_v0  ;;  %v409_v42 = vadd.f32 %v851_v9, %v339_v34  ;;  %v410_v43 = vadd.f32 %v851_v9, %v340_v35  ;;  %v782_v30 = vld [vmem:[%s837_s18 + $0xd0] sm:$0xff]   ;;  %v783_v31 = vld [vmem:[%s837_s18 + $0xd8] sm:$0xff]  }
  0x36   : > { %v411_v44 = vadd.f32 %v851_v9, %v341_v36  ;;  %v412_v45 = vadd.f32 %v851_v9, %v342_v37  ;;  %v413_v46 = vadd.f32 %v851_v9, %v343_v38  ;;  %v414_v47 = vadd.f32 %v851_v9, %v344_v39 }
  0x37   : > { %v415_v48 = vadd.f32 %v851_v9, %v345_v40  ;;  %v416_v49 = vadd.f32 %v851_v9, %v346_v41  ;;  %v472_v52 = vmax.f32 %v409_v42, 0.0  ;;  %v473_v53 = vmax.f32 %v410_v43, 0.0 }
  0x38   : > { %v474_v54 = vmax.f32 %v411_v44, 0.0  ;;  %v475_v55 = vmax.f32 %v412_v45, 0.0  ;;  %v476_v58 = vmax.f32 %v413_v46, 0.0  ;;  %v477_v59 = vmax.f32 %v414_v47, 0.0 }
  0x39   : > { %v478_v60 = vmax.f32 %v415_v48, 0.0  ;;  %v479_v61 = vmax.f32 %v416_v49, 0.0  ;;  %535 = vst [vmem:[%s869_s26 + $0x100] sm:$0xff] %v472_v52  ;;  %536 = vst [vmem:[%s869_s26 + $0x108] sm:$0xff] %v473_v53  ;;  %v719_v1 = vunpack.c.l.bf16 %v777_v51  ;;  %v720_v2 = vunpack.c.h.bf16 %v777_v51 }
  0x3a   : > { %537 = vst [vmem:[%s869_s26 + $0x110] sm:$0xff] %v474_v54  ;;  %538 = vst [vmem:[%s869_s26 + $0x118] sm:$0xff] %v475_v55  ;;  %v723_v3 = vunpack.c.l.bf16 %v778_v56  ;;  %v724_v4 = vunpack.c.h.bf16 %v778_v56  ;;  %v727_v5 = vunpack.c.l.bf16 %v779_v57  ;;  %v728_v6 = vunpack.c.h.bf16 %v779_v57 }
  0x3b   : > { %539 = vst [vmem:[%s869_s26 + $0x120] sm:$0xff] %v476_v58  ;;  %540 = vst [vmem:[%s869_s26 + $0x128] sm:$0xff] %v477_v59  ;;  %v347_v7 = vmul.f32 %v715_v62, %v842_v0  ;;  %v348_v8 = vmul.f32 %v716_v63, %v842_v0  ;;  %v349_v10 = vmul.f32 %v719_v1, %v842_v0  ;;  %v731_v36 = vunpack.c.l.bf16 %v780_v24  ;;  %v786_v62 = vld [vmem:[%s837_s18 + $0xf0] sm:$0xff]  }
  0x3c   : > { %541 = vst [vmem:[%s869_s26 + $0x130] sm:$0xff] %v478_v60  ;;  %542 = vst [vmem:[%s869_s26 + $0x138] sm:$0xff] %v479_v61  ;;  %v350_v11 = vmul.f32 %v720_v2, %v842_v0  ;;  %v351_v12 = vmul.f32 %v723_v3, %v842_v0  ;;  %v352_v13 = vmul.f32 %v724_v4, %v842_v0  ;;  %v732_v37 = vunpack.c.h.bf16 %v780_v24  ;;  %v784_v60 = vld [vmem:[%s837_s18 + $0xe0] sm:$0xff]   ;;  %v785_v61 = vld [vmem:[%s837_s18 + $0xe8] sm:$0xff]  }
  0x3d   : > { %v353_v14 = vmul.f32 %v727_v5, %v842_v0  ;;  %v354_v15 = vmul.f32 %v728_v6, %v842_v0  ;;  %v417_v16 = vadd.f32 %v851_v9, %v347_v7  ;;  %v418_v17 = vadd.f32 %v851_v9, %v348_v8  ;;  %v236_v4 = vld [vmem:[%s837_s18 + $0xf8] sm:$0xf] }
  0x3e   : > { %v419_v18 = vadd.f32 %v851_v9, %v349_v10  ;;  %v420_v19 = vadd.f32 %v851_v9, %v350_v11  ;;  %v421_v20 = vadd.f32 %v851_v9, %v351_v12  ;;  %v422_v21 = vadd.f32 %v851_v9, %v352_v13 }
  0x3f   : > { %v423_v22 = vadd.f32 %v851_v9, %v353_v14  ;;  %v424_v23 = vadd.f32 %v851_v9, %v354_v15  ;;  %v480_v26 = vmax.f32 %v417_v16, 0.0  ;;  %v481_v27 = vmax.f32 %v418_v17, 0.0 }
  0x40   : > { %v482_v28 = vmax.f32 %v419_v18, 0.0  ;;  %v483_v29 = vmax.f32 %v420_v19, 0.0  ;;  %v484_v32 = vmax.f32 %v421_v20, 0.0  ;;  %v485_v33 = vmax.f32 %v422_v21, 0.0 }
  0x41   : > { %v486_v34 = vmax.f32 %v423_v22, 0.0  ;;  %v487_v35 = vmax.f32 %v424_v23, 0.0  ;;  %543 = vst [vmem:[%s869_s26 + $0x140] sm:$0xff] %v480_v26  ;;  %544 = vst [vmem:[%s869_s26 + $0x148] sm:$0xff] %v481_v27  ;;  %v735_v38 = vunpack.c.l.bf16 %v781_v25  ;;  %v736_v39 = vunpack.c.h.bf16 %v781_v25 }
  0x42   : > { %545 = vst [vmem:[%s869_s26 + $0x150] sm:$0xff] %v482_v28  ;;  %546 = vst [vmem:[%s869_s26 + $0x158] sm:$0xff] %v483_v29  ;;  %v739_v40 = vunpack.c.l.bf16 %v782_v30  ;;  %v740_v41 = vunpack.c.h.bf16 %v782_v30  ;;  %v743_v42 = vunpack.c.l.bf16 %v783_v31  ;;  %v744_v43 = vunpack.c.h.bf16 %v783_v31 }
  0x43   : > { %547 = vst [vmem:[%s869_s26 + $0x160] sm:$0xff] %v484_v32  ;;  %548 = vst [vmem:[%s869_s26 + $0x168] sm:$0xff] %v485_v33  ;;  %v355_v44 = vmul.f32 %v731_v36, %v842_v0  ;;  %v356_v45 = vmul.f32 %v732_v37, %v842_v0  ;;  %v357_v46 = vmul.f32 %v735_v38, %v842_v0  ;;  %v747_v10 = vunpack.c.l.bf16 %v784_v60 }
  0x44   : > { %549 = vst [vmem:[%s869_s26 + $0x170] sm:$0xff] %v486_v34  ;;  %550 = vst [vmem:[%s869_s26 + $0x178] sm:$0xff] %v487_v35  ;;  %v358_v47 = vmul.f32 %v736_v39, %v842_v0  ;;  %v359_v48 = vmul.f32 %v739_v40, %v842_v0  ;;  %v360_v49 = vmul.f32 %v740_v41, %v842_v0  ;;  %v748_v11 = vunpack.c.h.bf16 %v784_v60 }
  0x45   : > { %v361_v50 = vmul.f32 %v743_v42, %v842_v0  ;;  %v362_v51 = vmul.f32 %v744_v43, %v842_v0  ;;  %v425_v52 = vadd.f32 %v851_v9, %v355_v44  ;;  %v426_v53 = vadd.f32 %v851_v9, %v356_v45 }
  0x46   : > { %v427_v54 = vadd.f32 %v851_v9, %v357_v46  ;;  %v428_v55 = vadd.f32 %v851_v9, %v358_v47  ;;  %v429_v56 = vadd.f32 %v851_v9, %v359_v48  ;;  %v430_v57 = vadd.f32 %v851_v9, %v360_v49 }
  0x47   : > { %v431_v58 = vadd.f32 %v851_v9, %v361_v50  ;;  %v432_v59 = vadd.f32 %v851_v9, %v362_v51  ;;  %v488_v63 = vmax.f32 %v425_v52, 0.0  ;;  %v489_v1 = vmax.f32 %v426_v53, 0.0 }
  0x48   : > { %v490_v2 = vmax.f32 %v427_v54, 0.0  ;;  %v491_v3 = vmax.f32 %v428_v55, 0.0  ;;  %v492_v5 = vmax.f32 %v429_v56, 0.0  ;;  %v493_v6 = vmax.f32 %v430_v57, 0.0 }
  0x49   : > { %v494_v7 = vmax.f32 %v431_v58, 0.0  ;;  %v495_v8 = vmax.f32 %v432_v59, 0.0  ;;  %551 = vst [vmem:[%s869_s26 + $0x180] sm:$0xff] %v488_v63  ;;  %552 = vst [vmem:[%s869_s26 + $0x188] sm:$0xff] %v489_v1  ;;  %v751_v12 = vunpack.c.l.bf16 %v785_v61  ;;  %v752_v13 = vunpack.c.h.bf16 %v785_v61 }
  0x4a   : > { %553 = vst [vmem:[%s869_s26 + $0x190] sm:$0xff] %v490_v2  ;;  %554 = vst [vmem:[%s869_s26 + $0x198] sm:$0xff] %v491_v3  ;;  %v755_v14 = vunpack.c.l.bf16 %v786_v62  ;;  %v756_v15 = vunpack.c.h.bf16 %v786_v62  ;;  %v299_v16 = vunpack.c.l.bf16 %v236_v4  ;;  %v363_v17 = vmul.f32 %v747_v10, %v842_v0 }
  0x4b   : > { %555 = vst [vmem:[%s869_s26 + $0x1a0] sm:$0xff] %v492_v5  ;;  %556 = vst [vmem:[%s869_s26 + $0x1a8] sm:$0xff] %v493_v6  ;;  %v364_v18 = vmul.f32 %v748_v11, %v842_v0  ;;  %v365_v19 = vmul.f32 %v751_v12, %v842_v0  ;;  %v366_v20 = vmul.f32 %v752_v13, %v842_v0 }
  0x4c   : > { %557 = vst [vmem:[%s869_s26 + $0x1b0] sm:$0xff] %v494_v7  ;;  %558 = vst [vmem:[%s869_s26 + $0x1b8] sm:$0xff] %v495_v8  ;;  %v367_v21 = vmul.f32 %v755_v14, %v842_v0  ;;  %v368_v22 = vmul.f32 %v756_v15, %v842_v0  ;;  %v369_v23 = vmul.f32 %v842_v0, %v299_v16 }
  0x4d   : > { %v433_v24 = vadd.f32 %v851_v9, %v363_v17  ;;  %v434_v25 = vadd.f32 %v851_v9, %v364_v18  ;;  %v435_v26 = vadd.f32 %v851_v9, %v365_v19  ;;  %v436_v27 = vadd.f32 %v851_v9, %v366_v20 }
  0x4e   : > { %v437_v28 = vadd.f32 %v851_v9, %v367_v21  ;;  %v438_v29 = vadd.f32 %v851_v9, %v368_v22  ;;  %v439_v0 = vadd.f32 %v851_v9, %v369_v23 }
  0x4f   : > { %v496_v30 = vmax.f32 %v433_v24, 0.0  ;;  %v497_v31 = vmax.f32 %v434_v25, 0.0  ;;  %v498_v32 = vmax.f32 %v435_v26, 0.0  ;;  %v499_v33 = vmax.f32 %v436_v27, 0.0 }
  0x50   : > { %v500_v34 = vmax.f32 %v437_v28, 0.0  ;;  %v501_v35 = vmax.f32 %v438_v29, 0.0  ;;  %v502_v36 = vmax.f32 %v439_v0, 0.0 }
  0x51   : > { %559 = vst [vmem:[%s869_s26 + $0x1c0] sm:$0xff] %v496_v30  ;;  %560 = vst [vmem:[%s869_s26 + $0x1c8] sm:$0xff] %v497_v31 }
  0x52   : > { %561 = vst [vmem:[%s869_s26 + $0x1d0] sm:$0xff] %v498_v32  ;;  %562 = vst [vmem:[%s869_s26 + $0x1d8] sm:$0xff] %v499_v33 }
  0x53   : > { %563 = vst [vmem:[%s869_s26 + $0x1e0] sm:$0xff] %v500_v34  ;;  %564 = vst [vmem:[%s869_s26 + $0x1e8] sm:$0xff] %v501_v35 }
  0x54   : > { %565 = vst [vmem:[%s869_s26 + $0x1f0] sm:$0xff] %v502_v36 }
  0x55 PF: > { %s13_s12 = sadd.s32 1, %s801_s12  }
  0x56   : > { %p10_p4 = scmp.ge.s32.totalorder %s13_s12, 4  }
  0x58   :  { %12 = sbr.rel (!%p10_p4) target bundleno = 1 (0x1), region = 62 }

// kernel: apply_node_func.4
= control target key start
LH: loop header
LB: loop body
LE: loop exit
PB: predicated region body
PF: predicated region fallthrough
CT: control target
= control target key end

     0   :  { %s3227_s21 = smov 0   ;;  %s3695_s0 = inlined_call_operand.vmem [shape: bf16[1008,32], index: 0, kind: input, shape index: {}]   ;;  %s3696_s1 = inlined_call_operand.vmem [shape: bf16[32,128], index: 1, kind: input, shape index: {}]   ;;  %s3697_s2 = inlined_call_operand.vmem [shape: f32[1,128], index: 2, kind: input, shape index: {}]   ;;  %s3698_s3 = inlined_call_operand.vmem [shape: f32[1,128], index: 3, kind: input, shape index: {}]   ;;  %s3699_s4 = inlined_call_operand.vmem [shape: bf16[128,128], index: 4, kind: input, shape index: {}]   ;;  %s3700_s5 = inlined_call_operand.vmem [shape: bf16[1008,128], index: 5, kind: output, shape index: {0}]   ;;  %s3701_s6 = inlined_call_operand.vmem [shape: f32[16,128], index: 6, kind: output, shape index: {1}]  }
   0x1 LB: > { %s3233_s22 = sadd.s32 4294967295, %s3190_s21   ;;  %p2405_p0 = scmp.ge.s32.totalorder %s3190_s21, 1  ;;  %s3190_s21 = sphi %s3227_s21, %s17_s21  }
   0x2   : > { %p216_p1 = scmp.lt.s32.totalorder %s3190_s21, 3 }
   0x4   : > { %p217_p2 = pnand %p2405_p0, %p216_p1 }
   0x5   : > { %v3140_v0 = vld [vmem:[%s3696_s1] sm:$0xff] (!%p217_p2)   ;;  %s250_s25 = smul.u32 (!%p217_p2), 63, %s3233_s22  ;;  %v3141_v1 = vld [vmem:[%s3696_s1 + $0x8] sm:$0xff] (!%p217_p2)   ;;  %vm504_vm0 = vcmask (!%p217_p2), 261120   ;;  %v3176_v4 = vld [vmem:[%s3699_s4 + $0x10] sm:$0xff] (!%p217_p2)   ;;  %v1092_v42 = vlaneseq (!%p217_p2)  ;;  %p262_p4 = scmp.lt.s32.totalorder (!%p217_p2), %s3233_s22, 1 }
   0x6   : > { %220 = sbr.rel (%p217_p2) target bundleno = 604 (0x25c), region = 40  ;;  %2968 = vmatprep.subr.bf16.mxu0 (!%p217_p2), %v3140_v0  ;;  %v3168_v2 = vld [vmem:[%s3699_s4] sm:$0xff] (!%p217_p2)   ;;  %v3173_v3 = vld [vmem:[%s3699_s4 + $0x8] sm:$0xff] (!%p217_p2)   ;;  %v3177_v8 = vld [vmem:[%s3699_s4 + $0x18] sm:$0xff] (!%p217_p2)  }
   0x7   : > { %p251_p3 = scmp.lt.s32.totalorder (!%p217_p2), %s250_s25, 125  ;;  %2969 = vmatpush3.bf16.msra.mxu0 (!%p217_p2), %v3140_v0  ;;  %3116 = vmatprep.subr.bf16.mxu1 (!%p217_p2), %v3168_v2  ;;  %v3178_v9 = vld [vmem:[%s3699_s4 + $0x20] sm:$0xff] (!%p217_p2)   ;;  %v3179_v12 = vld [vmem:[%s3699_s4 + $0x28] sm:$0xff] (!%p217_p2)   ;;  %v3180_v19 = vld [vmem:[%s3699_s4 + $0x30] sm:$0xff] (!%p217_p2)   ;;  %v3342_v43 = vshrl.u32 (!%p217_p2), %v1092_v42, 7  ;;  %s1156_s27 = smul.u32 (!%p217_p2), 504, %s3233_s22 }
   0x8   : > { %2970 = vmatprep.subr.bf16.mxu0 (!%p217_p2), %v3141_v1  ;;  %3124 = vmatpush3.bf16.msra.mxu1 (!%p217_p2), %v3168_v2  ;;  %v3181_v20 = vld [vmem:[%s3699_s4 + $0x38] sm:$0xff] (!%p217_p2)   ;;  %v3349_v45 = vld [vmem:[%s3697_s2] ss:$0 sm:$0xff] (!%p217_p2) }
   0x9   : > { %3117 = vmatprep.subr.bf16.mxu1 (!%p217_p2), %v3173_v3  ;;  %v1094_v44 = vadd.s32 (!%p217_p2), 8, %v3342_v43  ;;  %v3351_v46 = vstv (!%p217_p2), %s1156_s27  ;;  %v1095_v47 = vadd.s32 (!%p217_p2), 16, %v3342_v43  ;;  %v1096_v48 = vadd.s32 (!%p217_p2), 24, %v3342_v43  ;;  %v3358_v50 = vld [vmem:[%s3698_s3] ss:$0 sm:$0xff] (!%p217_p2) }
   0xa   : > { %v1158_v53 = vadd.s32 (!%p217_p2), %v3351_v46, %v3342_v43 }
   0xb   : > { %2971 = vmatpush3.bf16.msra.mxu0 (!%p217_p2), %v3141_v1  ;;  %v1159_v54 = vadd.s32 (!%p217_p2), %v3351_v46, %v1094_v44  ;;  %v1160_v57 = vadd.s32 (!%p217_p2), %v3351_v46, %v1095_v47  ;;  %v1161_v61 = vadd.s32 (!%p217_p2), %v3351_v46, %v1096_v48  ;;  %v1097_v1 = vadd.s32 (!%p217_p2), 32, %v3342_v43 }
   0xc   : > { %3036 = vmatprep.subr.bf16.mxu0 (!%p217_p2), %v3168_v2  ;;  %3125 = vmatpush3.bf16.msra.mxu1 (!%p217_p2), %v3173_v3  ;;  %vm1221_vm1 = vcmp.lt.s32.totalorder (!%p217_p2), %v1158_v53, 1000 }
   0xd   : > { %s3703_s25 = smov (!%p251_p3, %s250_s25), 125  ;;  %3118 = vmatprep.subr.bf16.mxu1 %v3176_v4  ;;  %vm1222_vm2 = vcmp.lt.s32.totalorder %v1159_v54, 1000  ;;  %vm1223_vm3 = vcmp.lt.s32.totalorder %v1160_v57, 1000  ;;  %vm1224_vm4 = vcmp.lt.s32.totalorder %v1161_v61, 1000  ;;  %v1105_v57 = vadd.s32 96, %v3342_v43  ;;  %s3705_s22 = smov (!%p262_p4, %s3233_s22), 1 }
   0xe   : > { %s2406_s8 = sshll.u32 %s3703_s25, 2  ;;  %vm2485_vm5 = vmpackc.low %vm1222_vm2, %vm1221_vm1  ;;  %s2408_s25 = sshll.u32 %s3705_s22, 3 }
   0xf   : > { %s3258_s11 = scalar_lea.vmem %s3695_s0, %s2406_s8  ;;  %vm2488_vm6 = vmpackc.low %vm1224_vm4, %vm1223_vm3  ;;  %s3653_s15 = scalar_lea.vmem %s3700_s5, %s2406_s8 }
  0x10   : > { %v3142_v5 = vld [vmem:[%s3258_s11] sm:$0xff]   ;;  %v3143_v6 = vld [vmem:[%s3258_s11 + $0x8] sm:$0xff]   ;;  %v3144_v7 = vld [vmem:[%s3258_s11 + $0x10] sm:$0xff]   ;;  %3126 = vmatpush3.bf16.msra.mxu1 %v3176_v4  ;;  %s265_s17 = scalar_lea.vmem %s3701_s6, %s2408_s25 }
  0x11   : > { %2972 = vmatprep.mubr.msk.bf16.mxu0 %vm504_vm0, %v3142_v5  ;;  %3119 = vmatprep.subr.bf16.mxu1 %v3177_v8  ;;  %v3145_v10 = vld [vmem:[%s3258_s11 + $0x18] sm:$0xff]   ;;  %v3146_v11 = vld [vmem:[%s3258_s11 + $0x20] sm:$0xff]   ;;  %v3147_v13 = vld [vmem:[%s3258_s11 + $0x28] sm:$0xff]  }
  0x12   : > { %2973 = vmatmul.mubr.msk.bf16.vlgmr.msra.gmra.mrb[0].mxu0 %vm504_vm0, %v3143_v6  ;;  %v3148_v14 = vld [vmem:[%s3258_s11 + $0x30] sm:$0xff]   ;;  %v3149_v15 = vld [vmem:[%s3258_s11 + $0x38] sm:$0xff]   ;;  %v3150_v16 = vld [vmem:[%s3258_s11 + $0x40] sm:$0xff]  }
  0x13   : > { %2976 = vmatprep.mubr.msk.bf16.mxu0 %vm504_vm0, %v3144_v7  ;;  %3037 = vmatpush3.bf16.msra.mxu0 %v3168_v2  ;;  %v3151_v17 = vld [vmem:[%s3258_s11 + $0x48] sm:$0xff]   ;;  %v3152_v18 = vld [vmem:[%s3258_s11 + $0x50] sm:$0xff]   ;;  %v3153_v21 = vld [vmem:[%s3258_s11 + $0x58] sm:$0xff]   ;;  %v1100_v7 = vadd.s32 56, %v3342_v43 }
  0x14   : > { %3038 = vmatprep.subr.bf16.mxu0 %v3173_v3  ;;  %3127 = vmatpush3.bf16.msra.mxu1 %v3177_v8  ;;  %v3154_v22 = vld [vmem:[%s3258_s11 + $0x60] sm:$0xff]   ;;  %v3155_v23 = vld [vmem:[%s3258_s11 + $0x68] sm:$0xff]   ;;  %v3156_v24 = vld [vmem:[%s3258_s11 + $0x70] sm:$0xff]  }
  0x15   : > { %3120 = vmatprep.subr.bf16.mxu1 %v3178_v9  ;;  %v3157_v25 = vld [vmem:[%s3258_s11 + $0x78] sm:$0xff]   ;;  %v3158_v26 = vld [vmem:[%s3258_s11 + $0x80] sm:$0xff]   ;;  %v3159_v27 = vld [vmem:[%s3258_s11 + $0x88] sm:$0xff]  }
  0x16   : > { %v3160_v28 = vld [vmem:[%s3258_s11 + $0x90] sm:$0xff]   ;;  %v3161_v29 = vld [vmem:[%s3258_s11 + $0x98] sm:$0xff]   ;;  %v3162_v30 = vld [vmem:[%s3258_s11 + $0xa0] sm:$0xff]  }
  0x17   : > { %3039 = vmatpush3.bf16.msra.mxu0 %v3173_v3  ;;  %v3163_v31 = vld [vmem:[%s3258_s11 + $0xa8] sm:$0xff]   ;;  %v3164_v32 = vld [vmem:[%s3258_s11 + $0xb0] sm:$0xff]   ;;  %v3165_v33 = vld [vmem:[%s3258_s11 + $0xb8] sm:$0xff]   ;;  %v1098_v3 = vadd.s32 40, %v3342_v43 }
  0x18   : > { %3040 = vmatprep.subr.bf16.mxu0 %v3176_v4  ;;  %3128 = vmatpush3.bf16.msra.mxu1 %v3178_v9  ;;  %v3166_v34 = vld [vmem:[%s3258_s11 + $0xc0] sm:$0xff]   ;;  %v3167_v35 = vld [vmem:[%s3258_s11 + $0xc8] sm:$0xff]   ;;  %v3169_v36 = vld [vmem:[%s3258_s11 + $0xd0] sm:$0xff]  }
  0x19   : > { %3121 = vmatprep.subr.bf16.mxu1 %v3179_v12  ;;  %v3170_v37 = vld [vmem:[%s3258_s11 + $0xd8] sm:$0xff]   ;;  %v3171_v38 = vld [vmem:[%s3258_s11 + $0xe0] sm:$0xff]   ;;  %v3172_v39 = vld [vmem:[%s3258_s11 + $0xe8] sm:$0xff]  }
  0x1a   : > { %2977 = vmatmul.mubr.msk.bf16.gmra.mrb[4].mxu0 %vm504_vm0, %v3145_v10  ;;  %v3174_v40 = vld [vmem:[%s3258_s11 + $0xf0] sm:$0xff]   ;;  %v3175_v41 = vld [vmem:[%s3258_s11 + $0xf8] ss:$0 sps:$4 sm:$0xff]  }
  0x1b   : > { %2980 = vmatprep.mubr.msk.bf16.mxu0 %vm504_vm0, %v3146_v11  ;;  %3041 = vmatpush3.bf16.msra.mxu0 %v3176_v4  ;;  %v1099_v4 = vadd.s32 48, %v3342_v43 }
  0x1c   : > { %3042 = vmatprep.subr.bf16.mxu0 %v3177_v8  ;;  %3129 = vmatpush3.bf16.msra.mxu1 %v3179_v12 }
  0x1d   : > { %3122 = vmatprep.subr.bf16.mxu1 %v3180_v19 }
  0x1f   : > { %3043 = vmatpush3.bf16.msra.mxu0 %v3177_v8 }
  0x20   : > { %3044 = vmatprep.subr.bf16.mxu0 %v3178_v9  ;;  %3130 = vmatpush3.bf16.msra.mxu1 %v3180_v19 }
  0x21   : > { %3123 = vmatprep.subr.bf16.mxu1 %v3181_v20 }
  0x22   : > { %2981 = vmatmul.mubr.msk.bf16.gmra.mrb[8].mxu0 %vm504_vm0, %v3147_v13 }
  0x23   : > { %2984 = vmatprep.mubr.msk.bf16.mxu0 %vm504_vm0, %v3148_v14  ;;  %3045 = vmatpush3.bf16.msra.mxu0 %v3178_v9  ;;  %v1162_v14 = vadd.s32 %v3351_v46, %v1097_v1 }
  0x24   : > { %3046 = vmatprep.subr.bf16.mxu0 %v3179_v12  ;;  %3131 = vmatpush3.bf16.msra.mxu1 %v3181_v20 }
  0x25   : > { %vm1225_vm7 = vcmp.lt.s32.totalorder %v1162_v14, 1000 }
  0x27   : > { %3047 = vmatpush3.bf16.msra.mxu0 %v3179_v12 }
  0x28   : > { %3048 = vmatprep.subr.bf16.mxu0 %v3180_v19 }
  0x2a   : > { %2985 = vmatmul.mubr.msk.bf16.gmra.mrb[12].mxu0 %vm504_vm0, %v3149_v15 }
  0x2b   : > { %2988 = vmatprep.mubr.msk.bf16.mxu0 %vm504_vm0, %v3150_v16  ;;  %3049 = vmatpush3.bf16.msra.mxu0 %v3180_v19  ;;  %v1164_v19 = vadd.s32 %v3351_v46, %v1099_v4 }
  0x2c   : > { %3050 = vmatprep.subr.bf16.mxu0 %v3181_v20 }
  0x2d   : > { %vm1227_vm9 = vcmp.lt.s32.totalorder %v1164_v19, 1000  ;;  %v1109_v19 = vadd.s32 128, %v3342_v43 }
  0x2f   : > { %3051 = vmatpush3.bf16.msra.mxu0 %v3181_v20 }
  0x32   : > { %2989 = vmatmul.mubr.msk.bf16.gmra.mrb[16].mxu0 %vm504_vm0, %v3151_v17 }
  0x33   : > { %2992 = vmatprep.mubr.msk.bf16.mxu0 %vm504_vm0, %v3152_v18  ;;  %v1163_v18 = vadd.s32 %v3351_v46, %v1098_v3 }
  0x35   : > { %vm1226_vm8 = vcmp.lt.s32.totalorder %v1163_v18, 1000 }
  0x36   : > { %vm2491_vm11 = vmpackc.low %vm1226_vm8, %vm1225_vm7 }
  0x3a   : > { %2993 = vmatmul.mubr.msk.bf16.gmra.mrb[20].mxu0 %vm504_vm0, %v3153_v21 }
  0x3b   : > { %2996 = vmatprep.mubr.msk.bf16.mxu0 %vm504_vm0, %v3154_v22 }
  0x42   : > { %2997 = vmatmul.mubr.msk.bf16.gmra.mrb[24].mxu0 %vm504_vm0, %v3155_v23  ;;  %v1165_v23 = vadd.s32 %v3351_v46, %v1100_v7 }
  0x43   : > { %3000 = vmatprep.mubr.msk.bf16.mxu0 %vm504_vm0, %v3156_v24 }
  0x44   : > { %vm1228_vm10 = vcmp.lt.s32.totalorder %v1165_v23, 1000 }
  0x45   : > { %vm2494_vm12 = vmpackc.low %vm1228_vm10, %vm1227_vm9 }
  0x4a   : > { %3001 = vmatmul.mubr.msk.bf16.gmra.mrb[28].mxu0 %vm504_vm0, %v3157_v25 }
  0x4b   : > { %3004 = vmatprep.mubr.msk.bf16.mxu0 %vm504_vm0, %v3158_v26 }
  0x52   : > { %3005 = vmatmul.mubr.msk.bf16.gmra.mrb[32].mxu0 %vm504_vm0, %v3159_v27  ;;  %v1101_v27 = vadd.s32 64, %v3342_v43 }
  0x53   : > { %3008 = vmatprep.mubr.msk.bf16.mxu0 %vm504_vm0, %v3160_v28  ;;  %v1102_v28 = vadd.s32 72, %v3342_v43 }
  0x5a   : > { %3009 = vmatmul.mubr.msk.bf16.gmra.mrb[36].mxu0 %vm504_vm0, %v3161_v29 }
  0x5b   : > { %3012 = vmatprep.mubr.msk.bf16.mxu0 %vm504_vm0, %v3162_v30  ;;  %v1103_v30 = vadd.s32 80, %v3342_v43 }
  0x5d   : > { %v1168_v48 = vadd.s32 %v3351_v46, %v1103_v30 }
  0x5f   : > { %vm1231_vm15 = vcmp.lt.s32.totalorder %v1168_v48, 1000  ;;  %v1113_v48 = vadd.s32 160, %v3342_v43 }
  0x62   : > { %3013 = vmatmul.mubr.msk.bf16.gmra.mrb[40].mxu0 %vm504_vm0, %v3163_v31 }
  0x63   : > { %3016 = vmatprep.mubr.msk.bf16.mxu0 %vm504_vm0, %v3164_v32 }
  0x6a   : > { %3017 = vmatmul.mubr.msk.bf16.gmra.mrb[44].mxu0 %vm504_vm0, %v3165_v33  ;;  %v1104_v33 = vadd.s32 88, %v3342_v43 }
  0x6b   : > { %3020 = vmatprep.mubr.msk.bf16.mxu0 %vm504_vm0, %v3166_v34 }
  0x6c   : > { %v1169_v53 = vadd.s32 %v3351_v46, %v1104_v33 }
  0x72   : > { %3021 = vmatmul.mubr.msk.bf16.gmra.mrb[48].mxu0 %vm504_vm0, %v3167_v35 }
  0x73   : > { %3024 = vmatprep.mubr.msk.bf16.mxu0 %vm504_vm0, %v3169_v36 }
  0x7a   : > { %3025 = vmatmul.mubr.msk.bf16.gmra.mrb[52].mxu0 %vm504_vm0, %v3170_v37 }
  0x7b   : > { %3028 = vmatprep.mubr.msk.bf16.mxu0 %vm504_vm0, %v3171_v38 }
  0x82   : > { %3029 = vmatmul.mubr.msk.bf16.gmra.mrb[56].mxu0 %vm504_vm0, %v3172_v39 }
  0x83   : > { %3032 = vmatprep.mubr.msk.bf16.mxu0 %vm504_vm0, %v3174_v40  ;;  %v1166_v40 = vadd.s32 %v3351_v46, %v1101_v27 }
  0x85   : > { %vm1229_vm13 = vcmp.lt.s32.totalorder %v1166_v40, 1000 }
  0x8a   : > { %3033 = vmatmul.mubr.msk.bf16.gmra.mrb[60].mxu0 %vm504_vm0, %v3175_v41  ;;  %v1167_v41 = vadd.s32 %v3351_v46, %v1102_v28  ;;  %vm1232_vm0 = vcmp.lt.s32.totalorder %v1169_v53, 1000 }
  0x8b   : > { %vm2500_vm2 = vmpackc.low %vm1232_vm0, %vm1231_vm15 }
  0x8c   : > { %vm1230_vm14 = vcmp.lt.s32.totalorder %v1167_v41, 1000 }
  0x8d   : > { %vm2497_vm1 = vmpackc.low %vm1230_vm14, %vm1229_vm13 }
  0xe5   : > { %v2974_v49 = vpop.f32.mrb[0].mxu0 }
  0xe6   : > { %v898_v51 = vmul.f32 %v2974_v49, %v3349_v45  ;;  %v635_v52 = vpop.f32.mrb[1].mxu0 }
  0xe7   : > { %v896_v55 = vmul.f32 %v3349_v45, %v635_v52  ;;  %v2975_v56 = vpop.f32.mrb[2].mxu0 }
  0xe8   : > { %v968_v58 = vadd.f32 %v3358_v50, %v898_v51  ;;  %v899_v59 = vmul.f32 %v2975_v56, %v3349_v45  ;;  %v638_v60 = vpop.f32.mrb[3].mxu0 }
  0xe9   : > { %v966_v62 = vadd.f32 %v3358_v50, %v896_v55  ;;  %v897_v63 = vmul.f32 %v3349_v45, %v638_v60  ;;  %v1107_v60 = vadd.s32 112, %v3342_v43 }
  0xea   : > { %v969_v0 = vadd.f32 %v3358_v50, %v899_v59  ;;  %v1031_v5 = vmax.f32 %v968_v58, 0.0  ;;  %v1106_v59 = vadd.s32 104, %v3342_v43 }
  0xeb   : > { %v967_v2 = vadd.f32 %v3358_v50, %v897_v63  ;;  %v1029_v8 = vmax.f32 %v966_v62, 0.0  ;;  %v1108_v63 = vadd.s32 120, %v3342_v43 }
  0xec   : > { %v1032_v6 = vmax.f32 %v969_v0, 0.0 }
  0xed   : > { %v1030_v9 = vmax.f32 %v967_v2, 0.0  ;;  %v2978_v10 = vpop.f32.mrb[4].mxu0 }
  0xee   : > { %v2489_v11 = vpack.c.bf16 %v1032_v6, %v1031_v5  ;;  %v902_v12 = vmul.f32 %v2978_v10, %v3349_v45  ;;  %v651_v13 = vpop.f32.mrb[5].mxu0  ;;  %v1170_v6 = vadd.s32 %v3351_v46, %v1105_v57  ;;  %v1171_v10 = vadd.s32 %v3351_v46, %v1106_v59 }
  0xef   : > { %v2486_v15 = vpack.c.bf16 %v1030_v9, %v1029_v8  ;;  %v900_v16 = vmul.f32 %v3349_v45, %v651_v13  ;;  %v2979_v17 = vpop.f32.mrb[6].mxu0 }
  0xf0   : > { %v972_v20 = vadd.f32 %v3358_v50, %v902_v12  ;;  %v903_v21 = vmul.f32 %v2979_v17, %v3349_v45  ;;  %v654_v22 = vpop.f32.mrb[7].mxu0  ;;  %vm1233_vm3 = vcmp.lt.s32.totalorder %v1170_v6, 1000  ;;  %vm1234_vm4 = vcmp.lt.s32.totalorder %v1171_v10, 1000 }
  0xf1   : > { %v970_v24 = vadd.f32 %v3358_v50, %v900_v16  ;;  %v901_v25 = vmul.f32 %v3349_v45, %v654_v22  ;;  %3052 = vmatprep.mubr.msk.bf16.mxu0 %vm2485_vm5, %v2486_v15  ;;  %v1173_v15 = vadd.s32 %v3351_v46, %v1108_v63  ;;  %v1111_v22 = vadd.s32 144, %v3342_v43  ;;  %vm2503_vm7 = vmpackc.low %vm1234_vm4, %vm1233_vm3 }
  0xf2   : > { %v973_v26 = vadd.f32 %v3358_v50, %v903_v21  ;;  %3053 = vmatmul.mubr.msk.bf16.vlgmr.msra.gmra.mrb[64].mxu0 %vm2488_vm6, %v2489_v11  ;;  %v1035_v31 = vmax.f32 %v972_v20, 0.0  ;;  %v1172_v11 = vadd.s32 %v3351_v46, %v1107_v60  ;;  %v1110_v20 = vadd.s32 136, %v3342_v43 }
  0xf3   : > { %v971_v29 = vadd.f32 %v3358_v50, %v901_v25  ;;  %v1033_v34 = vmax.f32 %v970_v24, 0.0  ;;  %vm1236_vm6 = vcmp.lt.s32.totalorder %v1173_v15, 1000  ;;  %v1112_v25 = vadd.s32 152, %v3342_v43 }
  0xf4   : > { %v1036_v32 = vmax.f32 %v973_v26, 0.0  ;;  %vm1235_vm5 = vcmp.lt.s32.totalorder %v1172_v11, 1000  ;;  %v1175_v33 = vadd.s32 %v3351_v46, %v1110_v20  ;;  %v1117_v11 = vadd.s32 192, %v3342_v43 }
  0xf5   : > { %v1034_v35 = vmax.f32 %v971_v29, 0.0  ;;  %v2982_v36 = vpop.f32.mrb[8].mxu0  ;;  %vm2506_vm8 = vmpackc.low %vm1236_vm6, %vm1235_vm5  ;;  %v1177_v41 = vadd.s32 %v3351_v46, %v1112_v25 }
  0xf6   : > { %v2495_v37 = vpack.c.bf16 %v1036_v32, %v1035_v31  ;;  %v906_v38 = vmul.f32 %v2982_v36, %v3349_v45  ;;  %v667_v39 = vpop.f32.mrb[9].mxu0  ;;  %v1174_v32 = vadd.s32 %v3351_v46, %v1109_v19  ;;  %vm1238_vm10 = vcmp.lt.s32.totalorder %v1175_v33, 1000 }
  0xf7   : > { %v904_v42 = vmul.f32 %v3349_v45, %v667_v39  ;;  %v2983_v44 = vpop.f32.mrb[10].mxu0  ;;  %v2492_v47 = vpack.c.bf16 %v1034_v35, %v1033_v34 }
  0xf8   : > { %v976_v49 = vadd.f32 %v3358_v50, %v906_v38  ;;  %v907_v51 = vmul.f32 %v2983_v44, %v3349_v45  ;;  %v670_v52 = vpop.f32.mrb[11].mxu0  ;;  %vm1237_vm9 = vcmp.lt.s32.totalorder %v1174_v32, 1000 }
  0xf9   : > { %v974_v54 = vadd.f32 %v3358_v50, %v904_v42  ;;  %v905_v55 = vmul.f32 %v3349_v45, %v670_v52  ;;  %3056 = vmatprep.mubr.msk.bf16.mxu1 %vm2491_vm11, %v2492_v47  ;;  %v1115_v52 = vadd.s32 176, %v3342_v43  ;;  %vm2509_vm13 = vmpackc.low %vm1238_vm10, %vm1237_vm9 }
  0xfa   : > { %v977_v56 = vadd.f32 %v3358_v50, %v907_v51  ;;  %3057 = vmatmul.mubr.msk.bf16.vlgmr.msra.gmra.mrb[0].mxu1 %vm2494_vm12, %v2495_v37  ;;  %v1039_v61 = vmax.f32 %v976_v49, 0.0  ;;  %v1176_v37 = vadd.s32 %v3351_v46, %v1111_v22  ;;  %v1114_v51 = vadd.s32 168, %v3342_v43 }
  0xfb   : > { %v975_v58 = vadd.f32 %v3358_v50, %v905_v55  ;;  %v1037_v0 = vmax.f32 %v974_v54, 0.0  ;;  %vm1240_vm12 = vcmp.lt.s32.totalorder %v1177_v41, 1000  ;;  %v1116_v55 = vadd.s32 184, %v3342_v43 }
  0xfc   : > { %v1040_v62 = vmax.f32 %v977_v56, 0.0  ;;  %vm1239_vm11 = vcmp.lt.s32.totalorder %v1176_v37, 1000  ;;  %v1121_v37 = vadd.s32 224, %v3342_v43 }
  0xfd   : > { %v1038_v1 = vmax.f32 %v975_v58, 0.0  ;;  %v2986_v2 = vpop.f32.mrb[12].mxu0  ;;  %vm2512_vm14 = vmpackc.low %vm1240_vm12, %vm1239_vm11 }
  0xfe   : > { %v2501_v3 = vpack.c.bf16 %v1040_v62, %v1039_v61  ;;  %v910_v4 = vmul.f32 %v2986_v2, %v3349_v45  ;;  %v683_v5 = vpop.f32.mrb[13].mxu0  ;;  %v1178_v62 = vadd.s32 %v3351_v46, %v1113_v48  ;;  %v1179_v2 = vadd.s32 %v3351_v46, %v1114_v51 }
  0xff   : > { %v2498_v7 = vpack.c.bf16 %v1038_v1, %v1037_v0  ;;  %v908_v8 = vmul.f32 %v3349_v45, %v683_v5  ;;  %v2987_v9 = vpop.f32.mrb[14].mxu0 }
 0x100   : > { %v980_v12 = vadd.f32 %v3358_v50, %v910_v4  ;;  %v911_v13 = vmul.f32 %v2987_v9, %v3349_v45  ;;  %v686_v14 = vpop.f32.mrb[15].mxu0  ;;  %vm1241_vm15 = vcmp.lt.s32.totalorder %v1178_v62, 1000  ;;  %vm1242_vm0 = vcmp.lt.s32.totalorder %v1179_v2, 1000 }
 0x101   : > { %v978_v16 = vadd.f32 %v3358_v50, %v908_v8  ;;  %v909_v17 = vmul.f32 %v3349_v45, %v686_v14  ;;  %3060 = vmatprep.mubr.msk.bf16.mxu1 %vm2497_vm1, %v2498_v7  ;;  %v1181_v7 = vadd.s32 %v3351_v46, %v1116_v55  ;;  %v1119_v14 = vadd.s32 208, %v3342_v43  ;;  %vm2515_vm3 = vmpackc.low %vm1242_vm0, %vm1241_vm15 }
 0x102   : > { %v981_v18 = vadd.f32 %v3358_v50, %v911_v13  ;;  %3061 = vmatmul.mubr.msk.bf16.gmra.mrb[4].mxu1 %vm2500_vm2, %v2501_v3  ;;  %v1043_v23 = vmax.f32 %v980_v12, 0.0  ;;  %v1180_v3 = vadd.s32 %v3351_v46, %v1115_v52  ;;  %v1118_v12 = vadd.s32 200, %v3342_v43 }
 0x103   : > { %v979_v21 = vadd.f32 %v3358_v50, %v909_v17  ;;  %v1041_v26 = vmax.f32 %v978_v16, 0.0  ;;  %vm1244_vm2 = vcmp.lt.s32.totalorder %v1181_v7, 1000  ;;  %v1120_v17 = vadd.s32 216, %v3342_v43 }
 0x104   : > { %v1044_v24 = vmax.f32 %v981_v18, 0.0  ;;  %vm1243_vm1 = vcmp.lt.s32.totalorder %v1180_v3, 1000  ;;  %v1183_v25 = vadd.s32 %v3351_v46, %v1118_v12  ;;  %v1125_v3 = vadd.s32 256, %v3342_v43 }
 0x105   : > { %v1042_v27 = vmax.f32 %v979_v21, 0.0  ;;  %v2990_v28 = vpop.f32.mrb[16].mxu0  ;;  %vm2518_vm4 = vmpackc.low %vm1244_vm2, %vm1243_vm1  ;;  %v1185_v33 = vadd.s32 %v3351_v46, %v1120_v17 }
 0x106   : > { %v2507_v29 = vpack.c.bf16 %v1044_v24, %v1043_v23  ;;  %v914_v30 = vmul.f32 %v2990_v28, %v3349_v45  ;;  %v699_v31 = vpop.f32.mrb[17].mxu0  ;;  %v1182_v24 = vadd.s32 %v3351_v46, %v1117_v11  ;;  %vm1246_vm6 = vcmp.lt.s32.totalorder %v1183_v25, 1000 }
 0x107   : > { %v2504_v34 = vpack.c.bf16 %v1042_v27, %v1041_v26  ;;  %v912_v35 = vmul.f32 %v3349_v45, %v699_v31  ;;  %v2991_v36 = vpop.f32.mrb[18].mxu0 }
 0x108   : > { %v984_v38 = vadd.f32 %v3358_v50, %v914_v30  ;;  %v915_v39 = vmul.f32 %v2991_v36, %v3349_v45  ;;  %v702_v40 = vpop.f32.mrb[19].mxu0  ;;  %vm1245_vm5 = vcmp.lt.s32.totalorder %v1182_v24, 1000 }
 0x109   : > { %v982_v42 = vadd.f32 %v3358_v50, %v912_v35  ;;  %v913_v44 = vmul.f32 %v3349_v45, %v702_v40  ;;  %3064 = vmatprep.mubr.msk.bf16.mxu1 %vm2503_vm7, %v2504_v34  ;;  %v1123_v40 = vadd.s32 240, %v3342_v43  ;;  %vm2521_vm9 = vmpackc.low %vm1246_vm6, %vm1245_vm5 }
 0x10a   : > { %v985_v47 = vadd.f32 %v3358_v50, %v915_v39  ;;  %3065 = vmatmul.mubr.msk.bf16.gmra.mrb[8].mxu1 %vm2506_vm8, %v2507_v29  ;;  %v1047_v53 = vmax.f32 %v984_v38, 0.0  ;;  %v1184_v29 = vadd.s32 %v3351_v46, %v1119_v14  ;;  %v1122_v39 = vadd.s32 232, %v3342_v43 }
 0x10b   : > { %v983_v49 = vadd.f32 %v3358_v50, %v913_v44  ;;  %v1045_v56 = vmax.f32 %v982_v42, 0.0  ;;  %vm1248_vm8 = vcmp.lt.s32.totalorder %v1185_v33, 1000  ;;  %v1124_v44 = vadd.s32 248, %v3342_v43 }
 0x10c   : > { %v1048_v54 = vmax.f32 %v985_v47, 0.0  ;;  %vm1247_vm7 = vcmp.lt.s32.totalorder %v1184_v29, 1000  ;;  %v1129_v29 = vadd.s32 288, %v3342_v43 }
 0x10d   : > { %v1046_v57 = vmax.f32 %v983_v49, 0.0  ;;  %v2994_v58 = vpop.f32.mrb[20].mxu0  ;;  %vm2524_vm10 = vmpackc.low %vm1248_vm8, %vm1247_vm7 }
 0x10e   : > { %v2513_v59 = vpack.c.bf16 %v1048_v54, %v1047_v53  ;;  %v918_v60 = vmul.f32 %v2994_v58, %v3349_v45  ;;  %v715_v61 = vpop.f32.mrb[21].mxu0  ;;  %v1186_v54 = vadd.s32 %v3351_v46, %v1121_v37  ;;  %v1187_v58 = vadd.s32 %v3351_v46, %v1122_v39 }
 0x10f   : > { %v2510_v63 = vpack.c.bf16 %v1046_v57, %v1045_v56  ;;  %v916_v0 = vmul.f32 %v3349_v45, %v715_v61  ;;  %v2995_v1 = vpop.f32.mrb[22].mxu0 }
 0x110   : > { %v988_v4 = vadd.f32 %v3358_v50, %v918_v60  ;;  %v919_v5 = vmul.f32 %v2995_v1, %v3349_v45  ;;  %v718_v6 = vpop.f32.mrb[23].mxu0  ;;  %vm1249_vm11 = vcmp.lt.s32.totalorder %v1186_v54, 1000  ;;  %vm1250_vm12 = vcmp.lt.s32.totalorder %v1187_v58, 1000 }
 0x111   : > { %v986_v8 = vadd.f32 %v3358_v50, %v916_v0  ;;  %v917_v9 = vmul.f32 %v3349_v45, %v718_v6  ;;  %3068 = vmatprep.mubr.msk.bf16.mxu1 %vm2509_vm13, %v2510_v63  ;;  %v1189_v63 = vadd.s32 %v3351_v46, %v1124_v44  ;;  %v1127_v6 = vadd.s32 272, %v3342_v43  ;;  %vm2527_vm15 = vmpackc.low %vm1250_vm12, %vm1249_vm11 }
 0x112   : > { %v989_v10 = vadd.f32 %v3358_v50, %v919_v5  ;;  %3069 = vmatmul.mubr.msk.bf16.gmra.mrb[12].mxu1 %vm2512_vm14, %v2513_v59  ;;  %v1051_v15 = vmax.f32 %v988_v4, 0.0  ;;  %v1188_v59 = vadd.s32 %v3351_v46, %v1123_v40  ;;  %v1126_v4 = vadd.s32 264, %v3342_v43 }
 0x113   : > { %v987_v13 = vadd.f32 %v3358_v50, %v917_v9  ;;  %v1049_v18 = vmax.f32 %v986_v8, 0.0  ;;  %vm1252_vm14 = vcmp.lt.s32.totalorder %v1189_v63, 1000  ;;  %v1128_v9 = vadd.s32 280, %v3342_v43 }
 0x114   : > { %v1052_v16 = vmax.f32 %v989_v10, 0.0  ;;  %vm1251_vm13 = vcmp.lt.s32.totalorder %v1188_v59, 1000  ;;  %v1191_v17 = vadd.s32 %v3351_v46, %v1126_v4  ;;  %v1133_v59 = vadd.s32 320, %v3342_v43 }
 0x115   : > { %v1050_v19 = vmax.f32 %v987_v13, 0.0  ;;  %v2998_v20 = vpop.f32.mrb[24].mxu0  ;;  %vm2530_vm0 = vmpackc.low %vm1252_vm14, %vm1251_vm13  ;;  %v1193_v25 = vadd.s32 %v3351_v46, %v1128_v9 }
 0x116   : > { %v2519_v21 = vpack.c.bf16 %v1052_v16, %v1051_v15  ;;  %v922_v22 = vmul.f32 %v2998_v20, %v3349_v45  ;;  %v731_v23 = vpop.f32.mrb[25].mxu0  ;;  %v1190_v16 = vadd.s32 %v3351_v46, %v1125_v3  ;;  %vm1254_vm2 = vcmp.lt.s32.totalorder %v1191_v17, 1000 }
 0x117   : > { %v2516_v26 = vpack.c.bf16 %v1050_v19, %v1049_v18  ;;  %v920_v27 = vmul.f32 %v3349_v45, %v731_v23  ;;  %v2999_v28 = vpop.f32.mrb[26].mxu0 }
 0x118   : > { %v992_v30 = vadd.f32 %v3358_v50, %v922_v22  ;;  %v923_v31 = vmul.f32 %v2999_v28, %v3349_v45  ;;  %v734_v32 = vpop.f32.mrb[27].mxu0  ;;  %vm1253_vm1 = vcmp.lt.s32.totalorder %v1190_v16, 1000 }
 0x119   : > { %v990_v34 = vadd.f32 %v3358_v50, %v920_v27  ;;  %v921_v35 = vmul.f32 %v3349_v45, %v734_v32  ;;  %3072 = vmatprep.mubr.msk.bf16.mxu1 %vm2515_vm3, %v2516_v26  ;;  %v1131_v32 = vadd.s32 304, %v3342_v43  ;;  %vm2533_vm5 = vmpackc.low %vm1254_vm2, %vm1253_vm1 }
 0x11a   : > { %v993_v36 = vadd.f32 %v3358_v50, %v923_v31  ;;  %3073 = vmatmul.mubr.msk.bf16.gmra.mrb[16].mxu1 %vm2518_vm4, %v2519_v21  ;;  %v1055_v41 = vmax.f32 %v992_v30, 0.0  ;;  %v1192_v21 = vadd.s32 %v3351_v46, %v1127_v6  ;;  %v1130_v31 = vadd.s32 296, %v3342_v43 }
 0x11b   : > { %v991_v38 = vadd.f32 %v3358_v50, %v921_v35  ;;  %v1053_v47 = vmax.f32 %v990_v34, 0.0  ;;  %vm1256_vm4 = vcmp.lt.s32.totalorder %v1193_v25, 1000  ;;  %v1132_v35 = vadd.s32 312, %v3342_v43 }
 0x11c   : > { %v1056_v42 = vmax.f32 %v993_v36, 0.0  ;;  %vm1255_vm3 = vcmp.lt.s32.totalorder %v1192_v21, 1000  ;;  %v1137_v21 = vadd.s32 352, %v3342_v43 }
 0x11d   : > { %v1054_v48 = vmax.f32 %v991_v38, 0.0  ;;  %v3002_v49 = vpop.f32.mrb[28].mxu0  ;;  %vm2536_vm6 = vmpackc.low %vm1256_vm4, %vm1255_vm3 }
 0x11e   : > { %v2525_v51 = vpack.c.bf16 %v1056_v42, %v1055_v41  ;;  %v926_v52 = vmul.f32 %v3002_v49, %v3349_v45  ;;  %v747_v53 = vpop.f32.mrb[29].mxu0  ;;  %v1194_v42 = vadd.s32 %v3351_v46, %v1129_v29  ;;  %v1195_v49 = vadd.s32 %v3351_v46, %v1130_v31 }
 0x11f   : > { %v2522_v55 = vpack.c.bf16 %v1054_v48, %v1053_v47  ;;  %v924_v56 = vmul.f32 %v3349_v45, %v747_v53  ;;  %v3003_v57 = vpop.f32.mrb[30].mxu0 }
 0x120   : > { %v996_v60 = vadd.f32 %v3358_v50, %v926_v52  ;;  %v927_v61 = vmul.f32 %v3003_v57, %v3349_v45  ;;  %v750_v62 = vpop.f32.mrb[31].mxu0  ;;  %vm1257_vm7 = vcmp.lt.s32.totalorder %v1194_v42, 1000  ;;  %vm1258_vm8 = vcmp.lt.s32.totalorder %v1195_v49, 1000 }
 0x121   : > { %v994_v0 = vadd.f32 %v3358_v50, %v924_v56  ;;  %v925_v1 = vmul.f32 %v3349_v45, %v750_v62  ;;  %3076 = vmatprep.mubr.msk.bf16.mxu1 %vm2521_vm9, %v2522_v55  ;;  %v1197_v55 = vadd.s32 %v3351_v46, %v1132_v35  ;;  %v1135_v62 = vadd.s32 336, %v3342_v43  ;;  %vm2539_vm11 = vmpackc.low %vm1258_vm8, %vm1257_vm7 }
 0x122   : > { %v997_v2 = vadd.f32 %v3358_v50, %v927_v61  ;;  %3077 = vmatmul.mubr.msk.bf16.gmra.mrb[20].mxu1 %vm2524_vm10, %v2525_v51  ;;  %v1059_v7 = vmax.f32 %v996_v60, 0.0  ;;  %v1196_v51 = vadd.s32 %v3351_v46, %v1131_v32  ;;  %v1134_v60 = vadd.s32 328, %v3342_v43 }
 0x123   : > { %v995_v5 = vadd.f32 %v3358_v50, %v925_v1  ;;  %v1057_v10 = vmax.f32 %v994_v0, 0.0  ;;  %vm1260_vm10 = vcmp.lt.s32.totalorder %v1197_v55, 1000  ;;  %v1136_v1 = vadd.s32 344, %v3342_v43 }
 0x124   : > { %v1060_v8 = vmax.f32 %v997_v2, 0.0  ;;  %vm1259_vm9 = vcmp.lt.s32.totalorder %v1196_v51, 1000  ;;  %v1199_v9 = vadd.s32 %v3351_v46, %v1134_v60  ;;  %v1141_v51 = vadd.s32 384, %v3342_v43 }
 0x125   : > { %v1058_v11 = vmax.f32 %v995_v5, 0.0  ;;  %v3006_v12 = vpop.f32.mrb[32].mxu0  ;;  %vm2542_vm12 = vmpackc.low %vm1260_vm10, %vm1259_vm9  ;;  %v1201_v17 = vadd.s32 %v3351_v46, %v1136_v1 }
 0x126   : > { %v2531_v13 = vpack.c.bf16 %v1060_v8, %v1059_v7  ;;  %v930_v14 = vmul.f32 %v3006_v12, %v3349_v45  ;;  %v763_v15 = vpop.f32.mrb[33].mxu0  ;;  %v1198_v8 = vadd.s32 %v3351_v46, %v1133_v59  ;;  %vm1262_vm14 = vcmp.lt.s32.totalorder %v1199_v9, 1000 }
 0x127   : > { %v2528_v18 = vpack.c.bf16 %v1058_v11, %v1057_v10  ;;  %v928_v19 = vmul.f32 %v3349_v45, %v763_v15  ;;  %v3007_v20 = vpop.f32.mrb[34].mxu0 }
 0x128   : > { %v1000_v22 = vadd.f32 %v3358_v50, %v930_v14  ;;  %v931_v23 = vmul.f32 %v3007_v20, %v3349_v45  ;;  %v766_v24 = vpop.f32.mrb[35].mxu0  ;;  %vm1261_vm13 = vcmp.lt.s32.totalorder %v1198_v8, 1000 }
 0x129   : > { %v998_v26 = vadd.f32 %v3358_v50, %v928_v19  ;;  %v929_v27 = vmul.f32 %v3349_v45, %v766_v24  ;;  %3080 = vmatprep.mubr.msk.bf16.mxu1 %vm2527_vm15, %v2528_v18  ;;  %v1139_v24 = vadd.s32 368, %v3342_v43  ;;  %vm2545_vm1 = vmpackc.low %vm1262_vm14, %vm1261_vm13 }
 0x12a   : > { %v1001_v28 = vadd.f32 %v3358_v50, %v931_v23  ;;  %3081 = vmatmul.mubr.msk.bf16.gmra.mrb[24].mxu1 %vm2530_vm0, %v2531_v13  ;;  %v1063_v33 = vmax.f32 %v1000_v22, 0.0  ;;  %v1200_v13 = vadd.s32 %v3351_v46, %v1135_v62  ;;  %v1138_v23 = vadd.s32 360, %v3342_v43 }
 0x12b   : > { %v999_v30 = vadd.f32 %v3358_v50, %v929_v27  ;;  %v1061_v36 = vmax.f32 %v998_v26, 0.0  ;;  %vm1264_vm0 = vcmp.lt.s32.totalorder %v1201_v17, 1000  ;;  %v1140_v27 = vadd.s32 376, %v3342_v43 }
 0x12c   : > { %v1064_v34 = vmax.f32 %v1001_v28, 0.0  ;;  %vm1263_vm15 = vcmp.lt.s32.totalorder %v1200_v13, 1000  ;;  %v1145_v13 = vadd.s32 416, %v3342_v43 }
 0x12d   : > { %v1062_v37 = vmax.f32 %v999_v30, 0.0  ;;  %v3010_v38 = vpop.f32.mrb[36].mxu0  ;;  %vm2548_vm2 = vmpackc.low %vm1264_vm0, %vm1263_vm15 }
 0x12e   : > { %v2537_v39 = vpack.c.bf16 %v1064_v34, %v1063_v33  ;;  %v934_v40 = vmul.f32 %v3010_v38, %v3349_v45  ;;  %v779_v41 = vpop.f32.mrb[37].mxu0  ;;  %v1202_v34 = vadd.s32 %v3351_v46, %v1137_v21  ;;  %v1203_v38 = vadd.s32 %v3351_v46, %v1138_v23 }
 0x12f   : > { %v2534_v44 = vpack.c.bf16 %v1062_v37, %v1061_v36  ;;  %v932_v47 = vmul.f32 %v3349_v45, %v779_v41  ;;  %v3011_v48 = vpop.f32.mrb[38].mxu0 }
 0x130   : > { %v1004_v52 = vadd.f32 %v3358_v50, %v934_v40  ;;  %v935_v53 = vmul.f32 %v3011_v48, %v3349_v45  ;;  %v782_v54 = vpop.f32.mrb[39].mxu0  ;;  %vm1265_vm3 = vcmp.lt.s32.totalorder %v1202_v34, 1000  ;;  %vm1266_vm4 = vcmp.lt.s32.totalorder %v1203_v38, 1000 }
 0x131   : > { %v1002_v56 = vadd.f32 %v3358_v50, %v932_v47  ;;  %v933_v57 = vmul.f32 %v3349_v45, %v782_v54  ;;  %3084 = vmatprep.mubr.msk.bf16.mxu1 %vm2533_vm5, %v2534_v44  ;;  %v1205_v44 = vadd.s32 %v3351_v46, %v1140_v27  ;;  %v1143_v54 = vadd.s32 400, %v3342_v43  ;;  %vm2551_vm7 = vmpackc.low %vm1266_vm4, %vm1265_vm3 }
 0x132   : > { %v1005_v58 = vadd.f32 %v3358_v50, %v935_v53  ;;  %3085 = vmatmul.mubr.msk.bf16.gmra.mrb[28].mxu1 %vm2536_vm6, %v2537_v39  ;;  %v1067_v63 = vmax.f32 %v1004_v52, 0.0  ;;  %v1204_v39 = vadd.s32 %v3351_v46, %v1139_v24  ;;  %v1142_v52 = vadd.s32 392, %v3342_v43 }
 0x133   : > { %v1003_v61 = vadd.f32 %v3358_v50, %v933_v57  ;;  %v1065_v2 = vmax.f32 %v1002_v56, 0.0  ;;  %vm1268_vm6 = vcmp.lt.s32.totalorder %v1205_v44, 1000  ;;  %v1144_v57 = vadd.s32 408, %v3342_v43 }
 0x134   : > { %v1068_v0 = vmax.f32 %v1005_v58, 0.0  ;;  %vm1267_vm5 = vcmp.lt.s32.totalorder %v1204_v39, 1000  ;;  %v1207_v1 = vadd.s32 %v3351_v46, %v1142_v52  ;;  %v1149_v39 = vadd.s32 448, %v3342_v43 }
 0x135   : > { %v1066_v3 = vmax.f32 %v1003_v61, 0.0  ;;  %v3014_v4 = vpop.f32.mrb[40].mxu0  ;;  %vm2554_vm8 = vmpackc.low %vm1268_vm6, %vm1267_vm5  ;;  %v1209_v9 = vadd.s32 %v3351_v46, %v1144_v57 }
 0x136   : > { %v2543_v5 = vpack.c.bf16 %v1068_v0, %v1067_v63  ;;  %v938_v6 = vmul.f32 %v3014_v4, %v3349_v45  ;;  %v795_v7 = vpop.f32.mrb[41].mxu0  ;;  %v1206_v0 = vadd.s32 %v3351_v46, %v1141_v51  ;;  %vm1270_vm10 = vcmp.lt.s32.totalorder %v1207_v1, 1000 }
 0x137   : > { %v2540_v10 = vpack.c.bf16 %v1066_v3, %v1065_v2  ;;  %v936_v11 = vmul.f32 %v3349_v45, %v795_v7  ;;  %v3015_v12 = vpop.f32.mrb[42].mxu0 }
 0x138   : > { %v1008_v14 = vadd.f32 %v3358_v50, %v938_v6  ;;  %v939_v15 = vmul.f32 %v3015_v12, %v3349_v45  ;;  %v798_v16 = vpop.f32.mrb[43].mxu0  ;;  %vm1269_vm9 = vcmp.lt.s32.totalorder %v1206_v0, 1000 }
 0x139   : > { %v1006_v18 = vadd.f32 %v3358_v50, %v936_v11  ;;  %v937_v19 = vmul.f32 %v3349_v45, %v798_v16  ;;  %3088 = vmatprep.mubr.msk.bf16.mxu1 %vm2539_vm11, %v2540_v10  ;;  %v1147_v16 = vadd.s32 432, %v3342_v43  ;;  %vm2557_vm13 = vmpackc.low %vm1270_vm10, %vm1269_vm9 }
 0x13a   : > { %v1009_v20 = vadd.f32 %v3358_v50, %v939_v15  ;;  %3089 = vmatmul.mubr.msk.bf16.gmra.mrb[32].mxu1 %vm2542_vm12, %v2543_v5  ;;  %v1071_v25 = vmax.f32 %v1008_v14, 0.0  ;;  %v1208_v5 = vadd.s32 %v3351_v46, %v1143_v54  ;;  %v1146_v15 = vadd.s32 424, %v3342_v43 }
 0x13b   : > { %v1007_v22 = vadd.f32 %v3358_v50, %v937_v19  ;;  %v1069_v28 = vmax.f32 %v1006_v18, 0.0  ;;  %vm1272_vm12 = vcmp.lt.s32.totalorder %v1209_v9, 1000  ;;  %v1148_v19 = vadd.s32 440, %v3342_v43 }
 0x13c   : > { %v1072_v26 = vmax.f32 %v1009_v20, 0.0  ;;  %vm1271_vm11 = vcmp.lt.s32.totalorder %v1208_v5, 1000 }
 0x13d   : > { %v1070_v29 = vmax.f32 %v1007_v22, 0.0  ;;  %v3018_v30 = vpop.f32.mrb[44].mxu0  ;;  %vm2560_vm14 = vmpackc.low %vm1272_vm12, %vm1271_vm11 }
 0x13e   : > { %v2549_v31 = vpack.c.bf16 %v1072_v26, %v1071_v25  ;;  %v942_v32 = vmul.f32 %v3018_v30, %v3349_v45  ;;  %v811_v33 = vpop.f32.mrb[45].mxu0  ;;  %v1210_v26 = vadd.s32 %v3351_v46, %v1145_v13  ;;  %v1211_v30 = vadd.s32 %v3351_v46, %v1146_v15 }
 0x13f   : > { %v2546_v35 = vpack.c.bf16 %v1070_v29, %v1069_v28  ;;  %v940_v36 = vmul.f32 %v3349_v45, %v811_v33  ;;  %v3019_v37 = vpop.f32.mrb[46].mxu0 }
 0x140   : > { %v1012_v40 = vadd.f32 %v3358_v50, %v942_v32  ;;  %v943_v41 = vmul.f32 %v3019_v37, %v3349_v45  ;;  %v814_v42 = vpop.f32.mrb[47].mxu0  ;;  %vm1273_vm15 = vcmp.lt.s32.totalorder %v1210_v26, 1000  ;;  %vm1274_vm0 = vcmp.lt.s32.totalorder %v1211_v30, 1000 }
 0x141   : > { %v1010_v47 = vadd.f32 %v3358_v50, %v940_v36  ;;  %v941_v48 = vmul.f32 %v3349_v45, %v814_v42  ;;  %3092 = vmatprep.mubr.msk.bf16.mxu1 %vm2545_vm1, %v2546_v35  ;;  %v1213_v35 = vadd.s32 %v3351_v46, %v1148_v19  ;;  %v1151_v42 = vadd.s32 464, %v3342_v43  ;;  %vm2563_vm3 = vmpackc.low %vm1274_vm0, %vm1273_vm15 }
 0x142   : > { %v1013_v49 = vadd.f32 %v3358_v50, %v943_v41  ;;  %3093 = vmatmul.mubr.msk.bf16.gmra.mrb[36].mxu1 %vm2548_vm2, %v2549_v31  ;;  %v1075_v55 = vmax.f32 %v1012_v40, 0.0  ;;  %v1212_v31 = vadd.s32 %v3351_v46, %v1147_v16  ;;  %v1150_v40 = vadd.s32 456, %v3342_v43 }
 0x143   : > { %v1011_v53 = vadd.f32 %v3358_v50, %v941_v48  ;;  %v1073_v58 = vmax.f32 %v1010_v47, 0.0  ;;  %vm1276_vm2 = vcmp.lt.s32.totalorder %v1213_v35, 1000  ;;  %v1152_v48 = vadd.s32 472, %v3342_v43 }
 0x144   : > { %v1076_v56 = vmax.f32 %v1013_v49, 0.0  ;;  %vm1275_vm1 = vcmp.lt.s32.totalorder %v1212_v31, 1000  ;;  %v1215_v57 = vadd.s32 %v3351_v46, %v1150_v40  ;;  %vm2309_vm0 = vcmask 1040384  }
 0x145   : > { %v1074_v59 = vmax.f32 %v1011_v53, 0.0  ;;  %v3022_v60 = vpop.f32.mrb[48].mxu0  ;;  %vm2566_vm4 = vmpackc.low %vm1276_vm2, %vm1275_vm1  ;;  %v1217_v1 = vadd.s32 %v3351_v46, %v1152_v48  ;;  %vm2311_vm1 = vcmask 1041408  }
 0x146   : > { %v2555_v61 = vpack.c.bf16 %v1076_v56, %v1075_v55  ;;  %v946_v62 = vmul.f32 %v3022_v60, %v3349_v45  ;;  %v827_v63 = vpop.f32.mrb[49].mxu0  ;;  %v1214_v56 = vadd.s32 %v3351_v46, %v1149_v39  ;;  %vm1278_vm6 = vcmp.lt.s32.totalorder %v1215_v57, 1000 }
 0x147   : > { %v2552_v2 = vpack.c.bf16 %v1074_v59, %v1073_v58  ;;  %v944_v3 = vmul.f32 %v3349_v45, %v827_v63  ;;  %v3023_v4 = vpop.f32.mrb[50].mxu0 }
 0x148   : > { %v1016_v6 = vadd.f32 %v3358_v50, %v946_v62  ;;  %v947_v7 = vmul.f32 %v3023_v4, %v3349_v45  ;;  %v830_v8 = vpop.f32.mrb[51].mxu0  ;;  %vm1277_vm5 = vcmp.lt.s32.totalorder %v1214_v56, 1000 }
 0x149   : > { %v1014_v10 = vadd.f32 %v3358_v50, %v944_v3  ;;  %v945_v11 = vmul.f32 %v3349_v45, %v830_v8  ;;  %3096 = vmatprep.mubr.msk.bf16.mxu1 %vm2551_vm7, %v2552_v2  ;;  %vm2569_vm9 = vmpackc.low %vm1278_vm6, %vm1277_vm5 }
 0x14a   : > { %v1017_v12 = vadd.f32 %v3358_v50, %v947_v7  ;;  %3097 = vmatmul.mubr.msk.bf16.gmra.mrb[40].mxu1 %vm2554_vm8, %v2555_v61  ;;  %v1079_v17 = vmax.f32 %v1016_v6, 0.0  ;;  %v1216_v61 = vadd.s32 %v3351_v46, %v1151_v42  ;;  %v1153_v6 = vadd.s32 480, %v3342_v43 }
 0x14b   : > { %v1015_v14 = vadd.f32 %v3358_v50, %v945_v11  ;;  %v1077_v20 = vmax.f32 %v1014_v10, 0.0  ;;  %v1154_v7 = vadd.s32 488, %v3342_v43  ;;  %vm1280_vm8 = vcmp.lt.s32.totalorder %v1217_v1, 1000 }
 0x14c   : > { %v1080_v18 = vmax.f32 %v1017_v12, 0.0  ;;  %vm1279_vm7 = vcmp.lt.s32.totalorder %v1216_v61, 1000  ;;  %v1155_v10 = vadd.s32 496, %v3342_v43  ;;  %v1218_v43 = vadd.s32 %v3351_v46, %v1153_v6 }
 0x14d   : > { %v1078_v21 = vmax.f32 %v1015_v14, 0.0  ;;  %v3026_v22 = vpop.f32.mrb[52].mxu0  ;;  %vm2572_vm10 = vmpackc.low %vm1280_vm8, %vm1279_vm7 }
 0x14e   : > { %v2561_v23 = vpack.c.bf16 %v1080_v18, %v1079_v17  ;;  %v950_v24 = vmul.f32 %v3026_v22, %v3349_v45  ;;  %v843_v25 = vpop.f32.mrb[53].mxu0  ;;  %v3182_v17 = vld [vmem:[%s3697_s2] ss:$0 sm:$0xff]  ;;  %vm1281_vm11 = vcmp.lt.s32.totalorder %v1218_v43, 1000 }
 0x14f   : > { %v2558_v27 = vpack.c.bf16 %v1078_v21, %v1077_v20  ;;  %v948_v28 = vmul.f32 %v3349_v45, %v843_v25  ;;  %v3027_v29 = vpop.f32.mrb[54].mxu0  ;;  %v1219_v20 = vadd.s32 %v3351_v46, %v1154_v7 }
 0x150   : > { %v1020_v32 = vadd.f32 %v3358_v50, %v950_v24  ;;  %v951_v33 = vmul.f32 %v3027_v29, %v3349_v45  ;;  %v846_v34 = vpop.f32.mrb[55].mxu0 }
 0x151   : > { %v1018_v36 = vadd.f32 %v3358_v50, %v948_v28  ;;  %v949_v37 = vmul.f32 %v3349_v45, %v846_v34  ;;  %3100 = vmatprep.mubr.msk.bf16.mxu1 %vm2557_vm13, %v2558_v27  ;;  %vm1282_vm12 = vcmp.lt.s32.totalorder %v1219_v20, 1000 }
 0x152   : > { %v1021_v38 = vadd.f32 %v3358_v50, %v951_v33  ;;  %3101 = vmatmul.mubr.msk.bf16.gmra.mrb[44].mxu1 %vm2560_vm14, %v2561_v23  ;;  %v1083_v44 = vmax.f32 %v1020_v32, 0.0  ;;  %v1220_v23 = vadd.s32 %v3351_v46, %v1155_v10  ;;  %vm2575_vm14 = vmpackc.low %vm1282_vm12, %vm1281_vm11 }
 0x153   : > { %v1019_v41 = vadd.f32 %v3358_v50, %v949_v37  ;;  %v1081_v49 = vmax.f32 %v1018_v36, 0.0 }
 0x154   : > { %v1084_v47 = vmax.f32 %v1021_v38, 0.0  ;;  %vm1283_vm13 = vcmp.lt.s32.totalorder %v1220_v23, 1000 }
 0x155   : > { %v1082_v51 = vmax.f32 %v1019_v41, 0.0  ;;  %v3030_v52 = vpop.f32.mrb[56].mxu0  ;;  %vm2578_vm15 = vmpackc.low %vm1283_vm13, %vm1283_vm13 }
 0x156   : > { %v2567_v53 = vpack.c.bf16 %v1084_v47, %v1083_v44  ;;  %v954_v54 = vmul.f32 %v3030_v52, %v3349_v45  ;;  %v859_v55 = vpop.f32.mrb[57].mxu0 }
 0x157   : > { %v2564_v58 = vpack.c.bf16 %v1082_v51, %v1081_v49  ;;  %v952_v59 = vmul.f32 %v3349_v45, %v859_v55  ;;  %v3031_v60 = vpop.f32.mrb[58].mxu0 }
 0x158   : > { %v1024_v62 = vadd.f32 %v3358_v50, %v954_v54  ;;  %v955_v63 = vmul.f32 %v3031_v60, %v3349_v45  ;;  %v862_v0 = vpop.f32.mrb[59].mxu0 }
 0x159   : > { %v1022_v2 = vadd.f32 %v3358_v50, %v952_v59  ;;  %v953_v3 = vmul.f32 %v3349_v45, %v862_v0  ;;  %3104 = vmatprep.mubr.msk.bf16.mxu1 %vm2563_vm3, %v2564_v58 }
 0x15a   : > { %v1025_v4 = vadd.f32 %v3358_v50, %v955_v63  ;;  %3105 = vmatmul.mubr.msk.bf16.gmra.mrb[48].mxu1 %vm2566_vm4, %v2567_v53  ;;  %v1087_v8 = vmax.f32 %v1024_v62, 0.0 }
 0x15b   : > { %v1023_v5 = vadd.f32 %v3358_v50, %v953_v3  ;;  %v1085_v11 = vmax.f32 %v1022_v2, 0.0 }
 0x15c   : > { %v1088_v9 = vmax.f32 %v1025_v4, 0.0 }
 0x15d   : > { %v1086_v12 = vmax.f32 %v1023_v5, 0.0  ;;  %v3034_v13 = vpop.f32.mrb[60].mxu0 }
 0x15e   : > { %v2573_v14 = vpack.c.bf16 %v1088_v9, %v1087_v8  ;;  %v958_v15 = vmul.f32 %v3034_v13, %v3349_v45  ;;  %v875_v16 = vpop.f32.mrb[61].mxu0  ;;  %v3183_v45 = vld [vmem:[%s3698_s3] ss:$0 sm:$0xff] }
 0x15f   : > { %v2570_v50 = vpack.c.bf16 %v1086_v12, %v1085_v11  ;;  %v956_v18 = vmul.f32 %v3182_v17, %v875_v16  ;;  %v3035_v19 = vpop.f32.mrb[62].mxu0 }
 0x160   : > { %v1028_v21 = vadd.f32 %v3183_v45, %v958_v15  ;;  %v878_v22 = vpop.f32.mrb[63].mxu0 }
 0x161   : > { %v1026_v24 = vadd.f32 %v3183_v45, %v956_v18  ;;  %v957_v25 = vmul.f32 %v3182_v17, %v878_v22  ;;  %3108 = vmatprep.mubr.msk.bf16.mxu1 %vm2569_vm9, %v2570_v50 }
 0x162   : > { %3109 = vmatmul.mubr.msk.bf16.gmra.mrb[52].mxu1 %vm2572_vm10, %v2573_v14  ;;  %v1091_v27 = vmax.f32 %v1028_v21, 0.0 }
 0x163   : > { %v1027_v26 = vadd.f32 %v3183_v45, %v957_v25  ;;  %v1089_v28 = vmax.f32 %v1026_v24, 0.0 }
 0x164   : > { %v2579_v31 = vpack.c.bf16 %v1091_v27, %v1091_v27 }
 0x165   : > { %v1090_v29 = vmax.f32 %v1027_v26, 0.0 }
 0x167   : > { %v2576_v30 = vpack.c.bf16 %v1090_v29, %v1089_v28 }
 0x169   : > { %3112 = vmatprep.mubr.msk.bf16.mxu1 %vm2575_vm14, %v2576_v30 }
 0x16a   : > { %3113 = vmatmul.mubr.msk.bf16.gmra.mrb[56].mxu1 %vm2578_vm15, %v2579_v31 }
 0x1c5   : > { %v3054_v32 = vpop.f32.mrb[64].mxu0 }
 0x1c6   : > { %v1477_v46 = vpop.f32.mrb[65].mxu0 }
 0x1c7   : > { %v3055_v33 = vpop.f32.mrb[66].mxu0 }
 0x1c8   : > { %v1732_v34 = vpack.c.bf16 %v3055_v33, %v3054_v32  ;;  %v1480_v35 = vpop.f32.mrb[67].mxu0 }
 0x1c9   : > { %v1731_v36 = vpack.c.bf16 %v1480_v35, %v1477_v46 }
 0x1ca   : > { %2864 = vst [vmem:[%s3653_s15 + $0x8] sm:$0xff] %v1732_v34   ;;  %v2049_v37 = vunpack.c.l.bf16 %v1732_v34  ;;  %v2050_v40 = vunpack.c.h.bf16 %v1732_v34 }
 0x1cb   : > { %2713 = vst [vmem:[%s3653_s15] sm:$0xff] %v1731_v36   ;;  %v2047_v38 = vunpack.c.l.bf16 %v1731_v36  ;;  %v2048_v39 = vunpack.c.h.bf16 %v1731_v36 }
 0x1cc   : > { %v2180_v49 = vmul.f32 %v2049_v37, %v2049_v37  ;;  %v2181_v56 = vmul.f32 %v2050_v40, %v2050_v40 }
 0x1cd   : > { %v2110_v41 = vadd.f32 %v2048_v39, %v2047_v38  ;;  %v2178_v42 = vmul.f32 %v2047_v38, %v2047_v38  ;;  %v2179_v44 = vmul.f32 %v2048_v39, %v2048_v39  ;;  %v3058_v47 = vpop.f32.mrb[0].mxu1 }
 0x1ce   : > { %v1493_v48 = vpop.f32.mrb[1].mxu1 }
 0x1cf   : > { %v2111_v51 = vadd.f32 %v2110_v41, %v2049_v37  ;;  %v2241_v52 = vadd.f32 %v2179_v44, %v2178_v42  ;;  %v3059_v53 = vpop.f32.mrb[2].mxu1 }
 0x1d0   : > { %v1734_v54 = vpack.c.bf16 %v3059_v53, %v3058_v47  ;;  %v1496_v55 = vpop.f32.mrb[3].mxu1 }
 0x1d1   : > { %v2242_v57 = vadd.f32 %v2241_v52, %v2180_v49  ;;  %v1733_v58 = vpack.c.bf16 %v1496_v55, %v1493_v48  ;;  %v2112_v59 = vadd.f32 %v2111_v51, %v2050_v40 }
 0x1d2   : > { %2866 = vst [vmem:[%s3653_s15 + $0x18] sm:$0xff] %v1734_v54   ;;  %v2053_v63 = vunpack.c.l.bf16 %v1734_v54  ;;  %v2054_v3 = vunpack.c.h.bf16 %v1734_v54 }
 0x1d3   : > { %2865 = vst [vmem:[%s3653_s15 + $0x10] sm:$0xff] %v1733_v58   ;;  %v2051_v60 = vunpack.c.l.bf16 %v1733_v58  ;;  %v2052_v61 = vunpack.c.h.bf16 %v1733_v58  ;;  %v2243_v62 = vadd.f32 %v2242_v57, %v2181_v56 }
 0x1d4   : > { %v2184_v11 = vmul.f32 %v2053_v63, %v2053_v63  ;;  %v2185_v15 = vmul.f32 %v2054_v3, %v2054_v3 }
 0x1d5   : > { %v2113_v0 = vadd.f32 %v2112_v59, %v2051_v60  ;;  %v2182_v1 = vmul.f32 %v2051_v60, %v2051_v60  ;;  %v3062_v2 = vpop.f32.mrb[4].mxu1  ;;  %v2183_v6 = vmul.f32 %v2052_v61, %v2052_v61 }
 0x1d6   : > { %v1509_v4 = vpop.f32.mrb[5].mxu1 }
 0x1d7   : > { %v2114_v5 = vadd.f32 %v2113_v0, %v2052_v61  ;;  %v2244_v7 = vadd.f32 %v2243_v62, %v2182_v1  ;;  %v3063_v8 = vpop.f32.mrb[6].mxu1 }
 0x1d8   : > { %v1736_v9 = vpack.c.bf16 %v3063_v8, %v3062_v2  ;;  %v1512_v10 = vpop.f32.mrb[7].mxu1 }
 0x1d9   : > { %v2115_v12 = vadd.f32 %v2114_v5, %v2053_v63  ;;  %v2245_v13 = vadd.f32 %v2244_v7, %v2183_v6  ;;  %v1735_v14 = vpack.c.bf16 %v1512_v10, %v1509_v4 }
 0x1da   : > { %2868 = vst [vmem:[%s3653_s15 + $0x28] sm:$0xff] %v1736_v9   ;;  %v2057_v19 = vunpack.c.l.bf16 %v1736_v9  ;;  %v2058_v22 = vunpack.c.h.bf16 %v1736_v9 }
 0x1db   : > { %v2246_v16 = vadd.f32 %v2245_v13, %v2184_v11  ;;  %2867 = vst [vmem:[%s3653_s15 + $0x20] sm:$0xff] %v1735_v14   ;;  %v2055_v50 = vunpack.c.l.bf16 %v1735_v14  ;;  %v2056_v17 = vunpack.c.h.bf16 %v1735_v14  ;;  %v2116_v18 = vadd.f32 %v2115_v12, %v2054_v3 }
 0x1dc   : > { %v2188_v30 = vmul.f32 %v2057_v19, %v2057_v19  ;;  %v2189_v33 = vmul.f32 %v2058_v22, %v2058_v22 }
 0x1dd   : > { %v2117_v43 = vadd.f32 %v2116_v18, %v2055_v50  ;;  %v2186_v20 = vmul.f32 %v2055_v50, %v2055_v50  ;;  %v2247_v45 = vadd.f32 %v2246_v16, %v2185_v15  ;;  %v3066_v21 = vpop.f32.mrb[8].mxu1  ;;  %v2187_v25 = vmul.f32 %v2056_v17, %v2056_v17 }
 0x1de   : > { %v1525_v23 = vpop.f32.mrb[9].mxu1 }
 0x1df   : > { %v2118_v24 = vadd.f32 %v2117_v43, %v2056_v17  ;;  %v2248_v26 = vadd.f32 %v2247_v45, %v2186_v20  ;;  %v3067_v27 = vpop.f32.mrb[10].mxu1 }
 0x1e0   : > { %v1738_v28 = vpack.c.bf16 %v3067_v27, %v3066_v21  ;;  %v1528_v29 = vpop.f32.mrb[11].mxu1 }
 0x1e1   : > { %v2119_v31 = vadd.f32 %v2118_v24, %v2057_v19  ;;  %v2249_v32 = vadd.f32 %v2248_v26, %v2187_v25  ;;  %v1737_v46 = vpack.c.bf16 %v1528_v29, %v1525_v23 }
 0x1e2   : > { %2870 = vst [vmem:[%s3653_s15 + $0x38] sm:$0xff] %v1738_v28   ;;  %v2061_v38 = vunpack.c.l.bf16 %v1738_v28  ;;  %v2062_v44 = vunpack.c.h.bf16 %v1738_v28 }
 0x1e3   : > { %v2250_v34 = vadd.f32 %v2249_v32, %v2188_v30  ;;  %2869 = vst [vmem:[%s3653_s15 + $0x30] sm:$0xff] %v1737_v46   ;;  %v2059_v35 = vunpack.c.l.bf16 %v1737_v46  ;;  %v2060_v36 = vunpack.c.h.bf16 %v1737_v46  ;;  %v2120_v37 = vadd.f32 %v2119_v31, %v2058_v22 }
 0x1e4   : > { %v2192_v55 = vmul.f32 %v2061_v38, %v2061_v38  ;;  %v2193_v59 = vmul.f32 %v2062_v44, %v2062_v44 }
 0x1e5   : > { %v2121_v39 = vadd.f32 %v2120_v37, %v2059_v35  ;;  %v2190_v40 = vmul.f32 %v2059_v35, %v2059_v35  ;;  %v2251_v41 = vadd.f32 %v2250_v34, %v2189_v33  ;;  %v3070_v42 = vpop.f32.mrb[12].mxu1  ;;  %v2191_v49 = vmul.f32 %v2060_v36, %v2060_v36 }
 0x1e6   : > { %v1541_v47 = vpop.f32.mrb[13].mxu1 }
 0x1e7   : > { %v2122_v48 = vadd.f32 %v2121_v39, %v2060_v36  ;;  %v2252_v51 = vadd.f32 %v2251_v41, %v2190_v40  ;;  %v3071_v52 = vpop.f32.mrb[14].mxu1 }
 0x1e8   : > { %v1740_v53 = vpack.c.bf16 %v3071_v52, %v3070_v42  ;;  %v1544_v54 = vpop.f32.mrb[15].mxu1 }
 0x1e9   : > { %v2123_v56 = vadd.f32 %v2122_v48, %v2061_v38  ;;  %v2253_v57 = vadd.f32 %v2252_v51, %v2191_v49  ;;  %v1739_v58 = vpack.c.bf16 %v1544_v54, %v1541_v47 }
 0x1ea   : > { %2872 = vst [vmem:[%s3653_s15 + $0x48] sm:$0xff] %v1740_v53   ;;  %v2065_v0 = vunpack.c.l.bf16 %v1740_v53  ;;  %v2066_v5 = vunpack.c.h.bf16 %v1740_v53 }
 0x1eb   : > { %v2254_v60 = vadd.f32 %v2253_v57, %v2192_v55  ;;  %2871 = vst [vmem:[%s3653_s15 + $0x40] sm:$0xff] %v1739_v58   ;;  %v2063_v61 = vunpack.c.l.bf16 %v1739_v58  ;;  %v2064_v62 = vunpack.c.h.bf16 %v1739_v58  ;;  %v2124_v63 = vadd.f32 %v2123_v56, %v2062_v44 }
 0x1ec   : > { %v2196_v13 = vmul.f32 %v2065_v0, %v2065_v0  ;;  %v2197_v50 = vmul.f32 %v2066_v5, %v2066_v5 }
 0x1ed   : > { %v2125_v1 = vadd.f32 %v2124_v63, %v2063_v61  ;;  %v2194_v2 = vmul.f32 %v2063_v61, %v2063_v61  ;;  %v2255_v3 = vadd.f32 %v2254_v60, %v2193_v59  ;;  %v3074_v4 = vpop.f32.mrb[16].mxu1  ;;  %v2195_v8 = vmul.f32 %v2064_v62, %v2064_v62 }
 0x1ee   : > { %v1557_v6 = vpop.f32.mrb[17].mxu1 }
 0x1ef   : > { %v2126_v7 = vadd.f32 %v2125_v1, %v2064_v62  ;;  %v2256_v9 = vadd.f32 %v2255_v3, %v2194_v2  ;;  %v3075_v10 = vpop.f32.mrb[18].mxu1 }
 0x1f0   : > { %v1742_v11 = vpack.c.bf16 %v3075_v10, %v3074_v4  ;;  %v1560_v12 = vpop.f32.mrb[19].mxu1 }
 0x1f1   : > { %v2127_v14 = vadd.f32 %v2126_v7, %v2065_v0  ;;  %v2257_v15 = vadd.f32 %v2256_v9, %v2195_v8  ;;  %v1741_v16 = vpack.c.bf16 %v1560_v12, %v1557_v6 }
 0x1f2   : > { %2874 = vst [vmem:[%s3653_s15 + $0x58] sm:$0xff] %v1742_v11   ;;  %v2069_v20 = vunpack.c.l.bf16 %v1742_v11  ;;  %v2070_v24 = vunpack.c.h.bf16 %v1742_v11 }
 0x1f3   : > { %v2258_v17 = vadd.f32 %v2257_v15, %v2196_v13  ;;  %2873 = vst [vmem:[%s3653_s15 + $0x50] sm:$0xff] %v1741_v16   ;;  %v2067_v18 = vunpack.c.l.bf16 %v1741_v16  ;;  %v2068_v19 = vunpack.c.h.bf16 %v1741_v16  ;;  %v2128_v43 = vadd.f32 %v2127_v14, %v2066_v5 }
 0x1f4   : > { %v2200_v32 = vmul.f32 %v2069_v20, %v2069_v20  ;;  %v2201_v35 = vmul.f32 %v2070_v24, %v2070_v24 }
 0x1f5   : > { %v2129_v45 = vadd.f32 %v2128_v43, %v2067_v18  ;;  %v2198_v21 = vmul.f32 %v2067_v18, %v2067_v18  ;;  %v2259_v22 = vadd.f32 %v2258_v17, %v2197_v50  ;;  %v3078_v23 = vpop.f32.mrb[20].mxu1  ;;  %v2199_v27 = vmul.f32 %v2068_v19, %v2068_v19 }
 0x1f6   : > { %v1573_v25 = vpop.f32.mrb[21].mxu1 }
 0x1f7   : > { %v2130_v26 = vadd.f32 %v2129_v45, %v2068_v19  ;;  %v2260_v28 = vadd.f32 %v2259_v22, %v2198_v21  ;;  %v3079_v29 = vpop.f32.mrb[22].mxu1 }
 0x1f8   : > { %v1744_v30 = vpack.c.bf16 %v3079_v29, %v3078_v23  ;;  %v1576_v31 = vpop.f32.mrb[23].mxu1 }
 0x1f9   : > { %v2131_v46 = vadd.f32 %v2130_v26, %v2069_v20  ;;  %v2261_v33 = vadd.f32 %v2260_v28, %v2199_v27  ;;  %v1743_v34 = vpack.c.bf16 %v1576_v31, %v1573_v25 }
 0x1fa   : > { %2876 = vst [vmem:[%s3653_s15 + $0x68] sm:$0xff] %v1744_v30   ;;  %v2073_v40 = vunpack.c.l.bf16 %v1744_v30  ;;  %v2074_v48 = vunpack.c.h.bf16 %v1744_v30 }
 0x1fb   : > { %v2262_v36 = vadd.f32 %v2261_v33, %v2200_v32  ;;  %2875 = vst [vmem:[%s3653_s15 + $0x60] sm:$0xff] %v1743_v34   ;;  %v2071_v37 = vunpack.c.l.bf16 %v1743_v34  ;;  %v2072_v38 = vunpack.c.h.bf16 %v1743_v34  ;;  %v2132_v39 = vadd.f32 %v2131_v46, %v2070_v24 }
 0x1fc   : > { %v2204_v57 = vmul.f32 %v2073_v40, %v2073_v40  ;;  %v2205_v61 = vmul.f32 %v2074_v48, %v2074_v48 }
 0x1fd   : > { %v2133_v41 = vadd.f32 %v2132_v39, %v2071_v37  ;;  %v2202_v42 = vmul.f32 %v2071_v37, %v2071_v37  ;;  %v2263_v44 = vadd.f32 %v2262_v36, %v2201_v35  ;;  %v3082_v47 = vpop.f32.mrb[24].mxu1  ;;  %v2203_v52 = vmul.f32 %v2072_v38, %v2072_v38 }
 0x1fe   : > { %v1589_v49 = vpop.f32.mrb[25].mxu1 }
 0x1ff   : > { %v2134_v51 = vadd.f32 %v2133_v41, %v2072_v38  ;;  %v2264_v53 = vadd.f32 %v2263_v44, %v2202_v42  ;;  %v3083_v54 = vpop.f32.mrb[26].mxu1 }
 0x200   : > { %v1746_v55 = vpack.c.bf16 %v3083_v54, %v3082_v47  ;;  %v1592_v56 = vpop.f32.mrb[27].mxu1 }
 0x201   : > { %v2135_v58 = vadd.f32 %v2134_v51, %v2073_v40  ;;  %v2265_v59 = vadd.f32 %v2264_v53, %v2203_v52  ;;  %v1745_v60 = vpack.c.bf16 %v1592_v56, %v1589_v49 }
 0x202   : > { %2878 = vst [vmem:[%s3653_s15 + $0x78] sm:$0xff] %v1746_v55   ;;  %v2077_v2 = vunpack.c.l.bf16 %v1746_v55  ;;  %v2078_v7 = vunpack.c.h.bf16 %v1746_v55 }
 0x203   : > { %v2266_v62 = vadd.f32 %v2265_v59, %v2204_v57  ;;  %2877 = vst [vmem:[%s3653_s15 + $0x70] sm:$0xff] %v1745_v60   ;;  %v2075_v63 = vunpack.c.l.bf16 %v1745_v60  ;;  %v2076_v0 = vunpack.c.h.bf16 %v1745_v60  ;;  %v2136_v1 = vadd.f32 %v2135_v58, %v2074_v48 }
 0x204   : > { %v2208_v15 = vmul.f32 %v2077_v2, %v2077_v2  ;;  %v2209_v18 = vmul.f32 %v2078_v7, %v2078_v7 }
 0x205   : > { %v2137_v3 = vadd.f32 %v2136_v1, %v2075_v63  ;;  %v2206_v4 = vmul.f32 %v2075_v63, %v2075_v63  ;;  %v2267_v5 = vadd.f32 %v2266_v62, %v2205_v61  ;;  %v3086_v6 = vpop.f32.mrb[28].mxu1  ;;  %v2207_v10 = vmul.f32 %v2076_v0, %v2076_v0 }
 0x206   : > { %v1605_v8 = vpop.f32.mrb[29].mxu1 }
 0x207   : > { %v2138_v9 = vadd.f32 %v2137_v3, %v2076_v0  ;;  %v2268_v11 = vadd.f32 %v2267_v5, %v2206_v4  ;;  %v3087_v12 = vpop.f32.mrb[30].mxu1 }
 0x208   : > { %v1748_v13 = vpack.c.bf16 %v3087_v12, %v3086_v6  ;;  %v1608_v14 = vpop.f32.mrb[31].mxu1 }
 0x209   : > { %v2139_v16 = vadd.f32 %v2138_v9, %v2077_v2  ;;  %v2269_v50 = vadd.f32 %v2268_v11, %v2207_v10  ;;  %v1747_v17 = vpack.c.bf16 %v1608_v14, %v1605_v8 }
 0x20a   : > { %2880 = vst [vmem:[%s3653_s15 + $0x88] sm:$0xff] %v1748_v13   ;;  %v2081_v21 = vunpack.c.l.bf16 %v1748_v13  ;;  %v2082_v26 = vunpack.c.h.bf16 %v1748_v13 }
 0x20b   : > { %v2270_v19 = vadd.f32 %v2269_v50, %v2208_v15  ;;  %2879 = vst [vmem:[%s3653_s15 + $0x80] sm:$0xff] %v1747_v17   ;;  %v2079_v43 = vunpack.c.l.bf16 %v1747_v17  ;;  %v2080_v20 = vunpack.c.h.bf16 %v1747_v17  ;;  %v2140_v45 = vadd.f32 %v2139_v16, %v2078_v7 }
 0x20c   : > { %v2212_v33 = vmul.f32 %v2081_v21, %v2081_v21  ;;  %v2213_v37 = vmul.f32 %v2082_v26, %v2082_v26 }
 0x20d   : > { %v2141_v22 = vadd.f32 %v2140_v45, %v2079_v43  ;;  %v2210_v23 = vmul.f32 %v2079_v43, %v2079_v43  ;;  %v2271_v24 = vadd.f32 %v2270_v19, %v2209_v18  ;;  %v3090_v25 = vpop.f32.mrb[32].mxu1  ;;  %v2211_v29 = vmul.f32 %v2080_v20, %v2080_v20 }
 0x20e   : > { %v1621_v27 = vpop.f32.mrb[33].mxu1 }
 0x20f   : > { %v2142_v28 = vadd.f32 %v2141_v22, %v2080_v20  ;;  %v2272_v30 = vadd.f32 %v2271_v24, %v2210_v23  ;;  %v3091_v31 = vpop.f32.mrb[34].mxu1 }
 0x210   : > { %v1750_v32 = vpack.c.bf16 %v3091_v31, %v3090_v25  ;;  %v1624_v46 = vpop.f32.mrb[35].mxu1 }
 0x211   : > { %v2143_v34 = vadd.f32 %v2142_v28, %v2081_v21  ;;  %v2273_v35 = vadd.f32 %v2272_v30, %v2211_v29  ;;  %v1749_v36 = vpack.c.bf16 %v1624_v46, %v1621_v27 }
 0x212   : > { %2882 = vst [vmem:[%s3653_s15 + $0x98] sm:$0xff] %v1750_v32   ;;  %v2085_v42 = vunpack.c.l.bf16 %v1750_v32  ;;  %v2086_v51 = vunpack.c.h.bf16 %v1750_v32 }
 0x213   : > { %v2274_v38 = vadd.f32 %v2273_v35, %v2212_v33  ;;  %2881 = vst [vmem:[%s3653_s15 + $0x90] sm:$0xff] %v1749_v36   ;;  %v2083_v39 = vunpack.c.l.bf16 %v1749_v36  ;;  %v2084_v40 = vunpack.c.h.bf16 %v1749_v36  ;;  %v2144_v41 = vadd.f32 %v2143_v34, %v2082_v26 }
 0x214   : > { %v2216_v59 = vmul.f32 %v2085_v42, %v2085_v42  ;;  %v2217_v63 = vmul.f32 %v2086_v51, %v2086_v51 }
 0x215   : > { %v2145_v44 = vadd.f32 %v2144_v41, %v2083_v39  ;;  %v2214_v47 = vmul.f32 %v2083_v39, %v2083_v39  ;;  %v2275_v48 = vadd.f32 %v2274_v38, %v2213_v37  ;;  %v3094_v49 = vpop.f32.mrb[36].mxu1  ;;  %v2215_v54 = vmul.f32 %v2084_v40, %v2084_v40 }
 0x216   : > { %v1637_v52 = vpop.f32.mrb[37].mxu1 }
 0x217   : > { %v2146_v53 = vadd.f32 %v2145_v44, %v2084_v40  ;;  %v2276_v55 = vadd.f32 %v2275_v48, %v2214_v47  ;;  %v3095_v56 = vpop.f32.mrb[38].mxu1 }
 0x218   : > { %v1752_v57 = vpack.c.bf16 %v3095_v56, %v3094_v49  ;;  %v1640_v58 = vpop.f32.mrb[39].mxu1 }
 0x219   : > { %v2147_v60 = vadd.f32 %v2146_v53, %v2085_v42  ;;  %v2277_v61 = vadd.f32 %v2276_v55, %v2215_v54  ;;  %v1751_v62 = vpack.c.bf16 %v1640_v58, %v1637_v52 }
 0x21a   : > { %2884 = vst [vmem:[%s3653_s15 + $0xa8] sm:$0xff] %v1752_v57   ;;  %v2089_v4 = vunpack.c.l.bf16 %v1752_v57  ;;  %v2090_v9 = vunpack.c.h.bf16 %v1752_v57 }
 0x21b   : > { %v2278_v0 = vadd.f32 %v2277_v61, %v2216_v59  ;;  %2883 = vst [vmem:[%s3653_s15 + $0xa0] sm:$0xff] %v1751_v62   ;;  %v2087_v1 = vunpack.c.l.bf16 %v1751_v62  ;;  %v2088_v2 = vunpack.c.h.bf16 %v1751_v62  ;;  %v2148_v3 = vadd.f32 %v2147_v60, %v2086_v51 }
 0x21c   : > { %v2220_v50 = vmul.f32 %v2089_v4, %v2089_v4  ;;  %v2221_v43 = vmul.f32 %v2090_v9, %v2090_v9 }
 0x21d   : > { %v2149_v5 = vadd.f32 %v2148_v3, %v2087_v1  ;;  %v2218_v6 = vmul.f32 %v2087_v1, %v2087_v1  ;;  %v2279_v7 = vadd.f32 %v2278_v0, %v2217_v63  ;;  %v3098_v8 = vpop.f32.mrb[40].mxu1  ;;  %v2219_v12 = vmul.f32 %v2088_v2, %v2088_v2 }
 0x21e   : > { %v1653_v10 = vpop.f32.mrb[41].mxu1 }
 0x21f   : > { %v2150_v11 = vadd.f32 %v2149_v5, %v2088_v2  ;;  %v2280_v13 = vadd.f32 %v2279_v7, %v2218_v6  ;;  %v3099_v14 = vpop.f32.mrb[42].mxu1 }
 0x220   : > { %v1754_v15 = vpack.c.bf16 %v3099_v14, %v3098_v8  ;;  %v1656_v16 = vpop.f32.mrb[43].mxu1 }
 0x221   : > { %v2151_v17 = vadd.f32 %v2150_v11, %v2089_v4  ;;  %v2281_v18 = vadd.f32 %v2280_v13, %v2219_v12  ;;  %v1753_v19 = vpack.c.bf16 %v1656_v16, %v1653_v10 }
 0x222   : > { %2886 = vst [vmem:[%s3653_s15 + $0xb8] sm:$0xff] %v1754_v15   ;;  %v2093_v23 = vunpack.c.l.bf16 %v1754_v15  ;;  %v2094_v28 = vunpack.c.h.bf16 %v1754_v15 }
 0x223   : > { %v2282_v20 = vadd.f32 %v2281_v18, %v2220_v50  ;;  %2885 = vst [vmem:[%s3653_s15 + $0xb0] sm:$0xff] %v1753_v19   ;;  %v2091_v45 = vunpack.c.l.bf16 %v1753_v19  ;;  %v2092_v21 = vunpack.c.h.bf16 %v1753_v19  ;;  %v2152_v22 = vadd.f32 %v2151_v17, %v2090_v9 }
 0x224   : > { %v2224_v35 = vmul.f32 %v2093_v23, %v2093_v23  ;;  %v2225_v39 = vmul.f32 %v2094_v28, %v2094_v28 }
 0x225   : > { %v2153_v24 = vadd.f32 %v2152_v22, %v2091_v45  ;;  %v2222_v25 = vmul.f32 %v2091_v45, %v2091_v45  ;;  %v2283_v26 = vadd.f32 %v2282_v20, %v2221_v43  ;;  %v3102_v27 = vpop.f32.mrb[44].mxu1  ;;  %v2223_v31 = vmul.f32 %v2092_v21, %v2092_v21 }
 0x226   : > { %v1669_v29 = vpop.f32.mrb[45].mxu1 }
 0x227   : > { %v2154_v30 = vadd.f32 %v2153_v24, %v2092_v21  ;;  %v2284_v32 = vadd.f32 %v2283_v26, %v2222_v25  ;;  %v3103_v46 = vpop.f32.mrb[46].mxu1 }
 0x228   : > { %v1756_v33 = vpack.c.bf16 %v3103_v46, %v3102_v27  ;;  %v1672_v34 = vpop.f32.mrb[47].mxu1 }
 0x229   : > { %v2155_v36 = vadd.f32 %v2154_v30, %v2093_v23  ;;  %v2285_v37 = vadd.f32 %v2284_v32, %v2223_v31  ;;  %v1755_v38 = vpack.c.bf16 %v1672_v34, %v1669_v29 }
 0x22a   : > { %2888 = vst [vmem:[%s3653_s15 + $0xc8] sm:$0xff] %v1756_v33   ;;  %v2097_v47 = vunpack.c.l.bf16 %v1756_v33  ;;  %v2098_v53 = vunpack.c.h.bf16 %v1756_v33 }
 0x22b   : > { %v2286_v40 = vadd.f32 %v2285_v37, %v2224_v35  ;;  %2887 = vst [vmem:[%s3653_s15 + $0xc0] sm:$0xff] %v1755_v38   ;;  %v2095_v41 = vunpack.c.l.bf16 %v1755_v38  ;;  %v2096_v42 = vunpack.c.h.bf16 %v1755_v38  ;;  %v2156_v44 = vadd.f32 %v2155_v36, %v2094_v28 }
 0x22c   : > { %v2228_v61 = vmul.f32 %v2097_v47, %v2097_v47  ;;  %v2229_v1 = vmul.f32 %v2098_v53, %v2098_v53 }
 0x22d   : > { %v2157_v48 = vadd.f32 %v2156_v44, %v2095_v41  ;;  %v2226_v49 = vmul.f32 %v2095_v41, %v2095_v41  ;;  %v2287_v51 = vadd.f32 %v2286_v40, %v2225_v39  ;;  %v3106_v52 = vpop.f32.mrb[48].mxu1  ;;  %v2227_v56 = vmul.f32 %v2096_v42, %v2096_v42 }
 0x22e   : > { %v1685_v54 = vpop.f32.mrb[49].mxu1 }
 0x22f   : > { %v2158_v55 = vadd.f32 %v2157_v48, %v2096_v42  ;;  %v2288_v57 = vadd.f32 %v2287_v51, %v2226_v49  ;;  %v3107_v58 = vpop.f32.mrb[50].mxu1 }
 0x230   : > { %v1758_v59 = vpack.c.bf16 %v3107_v58, %v3106_v52  ;;  %v1688_v60 = vpop.f32.mrb[51].mxu1 }
 0x231   : > { %v2159_v62 = vadd.f32 %v2158_v55, %v2097_v47  ;;  %v2289_v63 = vadd.f32 %v2288_v57, %v2227_v56  ;;  %v1757_v0 = vpack.c.bf16 %v1688_v60, %v1685_v54 }
 0x232   : > { %2890 = vst [vmem:[%s3653_s15 + $0xd8] sm:$0xff] %v1758_v59   ;;  %v2101_v6 = vunpack.c.l.bf16 %v1758_v59  ;;  %v2102_v11 = vunpack.c.h.bf16 %v1758_v59 }
 0x233   : > { %v2290_v2 = vadd.f32 %v2289_v63, %v2228_v61  ;;  %2889 = vst [vmem:[%s3653_s15 + $0xd0] sm:$0xff] %v1757_v0   ;;  %v2099_v3 = vunpack.c.l.bf16 %v1757_v0  ;;  %v2100_v4 = vunpack.c.h.bf16 %v1757_v0  ;;  %v2160_v5 = vadd.f32 %v2159_v62, %v2098_v53 }
 0x234   : > { %v2232_v18 = vmul.f32 %v2101_v6, %v2101_v6  ;;  %v2233_v45 = vmul.f32 %v2102_v11, %v2102_v11 }
 0x235   : > { %v2161_v7 = vadd.f32 %v2160_v5, %v2099_v3  ;;  %v2230_v8 = vmul.f32 %v2099_v3, %v2099_v3  ;;  %v2291_v9 = vadd.f32 %v2290_v2, %v2229_v1  ;;  %v3110_v10 = vpop.f32.mrb[52].mxu1  ;;  %v2231_v14 = vmul.f32 %v2100_v4, %v2100_v4 }
 0x236   : > { %v1701_v12 = vpop.f32.mrb[53].mxu1 }
 0x237   : > { %v2162_v13 = vadd.f32 %v2161_v7, %v2100_v4  ;;  %v2292_v15 = vadd.f32 %v2291_v9, %v2230_v8  ;;  %v3111_v16 = vpop.f32.mrb[54].mxu1 }
 0x238   : > { %v1760_v50 = vpack.c.bf16 %v3111_v16, %v3110_v10  ;;  %v1704_v17 = vpop.f32.mrb[55].mxu1 }
 0x239   : > { %v2163_v19 = vadd.f32 %v2162_v13, %v2101_v6  ;;  %v2293_v43 = vadd.f32 %v2292_v15, %v2231_v14  ;;  %v1759_v20 = vpack.c.bf16 %v1704_v17, %v1701_v12 }
 0x23a   : > { %2892 = vst [vmem:[%s3653_s15 + $0xe8] sm:$0xff] %v1760_v50   ;;  %v2105_v25 = vunpack.c.l.bf16 %v1760_v50  ;;  %v2106_v30 = vunpack.c.h.bf16 %v1760_v50 }
 0x23b   : > { %v2294_v21 = vadd.f32 %v2293_v43, %v2232_v18  ;;  %2891 = vst [vmem:[%s3653_s15 + $0xe0] sm:$0xff] %v1759_v20   ;;  %v2103_v22 = vunpack.c.l.bf16 %v1759_v20  ;;  %v2104_v23 = vunpack.c.h.bf16 %v1759_v20  ;;  %v2164_v24 = vadd.f32 %v2163_v19, %v2102_v11 }
 0x23c   : > { %v2236_v37 = vmul.f32 %v2105_v25, %v2105_v25  ;;  %v2237_v41 = vmul.f32 %v2106_v30, %v2106_v30 }
 0x23d   : > { %v2165_v26 = vadd.f32 %v2164_v24, %v2103_v22  ;;  %v2234_v27 = vmul.f32 %v2103_v22, %v2103_v22  ;;  %v2295_v28 = vadd.f32 %v2294_v21, %v2233_v45  ;;  %v3114_v29 = vpop.f32.mrb[56].mxu1  ;;  %v2235_v33 = vmul.f32 %v2104_v23, %v2104_v23 }
 0x23e   : > { %v1762_v31 = vpack.c.bf16 %v3114_v29, %v3114_v29  ;;  %v1717_v32 = vpop.f32.mrb[57].mxu1 }
 0x23f   : > { %v2166_v46 = vadd.f32 %v2165_v26, %v2104_v23  ;;  %v2296_v34 = vadd.f32 %v2295_v28, %v2234_v27  ;;  %v3115_v35 = vpop.f32.mrb[58].mxu1 }
 0x240   : > { %2046 = vst [vmem:[%s3653_s15 + $0xf8] sm:$0xf] %v1762_v31  ;;  %v1720_v36 = vpop.f32.mrb[59].mxu1  ;;  %v2109_v49 = vunpack.c.l.bf16 %v1762_v31 }
 0x241   : > { %v2167_v38 = vadd.f32 %v2166_v46, %v2105_v25  ;;  %v2297_v39 = vadd.f32 %v2296_v34, %v2235_v33  ;;  %v1761_v40 = vpack.c.bf16 %v1720_v36, %v1717_v32 }
 0x242   : > { %v2240_v57 = vmul.f32 %v2109_v49, %v2109_v49 }
 0x243   : > { %v2298_v42 = vadd.f32 %v2297_v39, %v2236_v37  ;;  %2893 = vst [vmem:[%s3653_s15 + $0xf0] sm:$0xff] %v1761_v40   ;;  %v2107_v44 = vunpack.c.l.bf16 %v1761_v40  ;;  %v2108_v47 = vunpack.c.h.bf16 %v1761_v40  ;;  %v2168_v48 = vadd.f32 %v2167_v38, %v2106_v30 }
 0x245   : > { %v2169_v51 = vadd.f32 %v2168_v48, %v2107_v44  ;;  %v2238_v52 = vmul.f32 %v2107_v44, %v2107_v44  ;;  %v2299_v53 = vadd.f32 %v2298_v42, %v2237_v41  ;;  %v2239_v55 = vmul.f32 %v2108_v47, %v2108_v47 }
 0x247   : > { %v2170_v54 = vadd.f32 %v2169_v51, %v2108_v47  ;;  %v2300_v56 = vadd.f32 %v2299_v53, %v2238_v52 }
 0x249   : > { %v2171_v58 = vadd.f32 %v2170_v54, %v2109_v49  ;;  %v2301_v59 = vadd.f32 %v2300_v56, %v2239_v55 }
 0x24b   : > { %v2172_v60 = vrot.slane %v2171_v58, 4  ;;  %v2302_v61 = vadd.f32 %v2301_v59, %v2240_v57 }
 0x24d   : > { %v2173_v62 = vadd.f32 %v2172_v60, %v2171_v58  ;;  %v2303_v63 = vrot.slane %v2302_v61, 4 }
 0x24f   : > { %v2174_v0 = vrot.slane %v2173_v62, 2  ;;  %v2304_v1 = vadd.f32 %v2303_v63, %v2302_v61 }
 0x251   : > { %v2175_v2 = vadd.f32 %v2174_v0, %v2173_v62  ;;  %v2305_v3 = vrot.slane %v2304_v1, 2 }
 0x253   : > { %v2176_v4 = vrot.slane %v2175_v2, 1  ;;  %v2306_v5 = vadd.f32 %v2305_v3, %v2304_v1 }
 0x255   : > { %v2307_v6 = vrot.slane %v2306_v5, 1  ;;  %v2177_v7 = vadd.f32 %v2176_v4, %v2175_v2 }
 0x257   : > { %v2308_v8 = vadd.f32 %v2307_v6, %v2306_v5 }
 0x259   : > { %v2310_v9 = vsel %vm2309_vm0, %v2177_v7, %v2308_v8 }
 0x25a   : > { %v2312_v10 = vsel %vm2311_vm1, %v2310_v9, 0.0 }
 0x25b   : > { %2313 = vst [vmem:[%s265_s17] sm:$0xff] %v2312_v10 }
 0x25c PF: > { %s17_s21 = sadd.s32 1, %s3190_s21  }
 0x25d   : > { %p14_p5 = scmp.ge.s32.totalorder %s17_s21, 4  }
 0x25f   :  { %16 = sbr.rel (!%p14_p5) target bundleno = 1 (0x1), region = 82 }

</bundles_post_ra>
